<compile_context>
chip_gen: v7x
topology: tpu7x:2x2x1
jax: 0.10.0
libtpu: 0.0.40
codegen_flags: <defaults>
</compile_context>

<pallas_src>
import jax
import jax.numpy as jnp
from jax.experimental import pallas as pl
from jax.experimental.pallas import tpu as pltpu

NUM_CLASSES = 10
LATENT_DIM = 100
EMBED_DIM = 50
IMG_SHAPE = (1, 28, 28)
IMG_PIX = IMG_SHAPE[0] * IMG_SHAPE[1] * IMG_SHAPE[2]   # 784
IN_DIM = LATENT_DIM + EMBED_DIM                         # 150
IN_DIM_PAD = 160          # 150 real cols + 1 bias col (==1.0) + 9 zero cols
BIAS_COL = IN_DIM          # column 150 carries the "1" for the folded bias
BN_EPS = 1e-5
LRELU_SLOPE = 0.2

HIDDEN = (128, 256, 512, 1024)
VEC_WIDTH = 1024           # packed (8, 1024) bias/BN-param slab


def _leaky_relu(x):
    return jnp.where(x > 0, x, LRELU_SLOPE * x)


def _bn_lrelu(h, gamma, beta):
    # nn.BatchNorm1d (training mode, biased batch stats), fused single pass:
    #   var = E[h^2] - mu^2 ; y = h*scale + shift ; then LeakyReLU(0.2).
    # TODO(synk): at large B switch to a chunked/two-pass reduction to avoid
    # the full (B,N) h*h temp and the E[h^2]-mu^2 cancellation risk.
    inv_n = 1.0 / h.shape[0]
    mu = jnp.sum(h, axis=0, keepdims=True) * inv_n
    ex2 = jnp.sum(h * h, axis=0, keepdims=True) * inv_n
    var = ex2 - mu * mu
    scale = gamma * jax.lax.rsqrt(var + BN_EPS)
    shift = beta - mu * scale
    return _leaky_relu(h * scale + shift)


def generator_kernel(x_ref, w1_ref, w2_ref, w3_ref, w4_ref, w5_ref, vec_ref,
                     o_ref):
    # x: (B, 160) f32 — cols 0..149 real input, col 150 == 1.0 (bias row of
    # w1), cols 151..159 == 0.  vec: (8, 1024) f32 packed bias/BN params.
    x = x_ref[...]

    # Linear(150->128) with bias folded into w1 row 150, then LeakyReLU(0.2).
    h = jnp.dot(x.astype(jnp.bfloat16), w1_ref[...],
                preferred_element_type=jnp.float32)
    h = _leaky_relu(h)

    # Linear(128->256) [bias cancelled by BN] + BatchNorm1d + LeakyReLU.
    h = jnp.dot(h.astype(jnp.bfloat16), w2_ref[...],
                preferred_element_type=jnp.float32)
    h = _bn_lrelu(h, vec_ref[0:1, :256], vec_ref[1:2, :256])

    # Linear(256->512) [bias cancelled by BN] + BatchNorm1d + LeakyReLU.
    h = jnp.dot(h.astype(jnp.bfloat16), w3_ref[...],
                preferred_element_type=jnp.float32)
    h = _bn_lrelu(h, vec_ref[2:3, :512], vec_ref[3:4, :512])

    # Linear(512->1024) [bias cancelled by BN] + BatchNorm1d + LeakyReLU.
    h = jnp.dot(h.astype(jnp.bfloat16), w4_ref[...],
                preferred_element_type=jnp.float32)
    h = _bn_lrelu(h, vec_ref[4:5, :1024], vec_ref[5:6, :1024])

    # Linear(1024->784) + bias + Tanh.
    h = jnp.dot(h.astype(jnp.bfloat16), w5_ref[...],
                preferred_element_type=jnp.float32)
    h = h + vec_ref[6:7, :IMG_PIX]
    o_ref[...] = jnp.tanh(h)


def init_params(key):
    """Deterministic synthetic parameters matching the PyTorch module shapes.

    Linear weights are bf16 (MXU-native, half the HBM->VMEM bytes), with
    matmuls accumulating in f32.  b1 is folded into w1 row 150; b2/b3/b4 are
    omitted because the following BatchNorm cancels them exactly.  The seven
    remaining per-feature vectors are packed into one (8, 1024) f32 slab.
    """
    ks = jax.random.split(key, 12)

    def lin_w(kw, fan_in, fan_out):
        bound = (1.0 / fan_in) ** 0.5
        return jax.random.uniform(kw, (fan_in, fan_out), jnp.float32,
                                  -bound, bound)

    def lin_b(kb, fan_in, fan_out):
        bound = (1.0 / fan_in) ** 0.5
        return jax.random.uniform(kb, (fan_out,), jnp.float32, -bound, bound)

    emb = jax.random.normal(ks[0], (NUM_CLASSES, EMBED_DIM), jnp.float32)

    # Layer 1: (150,128) -> (160,128); row 150 = b1, rows 151..159 = 0.  bf16.
    w1 = lin_w(ks[1], IN_DIM, HIDDEN[0])
    b1 = lin_b(ks[2], IN_DIM, HIDDEN[0])
    w1 = jnp.pad(w1, ((0, IN_DIM_PAD - IN_DIM), (0, 0)))
    w1 = w1.at[BIAS_COL, :].set(b1).astype(jnp.bfloat16)

    w2 = lin_w(ks[3], HIDDEN[0], HIDDEN[1]).astype(jnp.bfloat16)
    w3 = lin_w(ks[5], HIDDEN[1], HIDDEN[2]).astype(jnp.bfloat16)
    w4 = lin_w(ks[7], HIDDEN[2], HIDDEN[3]).astype(jnp.bfloat16)
    w5 = lin_w(ks[9], HIDDEN[3], IMG_PIX).astype(jnp.bfloat16)
    b5 = lin_b(ks[10], HIDDEN[3], IMG_PIX)

    # Packed bias / BatchNorm params (gamma=1, beta=0 at init, as in PyTorch):
    #   row 0: g2   row 1: be2   row 2: g3   row 3: be3
    #   row 4: g4   row 5: be4   row 6: b5   row 7: zeros (sublane pad)
    vecs = jnp.zeros((8, VEC_WIDTH), jnp.float32)
    vecs = vecs.at[0, :256].set(1.0)     # g2
    vecs = vecs.at[2, :512].set(1.0)     # g3
    vecs = vecs.at[4, :1024].set(1.0)    # g4
    vecs = vecs.at[6, :IMG_PIX].set(b5)  # b5
    # rows 1, 3, 5 (be2, be3, be4) stay zero.

    return dict(emb=emb, w1=w1, w2=w2, w3=w3, w4=w4, w5=w5, vecs=vecs)


@jax.jit
def generator_forward(params, noise, labels):
    B = noise.shape[0]
    assert B > 1, "BatchNorm1d (training mode) needs batch size > 1"

    # Embedding lookup + concat (glue, plain JAX).  Build the padded (B, 160)
    # input directly: [noise | embedding | 1.0 (bias col) | zeros].
    label_input = jnp.take(params["emb"], labels, axis=0)           # (B, 50)
    gen_input = jnp.concatenate(
        [noise, label_input,
         jnp.ones((B, 1), jnp.float32),
         jnp.zeros((B, IN_DIM_PAD - IN_DIM - 1), jnp.float32)],
        axis=-1)                                                     # (B, 160)

    vmem = pl.BlockSpec(memory_space=pltpu.MemorySpace.VMEM)
    args = (gen_input, params["w1"], params["w2"], params["w3"],
            params["w4"], params["w5"], params["vecs"])

    flops = 2 * B * (IN_DIM_PAD * 128 + 128 * 256 + 256 * 512
                     + 512 * 1024 + 1024 * IMG_PIX)
    transcendentals = B * IMG_PIX + (256 + 512 + 1024)     # tanh + rsqrt
    bytes_accessed = (sum(int(a.size) * a.dtype.itemsize for a in args)
                      + B * IMG_PIX * 4)

    # Single grid-less call: weights + the full batch of activations stay in
    # VMEM, so BatchNorm statistics cover the entire batch.
    # TODO(synk): raise vmem_limit_bytes / switch to the batch-tiled two-pass
    # variant once B*1024*4B activations approach the VMEM budget.
    flat_img = pl.pallas_call(
        generator_kernel,
        out_shape=jax.ShapeDtypeStruct((B, IMG_PIX), jnp.float32),
        in_specs=[vmem] * len(args),
        out_specs=vmem,
        compiler_params=pltpu.CompilerParams(vmem_limit_bytes=16 << 20),
        cost_estimate=pl.CostEstimate(flops=flops,
                                      transcendentals=transcendentals,
                                      bytes_accessed=bytes_accessed),
    )(*args)

    # img.view(B, 1, 28, 28) -> NCHW.
    return flat_img.reshape(B, *IMG_SHAPE)


if __name__ == "__main__":
    key = jax.random.PRNGKey(0)
    kp, kn, kl = jax.random.split(key, 3)

    params = init_params(kp)

    # Small example batch (>1 required: BatchNorm1d uses batch statistics).
    # Per-image cost drops ~linearly with B up to ~128-256 (weight-DMA bound).
    B = 8
    noise = jax.random.normal(kn, (B, LATENT_DIM), jnp.float32)
    labels = jax.random.randint(kl, (B,), 0, NUM_CLASSES, jnp.int32)

    img = generator_forward(params, noise, labels)
    jax.block_until_ready(img)

    assert img.shape == (B, 1, 28, 28), img.shape
    assert img.dtype == jnp.float32
    assert bool(jnp.all(jnp.isfinite(img)))
    assert bool(jnp.all(jnp.abs(img) <= 1.0))   # tanh range
    print("KERNEL_OK")
</pallas_src>

<mosaic_0001>
module attributes {stable_mosaic.version = 11 : i64} {
  func.func @generator_kernel(%arg0: memref<8x160xf32, #tpu.memory_space<vmem>>, %arg1: memref<160x128xbf16, #tpu.memory_space<vmem>>, %arg2: memref<128x256xbf16, #tpu.memory_space<vmem>>, %arg3: memref<256x512xbf16, #tpu.memory_space<vmem>>, %arg4: memref<512x1024xbf16, #tpu.memory_space<vmem>>, %arg5: memref<1024x784xbf16, #tpu.memory_space<vmem>>, %arg6: memref<8x1024xf32, #tpu.memory_space<vmem>>, %arg7: memref<8x784xf32, #tpu.memory_space<vmem>>) attributes {dimension_semantics = [], scalar_prefetch = 0 : i64, scratch_operands = 0 : i64, tpu.core_type = #tpu.core_type<tc>} {
    %c0 = arith.constant 0 : index
    %c0_0 = arith.constant 0 : index
    %0 = vector.load %arg0[%c0, %c0_0] : memref<8x160xf32, #tpu.memory_space<vmem>>, vector<8x160xf32>
    %1 = arith.truncf %0 : vector<8x160xf32> to vector<8x160xbf16>
    %c0_1 = arith.constant 0 : index
    %c0_2 = arith.constant 0 : index
    %2 = vector.load %arg1[%c0_1, %c0_2] : memref<160x128xbf16, #tpu.memory_space<vmem>>, vector<160x128xbf16>
    %cst = arith.constant dense<0.000000e+00> : vector<8x128xf32>
    %3 = tpu.matmul %1, %2, %cst {dimension_numbers = #tpu.dot_dimension_numbers<[1], [0], [0], [1], [0, 0, 1, 1], [], []>} : vector<8x160xbf16>, vector<160x128xbf16>, vector<8x128xf32> -> vector<8x128xf32>
    %cst_3 = arith.constant 0.000000e+00 : f32
    %4 = vector.broadcast %cst_3 : f32 to vector<8x128xf32>
    %5 = arith.cmpf ogt, %3, %4 : vector<8x128xf32>
    %cst_4 = arith.constant 2.000000e-01 : f32
    %6 = vector.broadcast %cst_4 : f32 to vector<8x128xf32>
    %7 = arith.mulf %6, %3 : vector<8x128xf32>
    %8 = arith.select %5, %3, %7 : vector<8x128xi1>, vector<8x128xf32>
    %9 = arith.truncf %8 : vector<8x128xf32> to vector<8x128xbf16>
    %c0_5 = arith.constant 0 : index
    %c0_6 = arith.constant 0 : index
    %10 = vector.load %arg2[%c0_5, %c0_6] : memref<128x256xbf16, #tpu.memory_space<vmem>>, vector<128x256xbf16>
    %cst_7 = arith.constant dense<0.000000e+00> : vector<8x256xf32>
    %11 = tpu.matmul %9, %10, %cst_7 {dimension_numbers = #tpu.dot_dimension_numbers<[1], [0], [0], [1], [0, 0, 1, 1], [], []>} : vector<8x128xbf16>, vector<128x256xbf16>, vector<8x256xf32> -> vector<8x256xf32>
    %c0_8 = arith.constant 0 : index
    %c0_9 = arith.constant 0 : index
    %12 = vector.load %arg6[%c0_8, %c0_9] : memref<8x1024xf32, #tpu.memory_space<vmem>>, vector<1x256xf32>
    %c1 = arith.constant 1 : index
    %c0_10 = arith.constant 0 : index
    %13 = vector.load %arg6[%c1, %c0_10] : memref<8x1024xf32, #tpu.memory_space<vmem>>, vector<1x256xf32>
    %cst_11 = arith.constant dense<0.000000e+00> : vector<256xf32>
    %14 = vector.multi_reduction <add>, %11, %cst_11 [0] : vector<8x256xf32> to vector<256xf32>
    %15 = vector.shape_cast %14 : vector<256xf32> to vector<1x256xf32>
    %cst_12 = arith.constant 1.250000e-01 : f32
    %16 = vector.broadcast %cst_12 : f32 to vector<1x256xf32>
    %17 = arith.mulf %15, %16 : vector<1x256xf32>
    %18 = arith.mulf %11, %11 : vector<8x256xf32>
    %cst_13 = arith.constant dense<0.000000e+00> : vector<256xf32>
    %19 = vector.multi_reduction <add>, %18, %cst_13 [0] : vector<8x256xf32> to vector<256xf32>
    %20 = vector.shape_cast %19 : vector<256xf32> to vector<1x256xf32>
    %cst_14 = arith.constant 1.250000e-01 : f32
    %21 = vector.broadcast %cst_14 : f32 to vector<1x256xf32>
    %22 = arith.mulf %20, %21 : vector<1x256xf32>
    %23 = arith.mulf %17, %17 : vector<1x256xf32>
    %24 = arith.subf %22, %23 : vector<1x256xf32>
    %cst_15 = arith.constant 9.99999974E-6 : f32
    %25 = vector.broadcast %cst_15 : f32 to vector<1x256xf32>
    %26 = arith.addf %24, %25 : vector<1x256xf32>
    %27 = math.rsqrt %26 : vector<1x256xf32>
    %28 = arith.mulf %12, %27 : vector<1x256xf32>
    %29 = arith.mulf %17, %28 : vector<1x256xf32>
    %30 = arith.subf %13, %29 : vector<1x256xf32>
    %31 = vector.broadcast %28 : vector<1x256xf32> to vector<8x256xf32>
    %32 = arith.mulf %11, %31 : vector<8x256xf32>
    %33 = vector.broadcast %30 : vector<1x256xf32> to vector<8x256xf32>
    %34 = arith.addf %32, %33 : vector<8x256xf32>
    %cst_16 = arith.constant 0.000000e+00 : f32
    %35 = vector.broadcast %cst_16 : f32 to vector<8x256xf32>
    %36 = arith.cmpf ogt, %34, %35 : vector<8x256xf32>
    %cst_17 = arith.constant 2.000000e-01 : f32
    %37 = vector.broadcast %cst_17 : f32 to vector<8x256xf32>
    %38 = arith.mulf %37, %34 : vector<8x256xf32>
    %39 = arith.select %36, %34, %38 : vector<8x256xi1>, vector<8x256xf32>
    %40 = arith.truncf %39 : vector<8x256xf32> to vector<8x256xbf16>
    %c0_18 = arith.constant 0 : index
    %c0_19 = arith.constant 0 : index
    %41 = vector.load %arg3[%c0_18, %c0_19] : memref<256x512xbf16, #tpu.memory_space<vmem>>, vector<256x512xbf16>
    %cst_20 = arith.constant dense<0.000000e+00> : vector<8x512xf32>
    %42 = tpu.matmul %40, %41, %cst_20 {dimension_numbers = #tpu.dot_dimension_numbers<[1], [0], [0], [1], [0, 0, 1, 1], [], []>} : vector<8x256xbf16>, vector<256x512xbf16>, vector<8x512xf32> -> vector<8x512xf32>
    %c2 = arith.constant 2 : index
    %c0_21 = arith.constant 0 : index
    %43 = vector.load %arg6[%c2, %c0_21] : memref<8x1024xf32, #tpu.memory_space<vmem>>, vector<1x512xf32>
    %c3 = arith.constant 3 : index
    %c0_22 = arith.constant 0 : index
    %44 = vector.load %arg6[%c3, %c0_22] : memref<8x1024xf32, #tpu.memory_space<vmem>>, vector<1x512xf32>
    %cst_23 = arith.constant dense<0.000000e+00> : vector<512xf32>
    %45 = vector.multi_reduction <add>, %42, %cst_23 [0] : vector<8x512xf32> to vector<512xf32>
    %46 = vector.shape_cast %45 : vector<512xf32> to vector<1x512xf32>
    %cst_24 = arith.constant 1.250000e-01 : f32
    %47 = vector.broadcast %cst_24 : f32 to vector<1x512xf32>
    %48 = arith.mulf %46, %47 : vector<1x512xf32>
    %49 = arith.mulf %42, %42 : vector<8x512xf32>
    %cst_25 = arith.constant dense<0.000000e+00> : vector<512xf32>
    %50 = vector.multi_reduction <add>, %49, %cst_25 [0] : vector<8x512xf32> to vector<512xf32>
    %51 = vector.shape_cast %50 : vector<512xf32> to vector<1x512xf32>
    %cst_26 = arith.constant 1.250000e-01 : f32
    %52 = vector.broadcast %cst_26 : f32 to vector<1x512xf32>
    %53 = arith.mulf %51, %52 : vector<1x512xf32>
    %54 = arith.mulf %48, %48 : vector<1x512xf32>
    %55 = arith.subf %53, %54 : vector<1x512xf32>
    %cst_27 = arith.constant 9.99999974E-6 : f32
    %56 = vector.broadcast %cst_27 : f32 to vector<1x512xf32>
    %57 = arith.addf %55, %56 : vector<1x512xf32>
    %58 = math.rsqrt %57 : vector<1x512xf32>
    %59 = arith.mulf %43, %58 : vector<1x512xf32>
    %60 = arith.mulf %48, %59 : vector<1x512xf32>
    %61 = arith.subf %44, %60 : vector<1x512xf32>
    %62 = vector.broadcast %59 : vector<1x512xf32> to vector<8x512xf32>
    %63 = arith.mulf %42, %62 : vector<8x512xf32>
    %64 = vector.broadcast %61 : vector<1x512xf32> to vector<8x512xf32>
    %65 = arith.addf %63, %64 : vector<8x512xf32>
    %cst_28 = arith.constant 0.000000e+00 : f32
    %66 = vector.broadcast %cst_28 : f32 to vector<8x512xf32>
    %67 = arith.cmpf ogt, %65, %66 : vector<8x512xf32>
    %cst_29 = arith.constant 2.000000e-01 : f32
    %68 = vector.broadcast %cst_29 : f32 to vector<8x512xf32>
    %69 = arith.mulf %68, %65 : vector<8x512xf32>
    %70 = arith.select %67, %65, %69 : vector<8x512xi1>, vector<8x512xf32>
    %71 = arith.truncf %70 : vector<8x512xf32> to vector<8x512xbf16>
    %c0_30 = arith.constant 0 : index
    %c0_31 = arith.constant 0 : index
    %72 = vector.load %arg4[%c0_30, %c0_31] : memref<512x1024xbf16, #tpu.memory_space<vmem>>, vector<512x1024xbf16>
    %cst_32 = arith.constant dense<0.000000e+00> : vector<8x1024xf32>
    %73 = tpu.matmul %71, %72, %cst_32 {dimension_numbers = #tpu.dot_dimension_numbers<[1], [0], [0], [1], [0, 0, 1, 1], [], []>} : vector<8x512xbf16>, vector<512x1024xbf16>, vector<8x1024xf32> -> vector<8x1024xf32>
    %c4 = arith.constant 4 : index
    %c0_33 = arith.constant 0 : index
    %74 = vector.load %arg6[%c4, %c0_33] : memref<8x1024xf32, #tpu.memory_space<vmem>>, vector<1x1024xf32>
    %c5 = arith.constant 5 : index
    %c0_34 = arith.constant 0 : index
    %75 = vector.load %arg6[%c5, %c0_34] : memref<8x1024xf32, #tpu.memory_space<vmem>>, vector<1x1024xf32>
    %cst_35 = arith.constant dense<0.000000e+00> : vector<1024xf32>
    %76 = vector.multi_reduction <add>, %73, %cst_35 [0] : vector<8x1024xf32> to vector<1024xf32>
    %77 = vector.shape_cast %76 : vector<1024xf32> to vector<1x1024xf32>
    %cst_36 = arith.constant 1.250000e-01 : f32
    %78 = vector.broadcast %cst_36 : f32 to vector<1x1024xf32>
    %79 = arith.mulf %77, %78 : vector<1x1024xf32>
    %80 = arith.mulf %73, %73 : vector<8x1024xf32>
    %cst_37 = arith.constant dense<0.000000e+00> : vector<1024xf32>
    %81 = vector.multi_reduction <add>, %80, %cst_37 [0] : vector<8x1024xf32> to vector<1024xf32>
    %82 = vector.shape_cast %81 : vector<1024xf32> to vector<1x1024xf32>
    %cst_38 = arith.constant 1.250000e-01 : f32
    %83 = vector.broadcast %cst_38 : f32 to vector<1x1024xf32>
    %84 = arith.mulf %82, %83 : vector<1x1024xf32>
    %85 = arith.mulf %79, %79 : vector<1x1024xf32>
    %86 = arith.subf %84, %85 : vector<1x1024xf32>
    %cst_39 = arith.constant 9.99999974E-6 : f32
    %87 = vector.broadcast %cst_39 : f32 to vector<1x1024xf32>
    %88 = arith.addf %86, %87 : vector<1x1024xf32>
    %89 = math.rsqrt %88 : vector<1x1024xf32>
    %90 = arith.mulf %74, %89 : vector<1x1024xf32>
    %91 = arith.mulf %79, %90 : vector<1x1024xf32>
    %92 = arith.subf %75, %91 : vector<1x1024xf32>
    %93 = vector.broadcast %90 : vector<1x1024xf32> to vector<8x1024xf32>
    %94 = arith.mulf %73, %93 : vector<8x1024xf32>
    %95 = vector.broadcast %92 : vector<1x1024xf32> to vector<8x1024xf32>
    %96 = arith.addf %94, %95 : vector<8x1024xf32>
    %cst_40 = arith.constant 0.000000e+00 : f32
    %97 = vector.broadcast %cst_40 : f32 to vector<8x1024xf32>
    %98 = arith.cmpf ogt, %96, %97 : vector<8x1024xf32>
    %cst_41 = arith.constant 2.000000e-01 : f32
    %99 = vector.broadcast %cst_41 : f32 to vector<8x1024xf32>
    %100 = arith.mulf %99, %96 : vector<8x1024xf32>
    %101 = arith.select %98, %96, %100 : vector<8x1024xi1>, vector<8x1024xf32>
    %102 = arith.truncf %101 : vector<8x1024xf32> to vector<8x1024xbf16>
    %c0_42 = arith.constant 0 : index
    %c0_43 = arith.constant 0 : index
    %103 = vector.load %arg5[%c0_42, %c0_43] : memref<1024x784xbf16, #tpu.memory_space<vmem>>, vector<1024x784xbf16>
    %cst_44 = arith.constant dense<0.000000e+00> : vector<8x784xf32>
    %104 = tpu.matmul %102, %103, %cst_44 {dimension_numbers = #tpu.dot_dimension_numbers<[1], [0], [0], [1], [0, 0, 1, 1], [], []>} : vector<8x1024xbf16>, vector<1024x784xbf16>, vector<8x784xf32> -> vector<8x784xf32>
    %c6 = arith.constant 6 : index
    %c0_45 = arith.constant 0 : index
    %105 = vector.load %arg6[%c6, %c0_45] : memref<8x1024xf32, #tpu.memory_space<vmem>>, vector<1x784xf32>
    %106 = vector.broadcast %105 : vector<1x784xf32> to vector<8x784xf32>
    %107 = arith.addf %104, %106 : vector<8x784xf32>
    %108 = math.tanh %107 : vector<8x784xf32>
    %c0_46 = arith.constant 0 : index
    %c0_47 = arith.constant 0 : index
    %109 = vector.load %arg7[%c0_46, %c0_47] : memref<8x784xf32, #tpu.memory_space<vmem>>, vector<8x784xf32>
    tpu.vector_store %arg7[%c0_46, %c0_47], %108 {strides = array<i32>} : memref<8x784xf32, #tpu.memory_space<vmem>>, vector<8x784xf32>,
    return
  }
}

</mosaic_0001>

<bundles_post_ra>
// kernel: generator_forward.1
= control target key start
LH: loop header
LB: loop body
LE: loop exit
PB: predicated region body
PF: predicated region fallthrough
CT: control target
= control target key end

     0   :  { %v8658_v0 = vmov 0   ;;  %vm111_vm0 = vcmask 261120   ;;  %s11474_s1 = inlined_call_operand.vmem [shape: bf16[160,128], index: 1, kind: input, shape index: {}]   ;;  %s11475_s0 = inlined_call_operand.vmem [shape: f32[8,160], index: 0, kind: input, shape index: {}]   ;;  %s11476_s2 = inlined_call_operand.vmem [shape: bf16[128,256], index: 2, kind: input, shape index: {}]   ;;  %s11477_s3 = inlined_call_operand.vmem [shape: bf16[256,512], index: 3, kind: input, shape index: {}]   ;;  %s11478_s6 = inlined_call_operand.vmem [shape: f32[8,1024], index: 6, kind: input, shape index: {}]   ;;  %s11479_s4 = inlined_call_operand.vmem [shape: bf16[512,1024], index: 4, kind: input, shape index: {}]   ;;  %s11480_s5 = inlined_call_operand.vmem [shape: bf16[1024,784], index: 5, kind: input, shape index: {}]   ;;  %s11481_s7 = inlined_call_operand.vmem [shape: f32[8,784], index: 7, kind: output, shape index: {}]  }
   0x1   :  { %115 = vmatprep.subr.bf16.mxu0 %v8658_v0  ;;  %v7846_v1 = vld [vmem:[%s11474_s1] sm:$0xff]   ;;  %287 = vmatprep.mubr.bf16.mxu1 %v8658_v0  ;;  %v7847_v2 = vld [vmem:[%s11474_s1 + $0x8] sm:$0xff]   ;;  %v7848_v3 = vld [vmem:[%s11474_s1 + $0x10] sm:$0xff]  }
   0x2   :  { %116 = vmatpush1.bf16.msra.mxu0 %v7846_v1  ;;  %v7849_v4 = vld [vmem:[%s11474_s1 + $0x18] sm:$0xff]   ;;  %v28_v5 = vld [vmem:[%s11475_s0 + $0x8] sm:$0xff]  ;;  %v7850_v10 = vld [vmem:[%s11474_s1 + $0x20] sm:$0xff]  }
   0x3   :  { %117 = vmatprep.subr.bf16.mxu0 %v8658_v0  ;;  %v30_v6 = vpack.c.bf16 %v28_v5, %v28_v5  ;;  %v7856_v7 = vld [vmem:[%s11476_s2 + $0x4] ss:$8 sps:$4 sm:$0xff]   ;;  %v7858_v8 = vld [vmem:[%s11476_s2] ss:$8 sps:$4 sm:$0xff]   ;;  %v7859_v9 = vld [vmem:[%s11476_s2 + $0x14] ss:$8 sps:$4 sm:$0xff]  }
   0x4   :  { %255 = vmatprep.subr.bf16.mxu1 %v7856_v7  ;;  %v7861_v11 = vld [vmem:[%s11476_s2 + $0x10] ss:$8 sps:$4 sm:$0xff]   ;;  %v7862_v12 = vld [vmem:[%s11476_s2 + $0x24] ss:$8 sps:$4 sm:$0xff]   ;;  %v7864_v14 = vld [vmem:[%s11476_s2 + $0x20] ss:$8 sps:$4 sm:$0xff]  }
   0x5   :  { %6904 = vmatprep.mubr.msk.bf16.mxu0 %vm111_vm0, %v30_v6  ;;  %256 = vmatpush1.bf16.msra.mxu1 %v7858_v8  ;;  %v7851_v13 = vld [vmem:[%s11474_s1 + $0x28] sm:$0xff]   ;;  %v7865_v15 = vld [vmem:[%s11476_s2 + $0x34] ss:$8 sps:$4 sm:$0xff]   ;;  %v7867_v17 = vld [vmem:[%s11476_s2 + $0x30] ss:$8 sps:$4 sm:$0xff]   ;;  %vm6888_vm0 = vcmask 130048  }
   0x6   :  { %118 = vmatpush1.bf16.msra.mxu0 %v7847_v2  ;;  %257 = vmatprep.subr.bf16.mxu1 %v7859_v9  ;;  %v7852_v16 = vld [vmem:[%s11474_s1 + $0x30] sm:$0xff]   ;;  %v7868_v18 = vld [vmem:[%s11476_s2 + $0x44] ss:$8 sps:$4 sm:$0xff]   ;;  %v7853_v19 = vld [vmem:[%s11474_s1 + $0x38] sm:$0xff]  }
   0x7   :  { %119 = vmatprep.subr.bf16.mxu0 %v8658_v0  ;;  %v7870_v20 = vld [vmem:[%s11476_s2 + $0x40] ss:$8 sps:$4 sm:$0xff]   ;;  %v7871_v21 = vld [vmem:[%s11476_s2 + $0x54] ss:$8 sps:$4 sm:$0xff]   ;;  %v7873_v23 = vld [vmem:[%s11476_s2 + $0x50] ss:$8 sps:$4 sm:$0xff]  }
   0x8   :  { %v7854_v22 = vld [vmem:[%s11474_s1 + $0x40] sm:$0xff]   ;;  %v7855_v25 = vld [vmem:[%s11474_s1 + $0x48] sm:$0xff]   ;;  %v7877_v29 = vld [vmem:[%s11476_s2 + $0x74] ss:$8 sps:$4 sm:$0xff]  }
   0x9   :  { %258 = vmatpush1.bf16.msra.mxu1 %v7861_v11  ;;  %v7874_v24 = vld [vmem:[%s11476_s2 + $0x64] ss:$8 sps:$4 sm:$0xff]   ;;  %v7876_v27 = vld [vmem:[%s11476_s2 + $0x60] ss:$8 sps:$4 sm:$0xff]   ;;  %v7879_v30 = vld [vmem:[%s11476_s2 + $0x70] ss:$8 sps:$4 sm:$0xff]  }
   0xa   :  { %120 = vmatpush1.bf16.msra.mxu0 %v7848_v3  ;;  %259 = vmatprep.subr.bf16.mxu1 %v7862_v12  ;;  %v27_v26 = vld [vmem:[%s11475_s0] sm:$0xff]  ;;  %v7930_v6 = vld [vmem:[%s11477_s3 + $0xc] ss:$16 sps:$4 sm:$0xff]  }
   0xb   :  { %121 = vmatprep.subr.bf16.mxu0 %v8658_v0  ;;  %v29_v28 = vpack.c.bf16 %v27_v26, %v27_v26  ;;  %v7880_v31 = vld [vmem:[%s11477_s3] ss:$16 sps:$4 sm:$0xff]   ;;  %v7882_v32 = vld [vmem:[%s11477_s3 + $0x4] ss:$16 sps:$4 sm:$0xff]  }
   0xc   :  { %v7885_v40 = vld [vmem:[%s11477_s3 + $0x24] ss:$16 sps:$4 sm:$0xff]   ;;  %v7883_v41 = vld [vmem:[%s11477_s3 + $0x20] ss:$16 sps:$4 sm:$0xff]  }
   0xd   :  { %260 = vmatpush1.bf16.msra.mxu1 %v7864_v14  ;;  %v7888_v42 = vld [vmem:[%s11477_s3 + $0x44] ss:$16 sps:$4 sm:$0xff]   ;;  %v7886_v43 = vld [vmem:[%s11477_s3 + $0x40] ss:$16 sps:$4 sm:$0xff]  }
   0xe   :  { %122 = vmatpush1.bf16.msra.mxu0 %v7849_v4  ;;  %261 = vmatprep.subr.bf16.mxu1 %v7865_v15  ;;  %v7891_v44 = vld [vmem:[%s11477_s3 + $0x64] ss:$16 sps:$4 sm:$0xff]   ;;  %v7889_v45 = vld [vmem:[%s11477_s3 + $0x60] ss:$16 sps:$4 sm:$0xff]  }
   0xf   :  { %123 = vmatprep.subr.bf16.mxu0 %v8658_v0  ;;  %v7894_v46 = vld [vmem:[%s11477_s3 + $0x84] ss:$16 sps:$4 sm:$0xff]   ;;  %v7892_v47 = vld [vmem:[%s11477_s3 + $0x80] ss:$16 sps:$4 sm:$0xff]  }
  0x10   :  { %v7897_v48 = vld [vmem:[%s11477_s3 + $0xa4] ss:$16 sps:$4 sm:$0xff]   ;;  %v7895_v49 = vld [vmem:[%s11477_s3 + $0xa0] ss:$16 sps:$4 sm:$0xff]  }
  0x11   :  { %262 = vmatpush1.bf16.msra.mxu1 %v7867_v17  ;;  %v7900_v50 = vld [vmem:[%s11477_s3 + $0xc4] ss:$16 sps:$4 sm:$0xff]   ;;  %v7898_v51 = vld [vmem:[%s11477_s3 + $0xc0] ss:$16 sps:$4 sm:$0xff]  }
  0x12   :  { %124 = vmatpush1.bf16.msra.mxu0 %v7850_v10  ;;  %263 = vmatprep.subr.bf16.mxu1 %v7868_v18  ;;  %v7903_v52 = vld [vmem:[%s11477_s3 + $0xe4] ss:$16 sps:$4 sm:$0xff]   ;;  %v7901_v53 = vld [vmem:[%s11477_s3 + $0xe0] ss:$16 sps:$4 sm:$0xff]  }
  0x13   :  { %125 = vmatprep.subr.bf16.mxu0 %v8658_v0  ;;  %v7906_v54 = vld [vmem:[%s11477_s3 + $0x104] ss:$16 sps:$4 sm:$0xff]   ;;  %v7904_v55 = vld [vmem:[%s11477_s3 + $0x100] ss:$16 sps:$4 sm:$0xff]  }
  0x14   :  { %v7909_v56 = vld [vmem:[%s11477_s3 + $0x124] ss:$16 sps:$4 sm:$0xff]   ;;  %v7907_v57 = vld [vmem:[%s11477_s3 + $0x120] ss:$16 sps:$4 sm:$0xff]  }
  0x15   :  { %264 = vmatpush1.bf16.msra.mxu1 %v7870_v20  ;;  %v7912_v58 = vld [vmem:[%s11477_s3 + $0x144] ss:$16 sps:$4 sm:$0xff]   ;;  %v7910_v59 = vld [vmem:[%s11477_s3 + $0x140] ss:$16 sps:$4 sm:$0xff]  }
  0x16   :  { %126 = vmatpush1.bf16.msra.mxu0 %v7851_v13  ;;  %265 = vmatprep.subr.bf16.mxu1 %v7871_v21  ;;  %v7915_v60 = vld [vmem:[%s11477_s3 + $0x164] ss:$16 sps:$4 sm:$0xff]   ;;  %v7913_v61 = vld [vmem:[%s11477_s3 + $0x160] ss:$16 sps:$4 sm:$0xff]  }
  0x17   :  { %127 = vmatprep.subr.bf16.mxu0 %v8658_v0  ;;  %v7918_v62 = vld [vmem:[%s11477_s3 + $0x184] ss:$16 sps:$4 sm:$0xff]   ;;  %v7916_v63 = vld [vmem:[%s11477_s3 + $0x180] ss:$16 sps:$4 sm:$0xff]  }
  0x18   :  { %v7919_v1 = vld [vmem:[%s11477_s3 + $0x1a0] ss:$16 sps:$4 sm:$0xff]   ;;  %v7924_v2 = vld [vmem:[%s11477_s3 + $0x1c4] ss:$16 sps:$4 sm:$0xff]  }
  0x19   :  { %266 = vmatpush1.bf16.msra.mxu1 %v7873_v23  ;;  %v7922_v3 = vld [vmem:[%s11477_s3 + $0x1c0] ss:$16 sps:$4 sm:$0xff]   ;;  %v7927_v5 = vld [vmem:[%s11477_s3 + $0x1e4] ss:$16 sps:$4 sm:$0xff]  }
  0x1a   :  { %128 = vmatpush1.bf16.msra.mxu0 %v7852_v16  ;;  %267 = vmatprep.subr.bf16.mxu1 %v7874_v24  ;;  %v7925_v4 = vld [vmem:[%s11477_s3 + $0x1e0] ss:$16 sps:$4 sm:$0xff]  }
  0x1b   :  { %129 = vmatprep.subr.bf16.mxu0 %v8658_v0 }
  0x1d   :  { %268 = vmatpush1.bf16.msra.mxu1 %v7876_v27 }
  0x1e   :  { %130 = vmatpush1.bf16.msra.mxu0 %v7853_v19  ;;  %269 = vmatprep.subr.bf16.mxu1 %v7877_v29 }
  0x1f   :  { %131 = vmatprep.subr.bf16.mxu0 %v8658_v0 }
  0x21   :  { %270 = vmatpush1.bf16.msra.mxu1 %v7879_v30 }
  0x22   :  { %132 = vmatpush1.bf16.msra.mxu0 %v7854_v22 }
  0x23   :  { %133 = vmatprep.subr.bf16.mxu0 %v8658_v0  ;;  %v7921_v0 = vld [vmem:[%s11477_s3 + $0x1a4] ss:$16 sps:$4 sm:$0xff]  }
  0x26   :  { %134 = vmatpush1.bf16.msra.mxu0 %v7855_v25 }
  0x27   :  { %795 = vmatprep.subr.bf16.mxu0 %v7882_v32 }
  0x29   :  { %148 = vmatmul.mubr.bf16.vlgmr.msra.gmra.mrb[0].mxu0 %v29_v28 }
  0x2a   :  { %796 = vmatpush1.bf16.msra.mxu0 %v7880_v31 }
  0x2b   :  { %797 = vmatprep.subr.bf16.mxu0 %v7885_v40 }
  0x2e   :  { %798 = vmatpush1.bf16.msra.mxu0 %v7883_v41 }
  0x2f   :  { %799 = vmatprep.subr.bf16.mxu0 %v7888_v42 }
  0x32   :  { %800 = vmatpush1.bf16.msra.mxu0 %v7886_v43 }
  0x33   :  { %801 = vmatprep.subr.bf16.mxu0 %v7891_v44 }
  0x36   :  { %802 = vmatpush1.bf16.msra.mxu0 %v7889_v45 }
  0x37   :  { %803 = vmatprep.subr.bf16.mxu0 %v7894_v46 }
  0x3a   :  { %804 = vmatpush1.bf16.msra.mxu0 %v7892_v47  ;;  %v8659_v47 = vmov 1966171168  }
  0x3b   :  { %805 = vmatprep.subr.bf16.mxu0 %v7897_v48  ;;  %v341_v48 = vunpack.c.l.s4 %v8659_v47  ;;  %v7970_v47 = vld [vmem:[%s11477_s3 + $0x1c8] ss:$16 sps:$4 sm:$0xff]  }
  0x3e   :  { %806 = vmatpush1.bf16.msra.mxu0 %v7895_v49  ;;  %v343_v49 = vlaneseq }
  0x3f   :  { %807 = vmatprep.subr.bf16.mxu0 %v7900_v50  ;;  %v342_v50 = vunpack.c.0.s8 %v341_v48  ;;  %v7975_v48 = vld [vmem:[%s11477_s3 + $0x1ec] ss:$16 sps:$4 sm:$0xff]  }
  0x42   :  { %808 = vmatpush1.bf16.msra.mxu0 %v7898_v51  ;;  %v8883_v51 = vshrl.u32 %v343_v49, 7  ;;  %v7973_v49 = vld [vmem:[%s11477_s3 + $0x1e8] ss:$16 sps:$4 sm:$0xff]  }
  0x43   :  { %809 = vmatprep.subr.bf16.mxu0 %v7903_v52 }
  0x46   :  { %810 = vmatpush1.bf16.msra.mxu0 %v7901_v53  ;;  %v8886_v53 = vsub.s32 %v342_v50, %v8883_v51  ;;  %v1087_v50 = vld [vmem:[%s11479_s4] sm:$0xff] }
  0x47   :  { %811 = vmatprep.subr.bf16.mxu0 %v7906_v54 }
  0x4a   :  { %812 = vmatpush1.bf16.msra.mxu0 %v7904_v55 }
  0x4b   :  { %813 = vmatprep.subr.bf16.mxu0 %v7909_v56 }
  0x4e   :  { %814 = vmatpush1.bf16.msra.mxu0 %v7907_v57  ;;  %v296_v57 = vld [vmem:[%s11478_s6] ss:$8 sm:$0x3] }
  0x4f   :  { %815 = vmatprep.subr.bf16.mxu0 %v7912_v58 }
  0x52   :  { %816 = vmatpush1.bf16.msra.mxu0 %v7910_v59  ;;  %v8894_v59 = vsub.s32 0, %v8883_v51 }
  0x53   :  { %817 = vmatprep.subr.bf16.mxu0 %v7915_v60  ;;  %v8897_v60 = vsub.s32 1, %v8883_v51 }
  0x56   :  { %818 = vmatpush1.bf16.msra.mxu0 %v7913_v61 }
  0x57   :  { %819 = vmatprep.subr.bf16.mxu0 %v7918_v62 }
  0x5a   :  { %820 = vmatpush1.bf16.msra.mxu0 %v7916_v63 }
  0x5b   :  { %821 = vmatprep.subr.bf16.mxu0 %v7921_v0 }
  0x5e   :  { %822 = vmatpush1.bf16.msra.mxu0 %v7919_v1 }
  0x5f   :  { %823 = vmatprep.subr.bf16.mxu0 %v7924_v2 }
  0x62   :  { %824 = vmatpush1.bf16.msra.mxu0 %v7922_v3 }
  0x63   :  { %825 = vmatprep.subr.bf16.mxu0 %v7927_v5 }
  0x66   :  { %826 = vmatpush1.bf16.msra.mxu0 %v7925_v4 }
  0x67   :  { %836 = vmatprep.subr.bf16.mxu0 %v7930_v6  ;;  %v6921_v6 = vld [vmem:[%s11478_s6 + $0x1] ss:$8 sm:$0x3] }
  0xfc   :  { %v149_v33 = vpop.f32.mrb[0].mxu0 }
  0xfd   :  { %vm155_vm1 = vcmp.gt.f32.partialorder %v149_v33, 0.0  ;;  %v156_v34 = vmul.f32 0.2, %v149_v33  ;;  %v151_v35 = vpop.f32.mrb[1].mxu0 }
  0xfe   :  { %v152_v36 = vpop.f32.mrb[2].mxu0 }
  0xff   :  { %v157_v37 = vsel %vm155_vm1, %v149_v33, %v156_v34  ;;  %v153_v38 = vpop.f32.mrb[3].mxu0 }
 0x100   :  { %v158_v39 = vpack.c.bf16 %v157_v37, %v157_v37 }
 0x102   :  { %288 = vmatmul.mubr.bf16.vlgmr.msra.gmra.mrb[0].mxu1 %v158_v39 }
 0x1d5   :  { %v289_v7 = vpop.f32.mrb[0].mxu1 }
 0x1d6   :  { %v299_v8 = vrot.slane %v289_v7, 4  ;;  %v313_v9 = vmul.f32 %v289_v7, %v289_v7  ;;  %v291_v10 = vpop.f32.mrb[1].mxu1 }
 0x1d7   :  { %v305_v11 = vrot.slane %v291_v10, 4  ;;  %v314_v12 = vmul.f32 %v291_v10, %v291_v10  ;;  %v293_v13 = vpop.f32.mrb[2].mxu1 }
 0x1d8   :  { %v300_v14 = vadd.f32 %v299_v8, %v289_v7  ;;  %v315_v15 = vrot.slane %v313_v9, 4  ;;  %v294_v16 = vpop.f32.mrb[3].mxu1 }
 0x1d9   :  { %v306_v17 = vadd.f32 %v305_v11, %v291_v10  ;;  %v321_v18 = vrot.slane %v314_v12, 4 }
 0x1da   :  { %v301_v19 = vrot.slane %v300_v14, 2  ;;  %v316_v20 = vadd.f32 %v315_v15, %v313_v9 }
 0x1db   :  { %v307_v21 = vrot.slane %v306_v17, 2  ;;  %v322_v22 = vadd.f32 %v321_v18, %v314_v12  ;;  %v7928_v18 = vld [vmem:[%s11477_s3 + $0x8] ss:$16 sps:$4 sm:$0xff]  }
 0x1dc   :  { %v302_v23 = vadd.f32 %v301_v19, %v300_v14  ;;  %v317_v24 = vrot.slane %v316_v20, 2 }
 0x1dd   :  { %v308_v25 = vadd.f32 %v307_v21, %v306_v17  ;;  %v323_v26 = vrot.slane %v322_v22, 2  ;;  %v7931_v21 = vld [vmem:[%s11477_s3 + $0x28] ss:$16 sps:$4 sm:$0xff]  }
 0x1de   :  { %v303_v27 = vrot.slane %v302_v23, 1  ;;  %v318_v28 = vadd.f32 %v317_v24, %v316_v20  ;;  %v7933_v20 = vld [vmem:[%s11477_s3 + $0x2c] ss:$16 sps:$4 sm:$0xff]  }
 0x1df   :  { %v309_v29 = vrot.slane %v308_v25, 1  ;;  %v324_v30 = vadd.f32 %v323_v26, %v322_v22  ;;  %v7936_v22 = vld [vmem:[%s11477_s3 + $0x4c] ss:$16 sps:$4 sm:$0xff]  }
 0x1e0   :  { %v304_v31 = vadd.f32 %v303_v27, %v302_v23  ;;  %v319_v32 = vrot.slane %v318_v28, 1  ;;  %v7934_v23 = vld [vmem:[%s11477_s3 + $0x48] ss:$16 sps:$4 sm:$0xff]   ;;  %v7939_v24 = vld [vmem:[%s11477_s3 + $0x6c] ss:$16 sps:$4 sm:$0xff]  }
 0x1e1   :  { %v310_v33 = vadd.f32 %v309_v29, %v308_v25  ;;  %v325_v34 = vrot.slane %v324_v30, 1  ;;  %v7937_v25 = vld [vmem:[%s11477_s3 + $0x68] ss:$16 sps:$4 sm:$0xff]   ;;  %v7942_v26 = vld [vmem:[%s11477_s3 + $0x8c] ss:$16 sps:$4 sm:$0xff]  }
 0x1e2   :  { %v311_v35 = vmul.f32 0.125, %v304_v31  ;;  %v320_v36 = vadd.f32 %v319_v32, %v318_v28  ;;  %v7940_v27 = vld [vmem:[%s11477_s3 + $0x88] ss:$16 sps:$4 sm:$0xff]   ;;  %v7945_v28 = vld [vmem:[%s11477_s3 + $0xac] ss:$16 sps:$4 sm:$0xff]  }
 0x1e3   :  { %v312_v37 = vmul.f32 0.125, %v310_v33  ;;  %v326_v38 = vadd.f32 %v325_v34, %v324_v30  ;;  %v7943_v29 = vld [vmem:[%s11477_s3 + $0xa8] ss:$16 sps:$4 sm:$0xff]   ;;  %v7948_v30 = vld [vmem:[%s11477_s3 + $0xcc] ss:$16 sps:$4 sm:$0xff]  }
 0x1e4   :  { %v327_v39 = vmul.f32 0.125, %v320_v36  ;;  %v329_v40 = vmul.f32 %v311_v35, %v311_v35  ;;  %v7946_v31 = vld [vmem:[%s11477_s3 + $0xc8] ss:$16 sps:$4 sm:$0xff]   ;;  %v7951_v32 = vld [vmem:[%s11477_s3 + $0xec] ss:$16 sps:$4 sm:$0xff]  }
 0x1e5   :  { %v328_v41 = vmul.f32 0.125, %v326_v38  ;;  %v330_v42 = vmul.f32 %v312_v37, %v312_v37  ;;  %v7949_v33 = vld [vmem:[%s11477_s3 + $0xe8] ss:$16 sps:$4 sm:$0xff]   ;;  %v7954_v34 = vld [vmem:[%s11477_s3 + $0x10c] ss:$16 sps:$4 sm:$0xff]  }
 0x1e6   :  { %v331_v43 = vsub.f32 %v327_v39, %v329_v40  ;;  %v7957_v36 = vld [vmem:[%s11477_s3 + $0x12c] ss:$16 sps:$4 sm:$0xff]   ;;  %v7958_v39 = vld [vmem:[%s11477_s3 + $0x148] ss:$16 sps:$4 sm:$0xff]  }
 0x1e7   :  { %v332_v44 = vsub.f32 %v328_v41, %v330_v42  ;;  %v7960_v38 = vld [vmem:[%s11477_s3 + $0x14c] ss:$16 sps:$4 sm:$0xff]   ;;  %v7961_v41 = vld [vmem:[%s11477_s3 + $0x168] ss:$16 sps:$4 sm:$0xff]  }
 0x1e8   :  { %v333_v45 = vadd.f32 1e-05, %v331_v43  ;;  %v7963_v40 = vld [vmem:[%s11477_s3 + $0x16c] ss:$16 sps:$4 sm:$0xff]   ;;  %v7964_v43 = vld [vmem:[%s11477_s3 + $0x188] ss:$16 sps:$4 sm:$0xff]  }
 0x1e9   :  { %v334_v46 = vadd.f32 1e-05, %v332_v44  ;;  %v7966_v42 = vld [vmem:[%s11477_s3 + $0x18c] ss:$16 sps:$4 sm:$0xff]  }
 0x1ea   :  { %8616 = vrsqrt.f32 %v333_v45  ;;  %v7969_v44 = vld [vmem:[%s11477_s3 + $0x1ac] ss:$16 sps:$4 sm:$0xff]   ;;  %v7967_v45 = vld [vmem:[%s11477_s3 + $0x1a8] ss:$16 sps:$4 sm:$0xff]  }
 0x1eb   :  { %8618 = vrsqrt.f32 %v334_v46  ;;  %v7972_v46 = vld [vmem:[%s11477_s3 + $0x1cc] ss:$16 sps:$4 sm:$0xff]  }
 0x1f4   :  { %v8617_v52 = vpop.eup %8616 }
 0x1f5   :  { %v8619_v54 = vpop.eup %8618 }
 0x1f6   :  { %v339_v55 = vcombine.low %v8617_v52, %v8619_v54  ;;  %v1091_v52 = vld [vmem:[%s11479_s4 + $0x20] sm:$0xff]  ;;  %v1088_v54 = vld [vmem:[%s11479_s4 + $0x8] sm:$0xff] }
 0x1f8   :  { %v346_v56 = vrot.slane %v339_v55, %v8886_v53  ;;  %v6989_v55 = vcombine.high %v1087_v50, %v1091_v52 }
 0x1fa   :  { %v353_v58 = vrot.slane %v346_v56, %v8886_v53  ;;  %v1092_v56 = vld [vmem:[%s11479_s4 + $0x28] sm:$0xff]  ;;  %2623 = vmatprep.subr.bf16.mxu1 %v6989_v55 }
 0x1fc   :  { %v355_v61 = vmul.f32 %v353_v58, %v296_v57  ;;  %v6988_v57 = vcombine.low %v1087_v50, %v1091_v52  ;;  %v6990_v58 = vcombine.low %v1088_v54, %v1092_v56  ;;  %v1148_v50 = vld [vmem:[%s11479_s4 + $0x1e8] sm:$0xff] }
 0x1fe   :  { %v360_v62 = vrot.slane %v355_v61, %v8894_v59  ;;  %v364_v63 = vrot.slane %v355_v61, %v8897_v60  ;;  %v6991_v61 = vcombine.high %v1088_v54, %v1092_v56  ;;  %2624 = vmatpush1.bf16.msra.mxu1 %v6988_v57  ;;  %v1151_v56 = vld [vmem:[%s11479_s4 + $0x200] sm:$0xff] }
 0x1ff   :  { %v1155_v57 = vld [vmem:[%s11479_s4 + $0x220] sm:$0xff] }
 0x200   :  { %v367_v0 = vmul.f32 %v360_v62, %v311_v35  ;;  %v368_v1 = vmul.f32 %v364_v63, %v312_v37  ;;  %v388_v2 = vmul.f32 %v360_v62, %v289_v7  ;;  %v389_v3 = vmul.f32 %v364_v63, %v291_v10  ;;  %v7952_v35 = vld [vmem:[%s11477_s3 + $0x108] ss:$16 sps:$4 sm:$0xff]   ;;  %v1095_v62 = vld [vmem:[%s11479_s4 + $0x40] sm:$0xff] }
 0x201   :  { %v7955_v37 = vld [vmem:[%s11477_s3 + $0x128] ss:$16 sps:$4 sm:$0xff]   ;;  %v1099_v63 = vld [vmem:[%s11479_s4 + $0x60] sm:$0xff] }
 0x202   :  { %v371_v4 = vcombine.low %v367_v0, %v368_v1  ;;  %v1096_v0 = vld [vmem:[%s11479_s4 + $0x48] sm:$0xff]  ;;  %v6997_v1 = vcombine.high %v1095_v62, %v1099_v63 }
 0x204   :  { %v378_v5 = vrot.slane %v371_v4, %v8886_v53  ;;  %2625 = vmatprep.subr.bf16.mxu1 %v6997_v1 }
 0x206   :  { %v385_v8 = vrot.slane %v378_v5, %v8886_v53 }
 0x208   :  { %v387_v9 = vsub.f32 %v6921_v6, %v385_v8  ;;  %v1103_v6 = vld [vmem:[%s11479_s4 + $0x80] sm:$0xff] }
 0x209   :  { %v1107_v8 = vld [vmem:[%s11479_s4 + $0xa0] sm:$0xff] }
 0x20a   :  { %v394_v11 = vrot.slane %v387_v9, %v8894_v59  ;;  %v398_v12 = vrot.slane %v387_v9, %v8897_v60  ;;  %v1104_v9 = vld [vmem:[%s11479_s4 + $0x88] sm:$0xff] }
 0x20c   :  { %v402_v13 = vadd.f32 %v398_v12, %v389_v3  ;;  %v401_v14 = vadd.f32 %v394_v11, %v388_v2  ;;  %v1100_v2 = vld [vmem:[%s11479_s4 + $0x68] sm:$0xff]  ;;  %v6996_v3 = vcombine.low %v1095_v62, %v1099_v63  ;;  %v7005_v11 = vcombine.high %v1103_v6, %v1107_v8 }
 0x20d   :  { %v6998_v4 = vcombine.low %v1096_v0, %v1100_v2  ;;  %v6999_v5 = vcombine.high %v1096_v0, %v1100_v2  ;;  %v1108_v12 = vld [vmem:[%s11479_s4 + $0xa8] sm:$0xff]  ;;  %v7052_v63 = vcombine.low %v1151_v56, %v1155_v57  ;;  %v1159_v2 = vld [vmem:[%s11479_s4 + $0x240] sm:$0xff] }
 0x20e   :  { %vm404_vm2 = vcmp.gt.f32.partialorder %v402_v13, 0.0  ;;  %v406_v15 = vmul.f32 0.2, %v402_v13  ;;  %vm403_vm3 = vcmp.gt.f32.partialorder %v401_v14, 0.0  ;;  %v405_v7 = vmul.f32 0.2, %v401_v14  ;;  %2626 = vmatpush1.bf16.msra.mxu1 %v6996_v3 }
 0x20f   :  { %2627 = vmatprep.subr.bf16.mxu1 %v7005_v11  ;;  %v1156_v62 = vld [vmem:[%s11479_s4 + $0x228] sm:$0xff]  ;;  %v1163_v3 = vld [vmem:[%s11479_s4 + $0x260] sm:$0xff] }
 0x210   :  { %v408_v10 = vsel %vm404_vm2, %v402_v13, %v406_v15  ;;  %v407_v16 = vsel %vm403_vm3, %v401_v14, %v405_v7  ;;  %v7004_v13 = vcombine.low %v1103_v6, %v1107_v8  ;;  %v7006_v14 = vcombine.low %v1104_v9, %v1108_v12  ;;  %v1111_v7 = vld [vmem:[%s11479_s4 + $0xc0] sm:$0xff]  ;;  %v1164_v6 = vld [vmem:[%s11479_s4 + $0x268] sm:$0xff] }
 0x211   :  { %v410_v17 = vpack.c.bf16 %v408_v10, %v408_v10  ;;  %v8911_v19 = vpack.c.bf16 %v407_v16, %v407_v16  ;;  %v7007_v15 = vcombine.high %v1104_v9, %v1108_v12  ;;  %v1115_v10 = vld [vmem:[%s11479_s4 + $0xe0] sm:$0xff]  ;;  %v1112_v16 = vld [vmem:[%s11479_s4 + $0xc8] sm:$0xff]  ;;  %v7060_v8 = vcombine.low %v1159_v2, %v1163_v3 }
 0x212   :  { %2628 = vmatpush1.bf16.msra.mxu1 %v7004_v13  ;;  %v1167_v12 = vld [vmem:[%s11479_s4 + $0x280] sm:$0xff] }
 0x213   :  { %827 = vmatprep.mubr.bf16.mxu0 %v410_v17  ;;  %v1171_v13 = vld [vmem:[%s11479_s4 + $0x2a0] sm:$0xff] }
 0x214   :  { %828 = vmatmul.mubr.bf16.vlgmr.msra.gmra.mrb[4].mxu0 %v8911_v19 }
 0x215   :  { %837 = vmatpush1.bf16.msra.mxu0 %v7928_v18  ;;  %868 = vmatprep.mubr.bf16.mxu0 %v410_v17  ;;  %v7013_v17 = vcombine.high %v1111_v7, %v1115_v10  ;;  %v1116_v18 = vld [vmem:[%s11479_s4 + $0xe8] sm:$0xff] }
 0x216   :  { %838 = vmatprep.subr.bf16.mxu0 %v7933_v20  ;;  %v7014_v20 = vcombine.low %v1112_v16, %v1116_v18 }
 0x217   :  { %2629 = vmatprep.subr.bf16.mxu1 %v7013_v17 }
 0x219   :  { %839 = vmatpush1.bf16.msra.mxu0 %v7931_v21  ;;  %v7015_v21 = vcombine.high %v1112_v16, %v1116_v18  ;;  %v1175_v18 = vld [vmem:[%s11479_s4 + $0x2c0] sm:$0xff] }
 0x21a   :  { %840 = vmatprep.subr.bf16.mxu0 %v7936_v22  ;;  %v1119_v22 = vld [vmem:[%s11479_s4 + $0x100] sm:$0xff] }
 0x21d   :  { %841 = vmatpush1.bf16.msra.mxu0 %v7934_v23  ;;  %v1123_v23 = vld [vmem:[%s11479_s4 + $0x120] sm:$0xff] }
 0x21e   :  { %842 = vmatprep.subr.bf16.mxu0 %v7939_v24  ;;  %v1120_v24 = vld [vmem:[%s11479_s4 + $0x108] sm:$0xff] }
 0x221   :  { %843 = vmatpush1.bf16.msra.mxu0 %v7937_v25  ;;  %v7021_v25 = vcombine.high %v1119_v22, %v1123_v23 }
 0x222   :  { %844 = vmatprep.subr.bf16.mxu0 %v7942_v26  ;;  %v1124_v26 = vld [vmem:[%s11479_s4 + $0x128] sm:$0xff] }
 0x225   :  { %845 = vmatpush1.bf16.msra.mxu0 %v7940_v27  ;;  %v7020_v27 = vcombine.low %v1119_v22, %v1123_v23  ;;  %v1180_v22 = vld [vmem:[%s11479_s4 + $0x2e8] sm:$0xff] }
 0x226   :  { %846 = vmatprep.subr.bf16.mxu0 %v7945_v28  ;;  %v7022_v28 = vcombine.low %v1120_v24, %v1124_v26 }
 0x229   :  { %847 = vmatpush1.bf16.msra.mxu0 %v7943_v29  ;;  %v7023_v29 = vcombine.high %v1120_v24, %v1124_v26  ;;  %v1183_v26 = vld [vmem:[%s11479_s4 + $0x300] sm:$0xff] }
 0x22a   :  { %848 = vmatprep.subr.bf16.mxu0 %v7948_v30  ;;  %v1127_v30 = vld [vmem:[%s11479_s4 + $0x140] sm:$0xff] }
 0x22d   :  { %849 = vmatpush1.bf16.msra.mxu0 %v7946_v31  ;;  %v1131_v31 = vld [vmem:[%s11479_s4 + $0x160] sm:$0xff] }
 0x22e   :  { %850 = vmatprep.subr.bf16.mxu0 %v7951_v32  ;;  %v1128_v32 = vld [vmem:[%s11479_s4 + $0x148] sm:$0xff] }
 0x231   :  { %851 = vmatpush1.bf16.msra.mxu0 %v7949_v33  ;;  %v7029_v33 = vcombine.high %v1127_v30, %v1131_v31 }
 0x232   :  { %852 = vmatprep.subr.bf16.mxu0 %v7954_v34  ;;  %v7028_v34 = vcombine.low %v1127_v30, %v1131_v31  ;;  %v1188_v30 = vld [vmem:[%s11479_s4 + $0x328] sm:$0xff] }
 0x235   :  { %853 = vmatpush1.bf16.msra.mxu0 %v7952_v35  ;;  %v1132_v35 = vld [vmem:[%s11479_s4 + $0x168] sm:$0xff] }
 0x236   :  { %854 = vmatprep.subr.bf16.mxu0 %v7957_v36  ;;  %v7030_v36 = vcombine.low %v1128_v32, %v1132_v35 }
 0x239   :  { %855 = vmatpush1.bf16.msra.mxu0 %v7955_v37  ;;  %v7031_v37 = vcombine.high %v1128_v32, %v1132_v35  ;;  %v1195_v35 = vld [vmem:[%s11479_s4 + $0x360] sm:$0xff] }
 0x23a   :  { %856 = vmatprep.subr.bf16.mxu0 %v7960_v38  ;;  %v1135_v38 = vld [vmem:[%s11479_s4 + $0x180] sm:$0xff] }
 0x23d   :  { %857 = vmatpush1.bf16.msra.mxu0 %v7958_v39  ;;  %v1139_v39 = vld [vmem:[%s11479_s4 + $0x1a0] sm:$0xff] }
 0x23e   :  { %858 = vmatprep.subr.bf16.mxu0 %v7963_v40  ;;  %v1136_v40 = vld [vmem:[%s11479_s4 + $0x188] sm:$0xff] }
 0x241   :  { %859 = vmatpush1.bf16.msra.mxu0 %v7961_v41  ;;  %v7037_v41 = vcombine.high %v1135_v38, %v1139_v39 }
 0x242   :  { %860 = vmatprep.subr.bf16.mxu0 %v7966_v42  ;;  %v1140_v42 = vld [vmem:[%s11479_s4 + $0x1a8] sm:$0xff] }
 0x245   :  { %861 = vmatpush1.bf16.msra.mxu0 %v7964_v43  ;;  %v7036_v43 = vcombine.low %v1135_v38, %v1139_v39  ;;  %v1196_v38 = vld [vmem:[%s11479_s4 + $0x368] sm:$0xff] }
 0x246   :  { %862 = vmatprep.subr.bf16.mxu0 %v7969_v44  ;;  %v7038_v44 = vcombine.low %v1136_v40, %v1140_v42 }
 0x249   :  { %863 = vmatpush1.bf16.msra.mxu0 %v7967_v45  ;;  %v7039_v45 = vcombine.high %v1136_v40, %v1140_v42  ;;  %v1199_v42 = vld [vmem:[%s11479_s4 + $0x380] sm:$0xff] }
 0x24a   :  { %864 = vmatprep.subr.bf16.mxu0 %v7972_v46  ;;  %v1143_v46 = vld [vmem:[%s11479_s4 + $0x1c0] sm:$0xff] }
 0x24d   :  { %865 = vmatpush1.bf16.msra.mxu0 %v7970_v47  ;;  %v1147_v47 = vld [vmem:[%s11479_s4 + $0x1e0] sm:$0xff] }
 0x24e   :  { %866 = vmatprep.subr.bf16.mxu0 %v7975_v48  ;;  %v1144_v48 = vld [vmem:[%s11479_s4 + $0x1c8] sm:$0xff]  ;;  %v7044_v52 = vcombine.low %v1143_v46, %v1147_v47 }
 0x24f   :  { %v7046_v54 = vcombine.low %v1144_v48, %v1148_v50  ;;  %v7047_v55 = vcombine.high %v1144_v48, %v1148_v50  ;;  %v1207_v50 = vld [vmem:[%s11479_s4 + $0x3c0] sm:$0xff] }
 0x251   :  { %867 = vmatpush1.bf16.msra.mxu0 %v7973_v49  ;;  %v7045_v49 = vcombine.high %v1143_v46, %v1147_v47  ;;  %v1204_v46 = vld [vmem:[%s11479_s4 + $0x3a8] sm:$0xff] }
 0x252   :  { %2705 = vmatprep.subr.bf16.mxu0 %v6991_v61  ;;  %v7053_v61 = vcombine.high %v1151_v56, %v1155_v57  ;;  %v1212_v57 = vld [vmem:[%s11479_s4 + $0x3e8] sm:$0xff] }
 0x254   :  { %869 = vmatmul.mubr.bf16.vlgmr.msra.gmra.mrb[8].mxu0 %v8911_v19  ;;  %v7012_v19 = vcombine.low %v1111_v7, %v1115_v10  ;;  %v1172_v7 = vld [vmem:[%s11479_s4 + $0x2a8] sm:$0xff]  ;;  %v7068_v10 = vcombine.low %v1167_v12, %v1171_v13 }
 0x255   :  { %2706 = vmatpush1.bf16.msra.mxu0 %v6990_v58  ;;  %v1152_v58 = vld [vmem:[%s11479_s4 + $0x208] sm:$0xff] }
 0x256   :  { %2707 = vmatprep.subr.bf16.mxu0 %v6999_v5  ;;  %2630 = vmatpush1.bf16.msra.mxu1 %v7012_v19  ;;  %v7054_v0 = vcombine.low %v1152_v58, %v1156_v62  ;;  %v7055_v1 = vcombine.high %v1152_v58, %v1156_v62  ;;  %v7061_v5 = vcombine.high %v1159_v2, %v1163_v3  ;;  %v1179_v19 = vld [vmem:[%s11479_s4 + $0x2e0] sm:$0xff] }
 0x257   :  { %2631 = vmatprep.subr.bf16.mxu1 %v7021_v25  ;;  %v7076_v23 = vcombine.low %v1175_v18, %v1179_v19 }
 0x259   :  { %2708 = vmatpush1.bf16.msra.mxu0 %v6998_v4  ;;  %v1160_v4 = vld [vmem:[%s11479_s4 + $0x248] sm:$0xff] }
 0x25a   :  { %2709 = vmatprep.subr.bf16.mxu0 %v7007_v15  ;;  %2632 = vmatpush1.bf16.msra.mxu1 %v7020_v27  ;;  %v7062_v9 = vcombine.low %v1160_v4, %v1164_v6  ;;  %v7063_v11 = vcombine.high %v1160_v4, %v1164_v6  ;;  %v7069_v15 = vcombine.high %v1167_v12, %v1171_v13  ;;  %v1187_v27 = vld [vmem:[%s11479_s4 + $0x320] sm:$0xff]  ;;  %v9224_v6 = vld [vmem:[%s11479_s4 + $0x428] sm:$0xff] }
 0x25b   :  { %2633 = vmatprep.subr.bf16.mxu1 %v7029_v33  ;;  %v7084_v31 = vcombine.low %v1183_v26, %v1187_v27 }
 0x25d   :  { %2710 = vmatpush1.bf16.msra.mxu0 %v7006_v14  ;;  %v1168_v14 = vld [vmem:[%s11479_s4 + $0x288] sm:$0xff] }
 0x25e   :  { %2711 = vmatprep.subr.bf16.mxu0 %v7015_v21  ;;  %2634 = vmatpush1.bf16.msra.mxu1 %v7028_v34  ;;  %v7070_v16 = vcombine.low %v1168_v14, %v1172_v7  ;;  %v7071_v17 = vcombine.high %v1168_v14, %v1172_v7  ;;  %v7077_v21 = vcombine.high %v1175_v18, %v1179_v19  ;;  %v1191_v34 = vld [vmem:[%s11479_s4 + $0x340] sm:$0xff] }
 0x25f   :  { %2635 = vmatprep.subr.bf16.mxu1 %v7037_v41  ;;  %v7092_v39 = vcombine.low %v1191_v34, %v1195_v35 }
 0x261   :  { %2712 = vmatpush1.bf16.msra.mxu0 %v7014_v20  ;;  %v1176_v20 = vld [vmem:[%s11479_s4 + $0x2c8] sm:$0xff] }
 0x262   :  { %2713 = vmatprep.subr.bf16.mxu0 %v7023_v29  ;;  %2636 = vmatpush1.bf16.msra.mxu1 %v7036_v43  ;;  %v7078_v24 = vcombine.low %v1176_v20, %v1180_v22  ;;  %v7079_v25 = vcombine.high %v1176_v20, %v1180_v22  ;;  %v7085_v29 = vcombine.high %v1183_v26, %v1187_v27  ;;  %v1203_v43 = vld [vmem:[%s11479_s4 + $0x3a0] sm:$0xff] }
 0x263   :  { %2637 = vmatprep.subr.bf16.mxu1 %v7045_v49  ;;  %v7100_v47 = vcombine.low %v1199_v42, %v1203_v43 }
 0x265   :  { %2714 = vmatpush1.bf16.msra.mxu0 %v7022_v28  ;;  %v1184_v28 = vld [vmem:[%s11479_s4 + $0x308] sm:$0xff] }
 0x266   :  { %2715 = vmatprep.subr.bf16.mxu0 %v7031_v37  ;;  %2638 = vmatpush1.bf16.msra.mxu1 %v7044_v52  ;;  %v7086_v32 = vcombine.low %v1184_v28, %v1188_v30  ;;  %v7087_v33 = vcombine.high %v1184_v28, %v1188_v30  ;;  %v7093_v37 = vcombine.high %v1191_v34, %v1195_v35  ;;  %v1211_v52 = vld [vmem:[%s11479_s4 + $0x3e0] sm:$0xff] }
 0x267   :  { %2639 = vmatprep.subr.bf16.mxu1 %v7053_v61  ;;  %v7109_v56 = vcombine.high %v1207_v50, %v1211_v52 }
 0x269   :  { %2716 = vmatpush1.bf16.msra.mxu0 %v7030_v36  ;;  %v1192_v36 = vld [vmem:[%s11479_s4 + $0x348] sm:$0xff] }
 0x26a   :  { %2717 = vmatprep.subr.bf16.mxu0 %v7039_v45  ;;  %2640 = vmatpush1.bf16.msra.mxu1 %v7052_v63  ;;  %v7094_v40 = vcombine.low %v1192_v36, %v1196_v38  ;;  %v7095_v41 = vcombine.high %v1192_v36, %v1196_v38  ;;  %v7101_v45 = vcombine.high %v1199_v42, %v1203_v43  ;;  %v9202_v63 = vld [vmem:[%s11479_s4 + $0x400] sm:$0xff] }
 0x26b   :  { %2641 = vmatprep.subr.bf16.mxu1 %v7061_v5 }
 0x26d   :  { %2718 = vmatpush1.bf16.msra.mxu0 %v7038_v44  ;;  %v1200_v44 = vld [vmem:[%s11479_s4 + $0x388] sm:$0xff] }
 0x26e   :  { %2719 = vmatprep.subr.bf16.mxu0 %v7047_v55  ;;  %2642 = vmatpush1.bf16.msra.mxu1 %v7060_v8  ;;  %v7102_v48 = vcombine.low %v1200_v44, %v1204_v46  ;;  %v7103_v49 = vcombine.high %v1200_v44, %v1204_v46  ;;  %v7108_v55 = vcombine.low %v1207_v50, %v1211_v52 }
 0x26f   :  { %2643 = vmatprep.subr.bf16.mxu1 %v7069_v15 }
 0x271   :  { %2720 = vmatpush1.bf16.msra.mxu0 %v7046_v54  ;;  %v1208_v54 = vld [vmem:[%s11479_s4 + $0x3c8] sm:$0xff] }
 0x272   :  { %2721 = vmatprep.subr.bf16.mxu0 %v7055_v1  ;;  %2644 = vmatpush1.bf16.msra.mxu1 %v7068_v10  ;;  %v7111_v58 = vcombine.high %v1208_v54, %v1212_v57  ;;  %v7110_v61 = vcombine.low %v1208_v54, %v1212_v57  ;;  %v9212_v1 = vld [vmem:[%s11479_s4 + $0x408] sm:$0xff] }
 0x273   :  { %2645 = vmatprep.subr.bf16.mxu1 %v7077_v21  ;;  %v7118_v13 = vcombine.low %v9212_v1, %v9224_v6  ;;  %v7119_v10 = vcombine.high %v9212_v1, %v9224_v6  ;;  %v1244_v1 = vld [vmem:[%s11479_s4 + $0x4e8] sm:$0xff] }
 0x275   :  { %2722 = vmatpush1.bf16.msra.mxu0 %v7054_v0  ;;  %v9207_v0 = vld [vmem:[%s11479_s4 + $0x420] sm:$0xff] }
 0x276   :  { %2723 = vmatprep.subr.bf16.mxu0 %v7063_v11  ;;  %2646 = vmatpush1.bf16.msra.mxu1 %v7076_v23  ;;  %v7117_v5 = vcombine.high %v9202_v63, %v9207_v0  ;;  %v7116_v12 = vcombine.low %v9202_v63, %v9207_v0  ;;  %v1243_v63 = vld [vmem:[%s11479_s4 + $0x4e0] sm:$0xff]  ;;  %v1240_v0 = vld [vmem:[%s11479_s4 + $0x4c8] sm:$0xff] }
 0x277   :  { %2647 = vmatprep.subr.bf16.mxu1 %v7085_v29 }
 0x279   :  { %2724 = vmatpush1.bf16.msra.mxu0 %v7062_v9 }
 0x27a   :  { %2725 = vmatprep.subr.bf16.mxu0 %v7071_v17  ;;  %2648 = vmatpush1.bf16.msra.mxu1 %v7084_v31 }
 0x27b   :  { %2649 = vmatprep.subr.bf16.mxu1 %v7093_v37 }
 0x27d   :  { %2726 = vmatpush1.bf16.msra.mxu0 %v7070_v16 }
 0x27e   :  { %2727 = vmatprep.subr.bf16.mxu0 %v7079_v25  ;;  %2650 = vmatpush1.bf16.msra.mxu1 %v7092_v39 }
 0x27f   :  { %2651 = vmatprep.subr.bf16.mxu1 %v7101_v45 }
 0x281   :  { %2728 = vmatpush1.bf16.msra.mxu0 %v7078_v24 }
 0x282   :  { %2729 = vmatprep.subr.bf16.mxu0 %v7087_v33  ;;  %2652 = vmatpush1.bf16.msra.mxu1 %v7100_v47 }
 0x283   :  { %2653 = vmatprep.subr.bf16.mxu1 %v7109_v56 }
 0x285   :  { %2730 = vmatpush1.bf16.msra.mxu0 %v7086_v32 }
 0x286   :  { %2731 = vmatprep.subr.bf16.mxu0 %v7095_v41  ;;  %2654 = vmatpush1.bf16.msra.mxu1 %v7108_v55 }
 0x287   :  { %2664 = vmatprep.subr.bf16.mxu1 %v7117_v5 }
 0x289   :  { %2732 = vmatpush1.bf16.msra.mxu0 %v7094_v40 }
 0x28a   :  { %2733 = vmatprep.subr.bf16.mxu0 %v7103_v49 }
 0x28d   :  { %2734 = vmatpush1.bf16.msra.mxu0 %v7102_v48 }
 0x28e   :  { %2735 = vmatprep.subr.bf16.mxu0 %v7111_v58 }
 0x291   :  { %2736 = vmatpush1.bf16.msra.mxu0 %v7110_v61 }
 0x292   :  { %2746 = vmatprep.subr.bf16.mxu0 %v7119_v10 }
 0x2e7   :  { %v9197_v62 = vpop.f32.mrb[4].mxu0 }
 0x2e8   :  { %v881_v2 = vrot.slane %v9197_v62, 4  ;;  %v909_v3 = vmul.f32 %v9197_v62, %v9197_v62  ;;  %v9217_v4 = vpop.f32.mrb[5].mxu0 }
 0x2e9   :  { %v887_v8 = vrot.slane %v9217_v4, 4  ;;  %v910_v9 = vmul.f32 %v9217_v4, %v9217_v4  ;;  %v833_v11 = vpop.f32.mrb[6].mxu0 }
 0x2ea   :  { %v882_v14 = vadd.f32 %v881_v2, %v9197_v62  ;;  %v913_v15 = vrot.slane %v909_v3, 4  ;;  %v834_v7 = vpop.f32.mrb[7].mxu0 }
 0x2eb   :  { %v888_v16 = vadd.f32 %v887_v8, %v9217_v4  ;;  %v919_v17 = vrot.slane %v910_v9, 4 }
 0x2ec   :  { %v883_v18 = vrot.slane %v882_v14, 2  ;;  %v914_v19 = vadd.f32 %v913_v15, %v909_v3 }
 0x2ed   :  { %v889_v20 = vrot.slane %v888_v16, 2  ;;  %v920_v21 = vadd.f32 %v919_v17, %v910_v9 }
 0x2ee   :  { %v884_v22 = vadd.f32 %v883_v18, %v882_v14  ;;  %v915_v23 = vrot.slane %v914_v19, 2 }
 0x2ef   :  { %v890_v24 = vadd.f32 %v889_v20, %v888_v16  ;;  %v921_v25 = vrot.slane %v920_v21, 2 }
 0x2f0   :  { %v885_v26 = vrot.slane %v884_v22, 1  ;;  %v916_v27 = vadd.f32 %v915_v23, %v914_v19 }
 0x2f1   :  { %v891_v28 = vrot.slane %v890_v24, 1  ;;  %v922_v29 = vadd.f32 %v921_v25, %v920_v21 }
 0x2f2   :  { %v886_v30 = vadd.f32 %v885_v26, %v884_v22  ;;  %v917_v31 = vrot.slane %v916_v27, 1 }
 0x2f3   :  { %v892_v32 = vadd.f32 %v891_v28, %v890_v24  ;;  %v923_v33 = vrot.slane %v922_v29, 1 }
 0x2f4   :  { %v9237_v34 = vmul.f32 0.125, %v886_v30  ;;  %v918_v35 = vadd.f32 %v917_v31, %v916_v27 }
 0x2f5   :  { %v9239_v36 = vmul.f32 0.125, %v892_v32  ;;  %v924_v37 = vadd.f32 %v923_v33, %v922_v29 }
 0x2f6   :  { %v937_v38 = vmul.f32 0.125, %v918_v35  ;;  %v941_v39 = vmul.f32 %v9237_v34, %v9237_v34 }
 0x2f7   :  { %v938_v40 = vmul.f32 0.125, %v924_v37  ;;  %v942_v41 = vmul.f32 %v9239_v36, %v9239_v36 }
 0x2f8   :  { %v945_v42 = vsub.f32 %v937_v38, %v941_v39 }
 0x2f9   :  { %v946_v43 = vsub.f32 %v938_v40, %v942_v41 }
 0x2fa   :  { %v949_v44 = vadd.f32 1e-05, %v945_v42 }
 0x2fb   :  { %v950_v45 = vadd.f32 1e-05, %v946_v43 }
 0x2fc   :  { %8620 = vrsqrt.f32 %v949_v44 }
 0x2fd   :  { %8622 = vrsqrt.f32 %v950_v45  ;;  %v6986_v45 = vld [vmem:[%s11478_s6 + $0x2] ss:$8 sm:$0xf] }
 0x306   :  { %v8621_v46 = vpop.eup %8620 }
 0x307   :  { %v8623_v47 = vpop.eup %8622 }
 0x308   :  { %v961_v48 = vcombine.low %v8621_v46, %v8623_v47  ;;  %v9258_v47 = vsub.s32 2, %v8883_v51 }
 0x30a   :  { %v969_v42 = vrot.slane %v961_v48, %v8886_v53 }
 0x327   :  { %v9245_v49 = vpop.f32.mrb[8].mxu0 }
 0x328   :  { %v893_v50 = vrot.slane %v9245_v49, 4  ;;  %v911_v52 = vmul.f32 %v9245_v49, %v9245_v49  ;;  %v872_v54 = vpop.f32.mrb[9].mxu0 }
 0x329   :  { %v899_v55 = vrot.slane %v872_v54, 4  ;;  %v912_v56 = vmul.f32 %v872_v54, %v872_v54  ;;  %v874_v57 = vpop.f32.mrb[10].mxu0 }
 0x32a   :  { %v894_v58 = vadd.f32 %v893_v50, %v9245_v49  ;;  %v925_v61 = vrot.slane %v911_v52, 4  ;;  %v875_v2 = vpop.f32.mrb[11].mxu0  ;;  %v9261_v50 = vsub.s32 3, %v8883_v51 }
 0x32b   :  { %v900_v3 = vadd.f32 %v899_v55, %v872_v54  ;;  %v931_v5 = vrot.slane %v912_v56, 4 }
 0x32c   :  { %v895_v8 = vrot.slane %v894_v58, 2  ;;  %v926_v9 = vadd.f32 %v925_v61, %v911_v52 }
 0x32d   :  { %v901_v11 = vrot.slane %v900_v3, 2  ;;  %v932_v14 = vadd.f32 %v931_v5, %v912_v56 }
 0x32e   :  { %v896_v15 = vadd.f32 %v895_v8, %v894_v58  ;;  %v927_v7 = vrot.slane %v926_v9, 2 }
 0x32f   :  { %v902_v10 = vadd.f32 %v901_v11, %v900_v3  ;;  %v933_v16 = vrot.slane %v932_v14, 2 }
 0x330   :  { %v897_v17 = vrot.slane %v896_v15, 1  ;;  %v928_v18 = vadd.f32 %v927_v7, %v926_v9 }
 0x331   :  { %v903_v19 = vrot.slane %v902_v10, 1  ;;  %v934_v20 = vadd.f32 %v933_v16, %v932_v14 }
 0x332   :  { %v898_v21 = vadd.f32 %v897_v17, %v896_v15  ;;  %v929_v22 = vrot.slane %v928_v18, 1 }
 0x333   :  { %v904_v23 = vadd.f32 %v903_v19, %v902_v10  ;;  %v935_v24 = vrot.slane %v934_v20, 1 }
 0x334   :  { %v907_v25 = vmul.f32 0.125, %v898_v21  ;;  %v930_v26 = vadd.f32 %v929_v22, %v928_v18 }
 0x335   :  { %v908_v27 = vmul.f32 0.125, %v904_v23  ;;  %v936_v28 = vadd.f32 %v935_v24, %v934_v20 }
 0x336   :  { %v939_v29 = vmul.f32 0.125, %v930_v26  ;;  %v943_v30 = vmul.f32 %v907_v25, %v907_v25 }
 0x337   :  { %v940_v31 = vmul.f32 0.125, %v936_v28  ;;  %v944_v32 = vmul.f32 %v908_v27, %v908_v27  ;;  %v1227_v28 = vld [vmem:[%s11479_s4 + $0x460] sm:$0xff] }
 0x338   :  { %v947_v33 = vsub.f32 %v939_v29, %v943_v30  ;;  %v1224_v29 = vld [vmem:[%s11479_s4 + $0x448] sm:$0xff] }
 0x339   :  { %v948_v35 = vsub.f32 %v940_v31, %v944_v32  ;;  %v1228_v30 = vld [vmem:[%s11479_s4 + $0x468] sm:$0xff] }
 0x33a   :  { %v951_v37 = vadd.f32 1e-05, %v947_v33 }
 0x33b   :  { %v952_v38 = vadd.f32 1e-05, %v948_v35  ;;  %v1231_v35 = vld [vmem:[%s11479_s4 + $0x480] sm:$0xff] }
 0x33c   :  { %8624 = vrsqrt.f32 %v951_v37 }
 0x33d   :  { %8626 = vrsqrt.f32 %v952_v38  ;;  %v7127_v38 = vcombine.high %v1224_v29, %v1228_v30 }
 0x346   :  { %v8625_v39 = vpop.eup %8624 }
 0x347   :  { %v8627_v40 = vpop.eup %8626 }
 0x348   :  { %v962_v41 = vcombine.low %v8625_v39, %v8627_v40  ;;  %v1235_v39 = vld [vmem:[%s11479_s4 + $0x4a0] sm:$0xff]  ;;  %v1232_v40 = vld [vmem:[%s11479_s4 + $0x488] sm:$0xff] }
 0x349   :  { %v7132_v6 = vcombine.low %v1231_v35, %v1235_v39 }
 0x34a   :  { %v976_v43 = vrot.slane %v962_v41, %v8886_v53  ;;  %v1236_v41 = vld [vmem:[%s11479_s4 + $0x4a8] sm:$0xff] }
 0x34c   :  { %v977_v44 = vcombine.low %v969_v42, %v976_v43 }
 0x34e   :  { %v984_v46 = vrot.slane %v977_v44, %v8886_v53  ;;  %v7126_v44 = vcombine.low %v1224_v29, %v1228_v30  ;;  %v1283_v29 = vld [vmem:[%s11479_s4 + $0x620] sm:$0xff]  ;;  %v1280_v30 = vld [vmem:[%s11479_s4 + $0x608] sm:$0xff] }
 0x350   :  { %v986_v52 = vmul.f32 %v6986_v45, %v984_v46  ;;  %v7133_v45 = vcombine.high %v1231_v35, %v1235_v39  ;;  %v7135_v46 = vcombine.high %v1232_v40, %v1236_v41 }
 0x352   :  { %v991_v55 = vrot.slane %v986_v52, %v8894_v59  ;;  %v995_v48 = vrot.slane %v986_v52, %v8897_v60  ;;  %v999_v56 = vrot.slane %v986_v52, %v9258_v47  ;;  %v1003_v57 = vrot.slane %v986_v52, %v9261_v50  ;;  %v1239_v52 = vld [vmem:[%s11479_s4 + $0x4c0] sm:$0xff] }
 0x354   :  { %v1008_v58 = vmul.f32 %v991_v55, %v9237_v34  ;;  %v1009_v61 = vmul.f32 %v995_v48, %v9239_v36  ;;  %v1010_v2 = vmul.f32 %v999_v56, %v907_v25  ;;  %v1011_v3 = vmul.f32 %v1003_v57, %v908_v27  ;;  %v6987_v34 = vld [vmem:[%s11478_s6 + $0x3] ss:$8 sm:$0xf] }
 0x355   :  { %v1045_v5 = vmul.f32 %v1003_v57, %v872_v54  ;;  %v1043_v8 = vmul.f32 %v995_v48, %v9217_v4  ;;  %v1042_v9 = vmul.f32 %v991_v55, %v9197_v62  ;;  %v1044_v11 = vmul.f32 %v999_v56, %v9245_v49  ;;  %v1223_v25 = vld [vmem:[%s11479_s4 + $0x440] sm:$0xff]  ;;  %v1248_v57 = vld [vmem:[%s11479_s4 + $0x508] sm:$0xff] }
 0x356   :  { %v1016_v14 = vcombine.low %v1008_v58, %v1009_v61  ;;  %v1017_v15 = vcombine.low %v1010_v2, %v1011_v3  ;;  %v7125_v37 = vcombine.high %v1223_v25, %v1227_v28  ;;  %v7124_v43 = vcombine.low %v1223_v25, %v1227_v28  ;;  %v1247_v48 = vld [vmem:[%s11479_s4 + $0x500] sm:$0xff]  ;;  %v1252_v58 = vld [vmem:[%s11479_s4 + $0x528] sm:$0xff] }
 0x357   :  { %v7143_v55 = vcombine.high %v1240_v0, %v1244_v1  ;;  %v1251_v56 = vld [vmem:[%s11479_s4 + $0x520] sm:$0xff]  ;;  %v7140_v61 = vcombine.low %v1239_v52, %v1243_v63  ;;  %v7142_v2 = vcombine.low %v1240_v0, %v1244_v1 }
 0x358   :  { %v1024_v7 = vrot.slane %v1016_v14, %v8886_v53  ;;  %v1031_v10 = vrot.slane %v1017_v15, %v8886_v53  ;;  %v7149_v3 = vcombine.high %v1247_v48, %v1251_v56  ;;  %v1260_v14 = vld [vmem:[%s11479_s4 + $0x568] sm:$0xff]  ;;  %v7148_v15 = vcombine.low %v1247_v48, %v1251_v56  ;;  %v1279_v28 = vld [vmem:[%s11479_s4 + $0x600] sm:$0xff] }
 0x359   :  { %v1295_v0 = vld [vmem:[%s11479_s4 + $0x680] sm:$0xff] }
 0x35a   :  { %v1032_v16 = vcombine.low %v1024_v7, %v1031_v10  ;;  %v7150_v7 = vcombine.low %v1248_v57, %v1252_v58  ;;  %v1299_v1 = vld [vmem:[%s11479_s4 + $0x6a0] sm:$0xff] }
 0x35b   :  { %v7197_v48 = vcombine.high %v1295_v0, %v1299_v1 }
 0x35c   :  { %v1039_v36 = vrot.slane %v1032_v16, %v8886_v53 }
 0x35e   :  { %v1041_v54 = vsub.f32 %v6987_v34, %v1039_v36  ;;  %v1263_v34 = vld [vmem:[%s11479_s4 + $0x580] sm:$0xff] }
 0x35f   :  { %v1267_v36 = vld [vmem:[%s11479_s4 + $0x5a0] sm:$0xff] }
 0x360   :  { %v1062_v4 = vrot.slane %v1041_v54, %v9261_v50  ;;  %v1054_v62 = vrot.slane %v1041_v54, %v8897_v60  ;;  %v1050_v49 = vrot.slane %v1041_v54, %v8894_v59  ;;  %v1058_v17 = vrot.slane %v1041_v54, %v9258_v47  ;;  %v1264_v54 = vld [vmem:[%s11479_s4 + $0x588] sm:$0xff] }
 0x362   :  { %v1070_v18 = vadd.f32 %v1062_v4, %v1045_v5  ;;  %v1068_v19 = vadd.f32 %v1054_v62, %v1043_v8  ;;  %v1067_v20 = vadd.f32 %v1050_v49, %v1042_v9  ;;  %v9282_v21 = vadd.f32 %v1058_v17, %v1044_v11  ;;  %v1255_v8 = vld [vmem:[%s11479_s4 + $0x540] sm:$0xff]  ;;  %v1256_v11 = vld [vmem:[%s11479_s4 + $0x548] sm:$0xff] }
 0x363   :  { %v7151_v5 = vcombine.high %v1248_v57, %v1252_v58  ;;  %v1259_v9 = vld [vmem:[%s11479_s4 + $0x560] sm:$0xff]  ;;  %v7159_v16 = vcombine.high %v1256_v11, %v1260_v14  ;;  %v1268_v4 = vld [vmem:[%s11479_s4 + $0x5a8] sm:$0xff]  ;;  %v7158_v49 = vcombine.low %v1256_v11, %v1260_v14  ;;  %v7165_v17 = vcombine.high %v1263_v34, %v1267_v36 }
 0x364   :  { %vm1072_vm4 = vcmp.gt.f32.partialorder %v1068_v19, 0.0  ;;  %v1076_v22 = vmul.f32 0.2, %v1068_v19  ;;  %vm1071_vm5 = vcmp.gt.f32.partialorder %v1067_v20, 0.0  ;;  %v1075_v23 = vmul.f32 0.2, %v1067_v20 }
 0x365   :  { %vm1074_vm6 = vcmp.gt.f32.partialorder %v1070_v18, 0.0  ;;  %v1078_v24 = vmul.f32 0.2, %v1070_v18  ;;  %v7157_v10 = vcombine.high %v1255_v8, %v1259_v9  ;;  %v7156_v62 = vcombine.low %v1255_v8, %v1259_v9  ;;  %v1303_v57 = vld [vmem:[%s11479_s4 + $0x6c0] sm:$0xff] }
 0x366   :  { %v1080_v26 = vsel %vm1072_vm4, %v1068_v19, %v1076_v22  ;;  %v1079_v27 = vsel %vm1071_vm5, %v1067_v20, %v1075_v23  ;;  %v1271_v19 = vld [vmem:[%s11479_s4 + $0x5c0] sm:$0xff]  ;;  %v1272_v22 = vld [vmem:[%s11479_s4 + $0x5c8] sm:$0xff]  ;;  %v7166_v25 = vcombine.low %v1264_v54, %v1268_v4  ;;  %vm1073_vm7 = vcmp.gt.f32.partialorder %v9282_v21, 0.0 }
 0x367   :  { %v9296_v31 = vpack.c.bf16 %v1080_v26, %v1080_v26  ;;  %v9298_v32 = vpack.c.bf16 %v1079_v27, %v1079_v27  ;;  %v1082_v33 = vsel %vm1074_vm6, %v1070_v18, %v1078_v24  ;;  %v7167_v18 = vcombine.high %v1264_v54, %v1268_v4  ;;  %v1275_v20 = vld [vmem:[%s11479_s4 + $0x5e0] sm:$0xff]  ;;  %v1276_v23 = vld [vmem:[%s11479_s4 + $0x5e8] sm:$0xff] }
 0x368   :  { %v9316_v42 = vpack.c.bf16 %v1082_v33, %v1082_v33  ;;  %v7164_v24 = vcombine.low %v1263_v34, %v1267_v36  ;;  %v7173_v26 = vcombine.high %v1271_v19, %v1275_v20  ;;  %v7175_v27 = vcombine.high %v1272_v22, %v1276_v23  ;;  %v1284_v33 = vld [vmem:[%s11479_s4 + $0x628] sm:$0xff]  ;;  %v1307_v58 = vld [vmem:[%s11479_s4 + $0x6e0] sm:$0xff] }
 0x369   :  { %2655 = vmatprep.mubr.bf16.mxu1 %v9296_v31  ;;  %2737 = vmatprep.mubr.bf16.mxu0 %v9296_v31  ;;  %v7172_v35 = vcombine.low %v1271_v19, %v1275_v20  ;;  %v7183_v39 = vcombine.high %v1280_v30, %v1284_v33  ;;  %v7205_v8 = vcombine.high %v1303_v57, %v1307_v58  ;;  %v1311_v11 = vld [vmem:[%s11479_s4 + $0x700] sm:$0xff] }
 0x36a   :  { %2656 = vmatmul.mubr.bf16.vlgmr.msra.gmra.mrb[4].mxu1 %v9298_v32  ;;  %2738 = vmatmul.mubr.bf16.vlgmr.msra.gmra.mrb[12].mxu0 %v9298_v32  ;;  %v1315_v14 = vld [vmem:[%s11479_s4 + $0x720] sm:$0xff] }
 0x36b   :  { %2665 = vmatpush1.bf16.msra.mxu1 %v7116_v12  ;;  %2747 = vmatpush1.bf16.msra.mxu0 %v7118_v13  ;;  %v7134_v12 = vcombine.low %v1232_v40, %v1236_v41  ;;  %v7141_v13 = vcombine.high %v1239_v52, %v1243_v63  ;;  %v1287_v40 = vld [vmem:[%s11479_s4 + $0x640] sm:$0xff]  ;;  %v7213_v34 = vcombine.high %v1311_v11, %v1315_v14 }
 0x36c   :  { %2696 = vmatprep.mubr.bf16.mxu1 %v9316_v42  ;;  %2778 = vmatprep.mubr.bf16.mxu0 %v9316_v42  ;;  %v1291_v41 = vld [vmem:[%s11479_s4 + $0x660] sm:$0xff] }
 0x36d   :  { %2666 = vmatprep.subr.bf16.mxu1 %v7125_v37  ;;  %2748 = vmatprep.subr.bf16.mxu0 %v7127_v38  ;;  %v7174_v37 = vcombine.low %v1272_v22, %v1276_v23  ;;  %v7181_v38 = vcombine.high %v1279_v28, %v1283_v29  ;;  %v7189_v52 = vcombine.high %v1287_v40, %v1291_v41  ;;  %v1319_v54 = vld [vmem:[%s11479_s4 + $0x740] sm:$0xff] }
 0x36e   :  { %v1323_v4 = vld [vmem:[%s11479_s4 + $0x760] sm:$0xff] }
 0x36f   :  { %2667 = vmatpush1.bf16.msra.mxu1 %v7124_v43  ;;  %2749 = vmatpush1.bf16.msra.mxu0 %v7126_v44  ;;  %v1288_v43 = vld [vmem:[%s11479_s4 + $0x648] sm:$0xff]  ;;  %v7221_v19 = vcombine.high %v1319_v54, %v1323_v4  ;;  %v1327_v22 = vld [vmem:[%s11479_s4 + $0x780] sm:$0xff] }
 0x370   :  { %2668 = vmatprep.subr.bf16.mxu1 %v7133_v45  ;;  %2750 = vmatprep.subr.bf16.mxu0 %v7135_v46  ;;  %v1292_v44 = vld [vmem:[%s11479_s4 + $0x668] sm:$0xff]  ;;  %v7180_v45 = vcombine.low %v1279_v28, %v1283_v29  ;;  %v7182_v46 = vcombine.low %v1280_v30, %v1284_v33  ;;  %v1331_v23 = vld [vmem:[%s11479_s4 + $0x7a0] sm:$0xff] }
 0x371   :  { %v7191_v63 = vcombine.high %v1288_v43, %v1292_v44  ;;  %v7229_v28 = vcombine.high %v1327_v22, %v1331_v23  ;;  %v1335_v30 = vld [vmem:[%s11479_s4 + $0x7c0] sm:$0xff] }
 0x372   :  { %v1339_v33 = vld [vmem:[%s11479_s4 + $0x7e0] sm:$0xff] }
 0x373   :  { %2669 = vmatpush1.bf16.msra.mxu1 %v7132_v6  ;;  %2751 = vmatpush1.bf16.msra.mxu0 %v7134_v12  ;;  %v1296_v6 = vld [vmem:[%s11479_s4 + $0x688] sm:$0xff] }
 0x374   :  { %2670 = vmatprep.subr.bf16.mxu1 %v7141_v13  ;;  %2752 = vmatprep.subr.bf16.mxu0 %v7143_v55  ;;  %v1300_v12 = vld [vmem:[%s11479_s4 + $0x6a8] sm:$0xff]  ;;  %v7188_v13 = vcombine.low %v1287_v40, %v1291_v41  ;;  %v7190_v55 = vcombine.low %v1288_v43, %v1292_v44  ;;  %v7237_v40 = vcombine.high %v1335_v30, %v1339_v33  ;;  %v1089_v43 = vld [vmem:[%s11479_s4 + $0x10] sm:$0xff]  ;;  %v1077_v44 = vmul.f32 0.2, %v9282_v21 }
 0x375   :  { %v7199_v56 = vcombine.high %v1296_v6, %v1300_v12 }
 0x377   :  { %2671 = vmatpush1.bf16.msra.mxu1 %v7140_v61  ;;  %2753 = vmatpush1.bf16.msra.mxu0 %v7142_v2  ;;  %v1304_v61 = vld [vmem:[%s11479_s4 + $0x6c8] sm:$0xff] }
 0x378   :  { %2672 = vmatprep.subr.bf16.mxu1 %v7149_v3  ;;  %2754 = vmatprep.subr.bf16.mxu0 %v7151_v5  ;;  %v1308_v2 = vld [vmem:[%s11479_s4 + $0x6e8] sm:$0xff]  ;;  %v7196_v3 = vcombine.low %v1295_v0, %v1299_v1  ;;  %v7198_v5 = vcombine.low %v1296_v6, %v1300_v12  ;;  %v1081_v12 = vsel %vm1073_vm7, %v9282_v21, %v1077_v44 }
 0x379   :  { %v7207_v9 = vcombine.high %v1304_v61, %v1308_v2  ;;  %v9509_v21 = vpack.c.bf16 %v1081_v12, %v1081_v12 }
 0x37b   :  { %2673 = vmatpush1.bf16.msra.mxu1 %v7148_v15  ;;  %2755 = vmatpush1.bf16.msra.mxu0 %v7150_v7  ;;  %v1312_v15 = vld [vmem:[%s11479_s4 + $0x708] sm:$0xff] }
 0x37c   :  { %2674 = vmatprep.subr.bf16.mxu1 %v7157_v10  ;;  %2756 = vmatprep.subr.bf16.mxu0 %v7159_v16  ;;  %v1316_v7 = vld [vmem:[%s11479_s4 + $0x728] sm:$0xff]  ;;  %v7204_v10 = vcombine.low %v1303_v57, %v1307_v58  ;;  %v7206_v16 = vcombine.low %v1304_v61, %v1308_v2 }
 0x37d   :  { %v7215_v36 = vcombine.high %v1312_v15, %v1316_v7 }
 0x37f   :  { %2675 = vmatpush1.bf16.msra.mxu1 %v7156_v62  ;;  %2757 = vmatpush1.bf16.msra.mxu0 %v7158_v49  ;;  %v1320_v62 = vld [vmem:[%s11479_s4 + $0x748] sm:$0xff] }
 0x380   :  { %2676 = vmatprep.subr.bf16.mxu1 %v7165_v17  ;;  %2758 = vmatprep.subr.bf16.mxu0 %v7167_v18  ;;  %v1324_v49 = vld [vmem:[%s11479_s4 + $0x768] sm:$0xff]  ;;  %v7212_v17 = vcombine.low %v1311_v11, %v1315_v14  ;;  %v7214_v18 = vcombine.low %v1312_v15, %v1316_v7 }
 0x381   :  { %v7223_v20 = vcombine.high %v1320_v62, %v1324_v49 }
 0x383   :  { %2677 = vmatpush1.bf16.msra.mxu1 %v7164_v24  ;;  %2759 = vmatpush1.bf16.msra.mxu0 %v7166_v25  ;;  %v1328_v24 = vld [vmem:[%s11479_s4 + $0x788] sm:$0xff] }
 0x384   :  { %2678 = vmatprep.subr.bf16.mxu1 %v7173_v26  ;;  %2760 = vmatprep.subr.bf16.mxu0 %v7175_v27  ;;  %v1332_v25 = vld [vmem:[%s11479_s4 + $0x7a8] sm:$0xff]  ;;  %v7220_v26 = vcombine.low %v1319_v54, %v1323_v4  ;;  %v7222_v27 = vcombine.low %v1320_v62, %v1324_v49  ;;  %v1121_v49 = vld [vmem:[%s11479_s4 + $0x110] sm:$0xff] }
 0x385   :  { %v7231_v29 = vcombine.high %v1328_v24, %v1332_v25 }
 0x387   :  { %2679 = vmatpush1.bf16.msra.mxu1 %v7172_v35  ;;  %2761 = vmatpush1.bf16.msra.mxu0 %v7174_v37  ;;  %v1336_v35 = vld [vmem:[%s11479_s4 + $0x7c8] sm:$0xff] }
 0x388   :  { %2680 = vmatprep.subr.bf16.mxu1 %v7181_v38  ;;  %2762 = vmatprep.subr.bf16.mxu0 %v7183_v39  ;;  %v1340_v37 = vld [vmem:[%s11479_s4 + $0x7e8] sm:$0xff]  ;;  %v7228_v38 = vcombine.low %v1327_v22, %v1331_v23  ;;  %v7230_v39 = vcombine.low %v1328_v24, %v1332_v25  ;;  %v1129_v25 = vld [vmem:[%s11479_s4 + $0x150] sm:$0xff] }
 0x389   :  { %v7239_v41 = vcombine.high %v1336_v35, %v1340_v37  ;;  %v7238_v0 = vcombine.low %v1336_v35, %v1340_v37  ;;  %v1137_v37 = vld [vmem:[%s11479_s4 + $0x190] sm:$0xff] }
 0x38b   :  { %2681 = vmatpush1.bf16.msra.mxu1 %v7180_v45  ;;  %2763 = vmatpush1.bf16.msra.mxu0 %v7182_v46  ;;  %v1093_v45 = vld [vmem:[%s11479_s4 + $0x30] sm:$0xff]  ;;  %v1090_v46 = vld [vmem:[%s11479_s4 + $0x18] sm:$0xff] }
 0x38c   :  { %2682 = vmatprep.subr.bf16.mxu1 %v7189_v52  ;;  %2764 = vmatprep.subr.bf16.mxu0 %v7191_v63  ;;  %v1094_v52 = vld [vmem:[%s11479_s4 + $0x38] sm:$0xff]  ;;  %v7236_v63 = vcombine.low %v1335_v30, %v1339_v33  ;;  %v6993_v1 = vcombine.high %v1089_v43, %v1093_v45  ;;  %v6992_v57 = vcombine.low %v1089_v43, %v1093_v45 }
 0x38d   :  { %v6995_v6 = vcombine.high %v1090_v46, %v1094_v52  ;;  %v6994_v58 = vcombine.low %v1090_v46, %v1094_v52  ;;  %v1145_v46 = vld [vmem:[%s11479_s4 + $0x1d0] sm:$0xff] }
 0x38e   :  { %v1149_v52 = vld [vmem:[%s11479_s4 + $0x1f0] sm:$0xff] }
 0x38f   :  { %2683 = vmatpush1.bf16.msra.mxu1 %v7188_v13  ;;  %2765 = vmatpush1.bf16.msra.mxu0 %v7190_v55  ;;  %v1097_v13 = vld [vmem:[%s11479_s4 + $0x50] sm:$0xff]  ;;  %v7049_v12 = vcombine.high %v1145_v46, %v1149_v52 }
 0x390   :  { %2684 = vmatprep.subr.bf16.mxu1 %v7197_v48  ;;  %2766 = vmatprep.subr.bf16.mxu0 %v7199_v56  ;;  %v1101_v55 = vld [vmem:[%s11479_s4 + $0x70] sm:$0xff]  ;;  %v1098_v48 = vld [vmem:[%s11479_s4 + $0x58] sm:$0xff] }
 0x391   :  { %v1102_v56 = vld [vmem:[%s11479_s4 + $0x78] sm:$0xff]  ;;  %v7001_v61 = vcombine.high %v1097_v13, %v1101_v55  ;;  %v7000_v11 = vcombine.low %v1097_v13, %v1101_v55  ;;  %v1153_v55 = vld [vmem:[%s11479_s4 + $0x210] sm:$0xff] }
 0x392   :  { %v7003_v2 = vcombine.high %v1098_v48, %v1102_v56  ;;  %v7002_v14 = vcombine.low %v1098_v48, %v1102_v56  ;;  %v1157_v48 = vld [vmem:[%s11479_s4 + $0x230] sm:$0xff]  ;;  %v1154_v56 = vld [vmem:[%s11479_s4 + $0x218] sm:$0xff] }
 0x393   :  { %2685 = vmatpush1.bf16.msra.mxu1 %v7196_v3  ;;  %2767 = vmatpush1.bf16.msra.mxu0 %v7198_v5  ;;  %v1105_v3 = vld [vmem:[%s11479_s4 + $0x90] sm:$0xff] }
 0x394   :  { %2686 = vmatprep.subr.bf16.mxu1 %v7205_v8  ;;  %2768 = vmatprep.subr.bf16.mxu0 %v7207_v9  ;;  %v1109_v5 = vld [vmem:[%s11479_s4 + $0xb0] sm:$0xff]  ;;  %v1106_v8 = vld [vmem:[%s11479_s4 + $0x98] sm:$0xff] }
 0x395   :  { %v1110_v9 = vld [vmem:[%s11479_s4 + $0xb8] sm:$0xff]  ;;  %v7009_v15 = vcombine.high %v1105_v3, %v1109_v5 }
 0x396   :  { %v7011_v7 = vcombine.high %v1106_v8, %v1110_v9  ;;  %v7010_v54 = vcombine.low %v1106_v8, %v1110_v9  ;;  %v1165_v8 = vld [vmem:[%s11479_s4 + $0x270] sm:$0xff]  ;;  %v1162_v9 = vld [vmem:[%s11479_s4 + $0x258] sm:$0xff] }
 0x397   :  { %2687 = vmatpush1.bf16.msra.mxu1 %v7204_v10  ;;  %2769 = vmatpush1.bf16.msra.mxu0 %v7206_v16  ;;  %v1113_v10 = vld [vmem:[%s11479_s4 + $0xd0] sm:$0xff] }
 0x398   :  { %2688 = vmatprep.subr.bf16.mxu1 %v7213_v34  ;;  %2770 = vmatprep.subr.bf16.mxu0 %v7215_v36  ;;  %v1117_v16 = vld [vmem:[%s11479_s4 + $0xf0] sm:$0xff]  ;;  %v1114_v34 = vld [vmem:[%s11479_s4 + $0xd8] sm:$0xff]  ;;  %v7008_v36 = vcombine.low %v1105_v3, %v1109_v5 }
 0x399   :  { %v7017_v4 = vcombine.high %v1113_v10, %v1117_v16  ;;  %v1161_v5 = vld [vmem:[%s11479_s4 + $0x250] sm:$0xff] }
 0x39b   :  { %2689 = vmatpush1.bf16.msra.mxu1 %v7212_v17  ;;  %2771 = vmatpush1.bf16.msra.mxu0 %v7214_v18  ;;  %v1125_v17 = vld [vmem:[%s11479_s4 + $0x130] sm:$0xff]  ;;  %v1122_v18 = vld [vmem:[%s11479_s4 + $0x118] sm:$0xff] }
 0x39c   :  { %2690 = vmatprep.subr.bf16.mxu1 %v7221_v19  ;;  %2772 = vmatprep.subr.bf16.mxu0 %v7223_v20  ;;  %v1126_v19 = vld [vmem:[%s11479_s4 + $0x138] sm:$0xff]  ;;  %v7016_v20 = vcombine.low %v1113_v10, %v1117_v16  ;;  %v7025_v23 = vcombine.high %v1121_v49, %v1125_v17  ;;  %v1169_v16 = vld [vmem:[%s11479_s4 + $0x290] sm:$0xff] }
 0x39d   :  { %v7027_v24 = vcombine.high %v1122_v18, %v1126_v19  ;;  %v7026_v30 = vcombine.low %v1122_v18, %v1126_v19  ;;  %v1181_v18 = vld [vmem:[%s11479_s4 + $0x2f0] sm:$0xff]  ;;  %v1178_v19 = vld [vmem:[%s11479_s4 + $0x2d8] sm:$0xff] }
 0x39f   :  { %2691 = vmatpush1.bf16.msra.mxu1 %v7220_v26  ;;  %2773 = vmatpush1.bf16.msra.mxu0 %v7222_v27  ;;  %v1133_v26 = vld [vmem:[%s11479_s4 + $0x170] sm:$0xff]  ;;  %v1130_v27 = vld [vmem:[%s11479_s4 + $0x158] sm:$0xff] }
 0x3a0   :  { %2692 = vmatprep.subr.bf16.mxu1 %v7229_v28  ;;  %2774 = vmatprep.subr.bf16.mxu0 %v7231_v29  ;;  %v1134_v28 = vld [vmem:[%s11479_s4 + $0x178] sm:$0xff]  ;;  %v7024_v29 = vcombine.low %v1121_v49, %v1125_v17  ;;  %v7033_v33 = vcombine.high %v1129_v25, %v1133_v26  ;;  %v1177_v17 = vld [vmem:[%s11479_s4 + $0x2d0] sm:$0xff] }
 0x3a1   :  { %v7035_v35 = vcombine.high %v1130_v27, %v1134_v28  ;;  %v7034_v43 = vcombine.low %v1130_v27, %v1134_v28  ;;  %v1189_v27 = vld [vmem:[%s11479_s4 + $0x330] sm:$0xff]  ;;  %v1186_v28 = vld [vmem:[%s11479_s4 + $0x318] sm:$0xff] }
 0x3a3   :  { %2693 = vmatpush1.bf16.msra.mxu1 %v7228_v38  ;;  %2775 = vmatpush1.bf16.msra.mxu0 %v7230_v39  ;;  %v1141_v38 = vld [vmem:[%s11479_s4 + $0x1b0] sm:$0xff]  ;;  %v1138_v39 = vld [vmem:[%s11479_s4 + $0x198] sm:$0xff] }
 0x3a4   :  { %2694 = vmatprep.subr.bf16.mxu1 %v7237_v40  ;;  %2776 = vmatprep.subr.bf16.mxu0 %v7239_v41  ;;  %v1142_v40 = vld [vmem:[%s11479_s4 + $0x1b8] sm:$0xff]  ;;  %v7032_v41 = vcombine.low %v1129_v25, %v1133_v26  ;;  %v7041_v44 = vcombine.high %v1137_v37, %v1141_v38  ;;  %v1185_v26 = vld [vmem:[%s11479_s4 + $0x310] sm:$0xff] }
 0x3a5   :  { %v7043_v45 = vcombine.high %v1138_v39, %v1142_v40 }
 0x3a7   :  { %2695 = vmatpush1.bf16.msra.mxu1 %v7236_v63  ;;  %2777 = vmatpush1.bf16.msra.mxu0 %v7238_v0  ;;  %v1146_v63 = vld [vmem:[%s11479_s4 + $0x1d8] sm:$0xff] }
 0x3a8   :  { %2787 = vmatprep.subr.bf16.mxu1 %v6993_v1  ;;  %2869 = vmatprep.subr.bf16.mxu0 %v6995_v6  ;;  %v1150_v0 = vld [vmem:[%s11479_s4 + $0x1f8] sm:$0xff]  ;;  %v7040_v1 = vcombine.low %v1137_v37, %v1141_v38  ;;  %v7042_v6 = vcombine.low %v1138_v39, %v1142_v40  ;;  %v1193_v38 = vld [vmem:[%s11479_s4 + $0x350] sm:$0xff] }
 0x3a9   :  { %v7051_v13 = vcombine.high %v1146_v63, %v1150_v0  ;;  %v1197_v39 = vld [vmem:[%s11479_s4 + $0x370] sm:$0xff]  ;;  %v1194_v40 = vld [vmem:[%s11479_s4 + $0x358] sm:$0xff] }
 0x3aa   :  { %2697 = vmatmul.mubr.bf16.vlgmr.msra.gmra.mrb[4].mxu1 %v9509_v21  ;;  %2779 = vmatmul.mubr.bf16.vlgmr.msra.gmra.mrb[12].mxu0 %v9509_v21 }
 0x3ab   :  { %2788 = vmatpush1.bf16.msra.mxu1 %v6992_v57  ;;  %2819 = vmatprep.mubr.bf16.mxu1 %v9296_v31  ;;  %v1158_v57 = vld [vmem:[%s11479_s4 + $0x238] sm:$0xff] }
 0x3ac   :  { %2870 = vmatpush1.bf16.msra.mxu0 %v6994_v58  ;;  %2901 = vmatprep.mubr.bf16.mxu0 %v9296_v31  ;;  %v1118_v31 = vld [vmem:[%s11479_s4 + $0xf8] sm:$0xff]  ;;  %v7048_v58 = vcombine.low %v1145_v46, %v1149_v52  ;;  %v7059_v3 = vcombine.high %v1154_v56, %v1158_v57  ;;  %v1201_v52 = vld [vmem:[%s11479_s4 + $0x390] sm:$0xff] }
 0x3ad   :  { %2789 = vmatprep.subr.bf16.mxu1 %v7001_v61  ;;  %2871 = vmatprep.subr.bf16.mxu0 %v7003_v2  ;;  %v7019_v62 = vcombine.high %v1114_v34, %v1118_v31  ;;  %v7018_v22 = vcombine.low %v1114_v34, %v1118_v31  ;;  %v7050_v61 = vcombine.low %v1146_v63, %v1150_v0  ;;  %v1173_v34 = vld [vmem:[%s11479_s4 + $0x2b0] sm:$0xff]  ;;  %v1170_v31 = vld [vmem:[%s11479_s4 + $0x298] sm:$0xff] }
 0x3ae   :  { %v7057_v2 = vcombine.high %v1153_v55, %v1157_v48  ;;  %v1205_v63 = vld [vmem:[%s11479_s4 + $0x3b0] sm:$0xff]  ;;  %v1202_v0 = vld [vmem:[%s11479_s4 + $0x398] sm:$0xff] }
 0x3af   :  { %2790 = vmatpush1.bf16.msra.mxu1 %v7000_v11  ;;  %v1166_v11 = vld [vmem:[%s11479_s4 + $0x278] sm:$0xff] }
 0x3b0   :  { %2872 = vmatpush1.bf16.msra.mxu0 %v7002_v14  ;;  %2791 = vmatprep.subr.bf16.mxu1 %v7009_v15  ;;  %v7056_v14 = vcombine.low %v1153_v55, %v1157_v48  ;;  %v7058_v15 = vcombine.low %v1154_v56, %v1158_v57  ;;  %v7067_v10 = vcombine.high %v1162_v9, %v1166_v11  ;;  %v1209_v48 = vld [vmem:[%s11479_s4 + $0x3d0] sm:$0xff]  ;;  %v1210_v57 = vld [vmem:[%s11479_s4 + $0x3d8] sm:$0xff] }
 0x3b1   :  { %2873 = vmatprep.subr.bf16.mxu0 %v7011_v7  ;;  %v7065_v7 = vcombine.high %v1161_v5, %v1165_v8  ;;  %v1213_v56 = vld [vmem:[%s11479_s4 + $0x3f0] sm:$0xff] }
 0x3b3   :  { %2792 = vmatpush1.bf16.msra.mxu1 %v7008_v36  ;;  %v1174_v36 = vld [vmem:[%s11479_s4 + $0x2b8] sm:$0xff] }
 0x3b4   :  { %2874 = vmatpush1.bf16.msra.mxu0 %v7010_v54  ;;  %2793 = vmatprep.subr.bf16.mxu1 %v7017_v4  ;;  %v7064_v54 = vcombine.low %v1161_v5, %v1165_v8  ;;  %v7066_v4 = vcombine.low %v1162_v9, %v1166_v11  ;;  %v7075_v49 = vcombine.high %v1170_v31, %v1174_v36  ;;  %v1217_v8 = vld [vmem:[%s11479_s4 + $0x410] sm:$0xff]  ;;  %v1218_v11 = vld [vmem:[%s11479_s4 + $0x418] sm:$0xff] }
 0x3b5   :  { %2875 = vmatprep.subr.bf16.mxu0 %v7019_v62  ;;  %v7073_v62 = vcombine.high %v1169_v16, %v1173_v34  ;;  %v1221_v9 = vld [vmem:[%s11479_s4 + $0x430] sm:$0xff] }
 0x3b7   :  { %2794 = vmatpush1.bf16.msra.mxu1 %v7016_v20  ;;  %v1182_v20 = vld [vmem:[%s11479_s4 + $0x2f8] sm:$0xff] }
 0x3b8   :  { %2876 = vmatpush1.bf16.msra.mxu0 %v7018_v22  ;;  %2795 = vmatprep.subr.bf16.mxu1 %v7025_v23  ;;  %v7072_v22 = vcombine.low %v1169_v16, %v1173_v34  ;;  %v7074_v23 = vcombine.low %v1170_v31, %v1174_v36  ;;  %v7083_v25 = vcombine.high %v1178_v19, %v1182_v20  ;;  %v1225_v34 = vld [vmem:[%s11479_s4 + $0x450] sm:$0xff] }
 0x3b9   :  { %2877 = vmatprep.subr.bf16.mxu0 %v7027_v24  ;;  %v7081_v24 = vcombine.high %v1177_v17, %v1181_v18  ;;  %v1229_v31 = vld [vmem:[%s11479_s4 + $0x470] sm:$0xff]  ;;  %v7120_v36 = vcombine.low %v1217_v8, %v1221_v9 }
 0x3bb   :  { %2796 = vmatpush1.bf16.msra.mxu1 %v7024_v29  ;;  %v1190_v29 = vld [vmem:[%s11479_s4 + $0x338] sm:$0xff] }
 0x3bc   :  { %2878 = vmatpush1.bf16.msra.mxu0 %v7026_v30  ;;  %2797 = vmatprep.subr.bf16.mxu1 %v7033_v33  ;;  %v7080_v30 = vcombine.low %v1177_v17, %v1181_v18  ;;  %v7082_v33 = vcombine.low %v1178_v19, %v1182_v20  ;;  %v7091_v37 = vcombine.high %v1186_v28, %v1190_v29  ;;  %v1233_v17 = vld [vmem:[%s11479_s4 + $0x490] sm:$0xff]  ;;  %v1234_v20 = vld [vmem:[%s11479_s4 + $0x498] sm:$0xff] }
 0x3bd   :  { %2879 = vmatprep.subr.bf16.mxu0 %v7035_v35  ;;  %v7089_v35 = vcombine.high %v1185_v26, %v1189_v27  ;;  %v1237_v18 = vld [vmem:[%s11479_s4 + $0x4b0] sm:$0xff] }
 0x3bf   :  { %2798 = vmatpush1.bf16.msra.mxu1 %v7032_v41  ;;  %v1198_v41 = vld [vmem:[%s11479_s4 + $0x378] sm:$0xff] }
 0x3c0   :  { %2880 = vmatpush1.bf16.msra.mxu0 %v7034_v43  ;;  %2799 = vmatprep.subr.bf16.mxu1 %v7041_v44  ;;  %v7088_v43 = vcombine.low %v1185_v26, %v1189_v27  ;;  %v7090_v44 = vcombine.low %v1186_v28, %v1190_v29  ;;  %v7099_v46 = vcombine.high %v1194_v40, %v1198_v41  ;;  %v1241_v27 = vld [vmem:[%s11479_s4 + $0x4d0] sm:$0xff]  ;;  %v1246_v29 = vld [vmem:[%s11479_s4 + $0x4f8] sm:$0xff] }
 0x3c1   :  { %2881 = vmatprep.subr.bf16.mxu0 %v7043_v45  ;;  %v7097_v45 = vcombine.high %v1193_v38, %v1197_v39  ;;  %v1245_v28 = vld [vmem:[%s11479_s4 + $0x4f0] sm:$0xff] }
 0x3c3   :  { %2800 = vmatpush1.bf16.msra.mxu1 %v7040_v1  ;;  %v1206_v1 = vld [vmem:[%s11479_s4 + $0x3b8] sm:$0xff] }
 0x3c4   :  { %2882 = vmatpush1.bf16.msra.mxu0 %v7042_v6  ;;  %2801 = vmatprep.subr.bf16.mxu1 %v7049_v12  ;;  %v7096_v6 = vcombine.low %v1193_v38, %v1197_v39  ;;  %v7098_v12 = vcombine.low %v1194_v40, %v1198_v41  ;;  %v7107_v55 = vcombine.high %v1202_v0, %v1206_v1  ;;  %v1253_v38 = vld [vmem:[%s11479_s4 + $0x530] sm:$0xff]  ;;  %v1250_v39 = vld [vmem:[%s11479_s4 + $0x518] sm:$0xff] }
 0x3c5   :  { %2883 = vmatprep.subr.bf16.mxu0 %v7051_v13  ;;  %v7105_v13 = vcombine.high %v1201_v52, %v1205_v63  ;;  %v1254_v40 = vld [vmem:[%s11479_s4 + $0x538] sm:$0xff]  ;;  %v7144_v41 = vcombine.low %v1241_v27, %v1245_v28 }
 0x3c7   :  { %2802 = vmatpush1.bf16.msra.mxu1 %v7048_v58  ;;  %v1214_v58 = vld [vmem:[%s11479_s4 + $0x3f8] sm:$0xff] }
 0x3c8   :  { %2884 = vmatpush1.bf16.msra.mxu0 %v7050_v61  ;;  %2803 = vmatprep.subr.bf16.mxu1 %v7057_v2  ;;  %v7104_v61 = vcombine.low %v1201_v52, %v1205_v63  ;;  %v7106_v2 = vcombine.low %v1202_v0, %v1206_v1  ;;  %v7115_v5 = vcombine.high %v1210_v57, %v1214_v58  ;;  %v1261_v52 = vld [vmem:[%s11479_s4 + $0x570] sm:$0xff]  ;;  %v1258_v63 = vld [vmem:[%s11479_s4 + $0x558] sm:$0xff] }
 0x3c9   :  { %2885 = vmatprep.subr.bf16.mxu0 %v7059_v3  ;;  %v7113_v3 = vcombine.high %v1209_v48, %v1213_v56  ;;  %v1262_v0 = vld [vmem:[%s11479_s4 + $0x578] sm:$0xff] }
 0x3cb   :  { %2804 = vmatpush1.bf16.msra.mxu1 %v7056_v14  ;;  %v1222_v14 = vld [vmem:[%s11479_s4 + $0x438] sm:$0xff] }
 0x3cc   :  { %2886 = vmatpush1.bf16.msra.mxu0 %v7058_v15  ;;  %2805 = vmatprep.subr.bf16.mxu1 %v7065_v7  ;;  %v7112_v15 = vcombine.low %v1209_v48, %v1213_v56  ;;  %v7114_v7 = vcombine.low %v1210_v57, %v1214_v58  ;;  %v7123_v16 = vcombine.high %v1218_v11, %v1222_v14  ;;  %v1269_v48 = vld [vmem:[%s11479_s4 + $0x5b0] sm:$0xff]  ;;  %v1266_v56 = vld [vmem:[%s11479_s4 + $0x598] sm:$0xff] }
 0x3cd   :  { %2887 = vmatprep.subr.bf16.mxu0 %v7067_v10  ;;  %v7121_v10 = vcombine.high %v1217_v8, %v1221_v9  ;;  %v1270_v57 = vld [vmem:[%s11479_s4 + $0x5b8] sm:$0xff]  ;;  %v1277_v8 = vld [vmem:[%s11479_s4 + $0x5f0] sm:$0xff] }
 0x3ce   :  { %v1274_v9 = vld [vmem:[%s11479_s4 + $0x5d8] sm:$0xff] }
 0x3cf   :  { %2806 = vmatpush1.bf16.msra.mxu1 %v7064_v54  ;;  %v1226_v54 = vld [vmem:[%s11479_s4 + $0x458] sm:$0xff] }
 0x3d0   :  { %2888 = vmatpush1.bf16.msra.mxu0 %v7066_v4  ;;  %2807 = vmatprep.subr.bf16.mxu1 %v7073_v62  ;;  %v1230_v4 = vld [vmem:[%s11479_s4 + $0x478] sm:$0xff]  ;;  %v7122_v62 = vcombine.low %v1218_v11, %v1222_v14 }
 0x3d1   :  { %2889 = vmatprep.subr.bf16.mxu0 %v7075_v49  ;;  %v7129_v49 = vcombine.high %v1225_v34, %v1229_v31  ;;  %v7131_v19 = vcombine.high %v1226_v54, %v1230_v4  ;;  %v1278_v11 = vld [vmem:[%s11479_s4 + $0x5f8] sm:$0xff] }
 0x3d3   :  { %2808 = vmatpush1.bf16.msra.mxu1 %v7072_v22  ;;  %v1238_v22 = vld [vmem:[%s11479_s4 + $0x4b8] sm:$0xff] }
 0x3d4   :  { %2890 = vmatpush1.bf16.msra.mxu0 %v7074_v23  ;;  %2809 = vmatprep.subr.bf16.mxu1 %v7081_v24  ;;  %v7128_v23 = vcombine.low %v1225_v34, %v1229_v31  ;;  %v7130_v24 = vcombine.low %v1226_v54, %v1230_v4  ;;  %v7139_v26 = vcombine.high %v1234_v20, %v1238_v22  ;;  %v1285_v34 = vld [vmem:[%s11479_s4 + $0x630] sm:$0xff]  ;;  %v1282_v31 = vld [vmem:[%s11479_s4 + $0x618] sm:$0xff] }
 0x3d5   :  { %2891 = vmatprep.subr.bf16.mxu0 %v7083_v25  ;;  %v7137_v25 = vcombine.high %v1233_v17, %v1237_v18  ;;  %v7178_v4 = vcombine.low %v1274_v9, %v1278_v11 }
 0x3d7   :  { %2810 = vmatpush1.bf16.msra.mxu1 %v7080_v30  ;;  %v7138_v30 = vcombine.low %v1234_v20, %v1238_v22  ;;  %v1294_v20 = vld [vmem:[%s11479_s4 + $0x678] sm:$0xff] }
 0x3d8   :  { %2892 = vmatpush1.bf16.msra.mxu0 %v7082_v33  ;;  %2811 = vmatprep.subr.bf16.mxu1 %v7089_v35  ;;  %v7145_v33 = vcombine.high %v1241_v27, %v1245_v28  ;;  %v1301_v27 = vld [vmem:[%s11479_s4 + $0x6b0] sm:$0xff]  ;;  %v1298_v28 = vld [vmem:[%s11479_s4 + $0x698] sm:$0xff] }
 0x3d9   :  { %2893 = vmatprep.subr.bf16.mxu0 %v7091_v37  ;;  %v1249_v37 = vld [vmem:[%s11479_s4 + $0x510] sm:$0xff] }
 0x3da   :  { %v7152_v1 = vcombine.low %v1249_v37, %v1253_v38 }
 0x3db   :  { %2812 = vmatpush1.bf16.msra.mxu1 %v7088_v43 }
 0x3dc   :  { %2894 = vmatpush1.bf16.msra.mxu0 %v7090_v44  ;;  %2813 = vmatprep.subr.bf16.mxu1 %v7097_v45  ;;  %v7153_v44 = vcombine.high %v1249_v37, %v1253_v38  ;;  %v7155_v45 = vcombine.high %v1250_v39, %v1254_v40  ;;  %v1309_v37 = vld [vmem:[%s11479_s4 + $0x6f0] sm:$0xff]  ;;  %v1306_v38 = vld [vmem:[%s11479_s4 + $0x6d8] sm:$0xff] }
 0x3dd   :  { %2895 = vmatprep.subr.bf16.mxu0 %v7099_v46  ;;  %v1257_v46 = vld [vmem:[%s11479_s4 + $0x550] sm:$0xff] }
 0x3de   :  { %v7160_v58 = vcombine.low %v1257_v46, %v1261_v52 }
 0x3df   :  { %2814 = vmatpush1.bf16.msra.mxu1 %v7096_v6  ;;  %v7154_v6 = vcombine.low %v1250_v39, %v1254_v40  ;;  %v1310_v39 = vld [vmem:[%s11479_s4 + $0x6f8] sm:$0xff] }
 0x3e0   :  { %2896 = vmatpush1.bf16.msra.mxu0 %v7098_v12  ;;  %2815 = vmatprep.subr.bf16.mxu1 %v7105_v13  ;;  %v7161_v12 = vcombine.high %v1257_v46, %v1261_v52  ;;  %v7163_v13 = vcombine.high %v1258_v63, %v1262_v0  ;;  %v1317_v46 = vld [vmem:[%s11479_s4 + $0x730] sm:$0xff]  ;;  %v1314_v52 = vld [vmem:[%s11479_s4 + $0x718] sm:$0xff] }
 0x3e1   :  { %2897 = vmatprep.subr.bf16.mxu0 %v7107_v55  ;;  %v1265_v55 = vld [vmem:[%s11479_s4 + $0x590] sm:$0xff] }
 0x3e2   :  { %v7168_v14 = vcombine.low %v1265_v55, %v1269_v48 }
 0x3e3   :  { %2816 = vmatpush1.bf16.msra.mxu1 %v7104_v61  ;;  %v7162_v61 = vcombine.low %v1258_v63, %v1262_v0  ;;  %v1318_v63 = vld [vmem:[%s11479_s4 + $0x738] sm:$0xff] }
 0x3e4   :  { %2898 = vmatpush1.bf16.msra.mxu0 %v7106_v2  ;;  %2817 = vmatprep.subr.bf16.mxu1 %v7113_v3  ;;  %v7169_v2 = vcombine.high %v1265_v55, %v1269_v48  ;;  %v7171_v3 = vcombine.high %v1266_v56, %v1270_v57  ;;  %v1325_v55 = vld [vmem:[%s11479_s4 + $0x770] sm:$0xff]  ;;  %v1322_v48 = vld [vmem:[%s11479_s4 + $0x758] sm:$0xff] }
 0x3e5   :  { %2899 = vmatprep.subr.bf16.mxu0 %v7115_v5  ;;  %v1273_v5 = vld [vmem:[%s11479_s4 + $0x5d0] sm:$0xff] }
 0x3e6   :  { %v7176_v54 = vcombine.low %v1273_v5, %v1277_v8 }
 0x3e7   :  { %2818 = vmatpush1.bf16.msra.mxu1 %v7112_v15  ;;  %v7170_v15 = vcombine.low %v1266_v56, %v1270_v57  ;;  %v1326_v56 = vld [vmem:[%s11479_s4 + $0x778] sm:$0xff] }
 0x3e8   :  { %2900 = vmatpush1.bf16.msra.mxu0 %v7114_v7  ;;  %2828 = vmatprep.subr.bf16.mxu1 %v7121_v10  ;;  %v7177_v7 = vcombine.high %v1273_v5, %v1277_v8  ;;  %v7179_v10 = vcombine.high %v1274_v9, %v1278_v11  ;;  %v1333_v5 = vld [vmem:[%s11479_s4 + $0x7b0] sm:$0xff]  ;;  %v1330_v8 = vld [vmem:[%s11479_s4 + $0x798] sm:$0xff] }
 0x3e9   :  { %2910 = vmatprep.subr.bf16.mxu0 %v7123_v16  ;;  %v1281_v16 = vld [vmem:[%s11479_s4 + $0x610] sm:$0xff]  ;;  %v1334_v9 = vld [vmem:[%s11479_s4 + $0x7b8] sm:$0xff] }
 0x3ea   :  { %2820 = vmatmul.mubr.bf16.vlgmr.msra.gmra.mrb[8].mxu1 %v9298_v32  ;;  %v7184_v22 = vcombine.low %v1281_v16, %v1285_v34 }
 0x3eb   :  { %2902 = vmatmul.mubr.bf16.vlgmr.msra.gmra.mrb[16].mxu0 %v9298_v32  ;;  %2829 = vmatpush1.bf16.msra.mxu1 %v7120_v36  ;;  %v1242_v32 = vld [vmem:[%s11479_s4 + $0x4d8] sm:$0xff] }
 0x3ec   :  { %2860 = vmatprep.mubr.bf16.mxu1 %v9316_v42  ;;  %2911 = vmatpush1.bf16.msra.mxu0 %v7122_v62  ;;  %v7147_v35 = vcombine.high %v1242_v32, %v1246_v29  ;;  %v7146_v43 = vcombine.low %v1242_v32, %v1246_v29  ;;  %v1286_v36 = vld [vmem:[%s11479_s4 + $0x638] sm:$0xff]  ;;  %v7185_v62 = vcombine.high %v1281_v16, %v1285_v34  ;;  %v1341_v16 = vld [vmem:[%s11479_s4 + $0x7f0] sm:$0xff] }
 0x3ed   :  { %2942 = vmatprep.mubr.bf16.mxu0 %v9316_v42  ;;  %2830 = vmatprep.subr.bf16.mxu1 %v7129_v49  ;;  %v7136_v42 = vcombine.low %v1233_v17, %v1237_v18  ;;  %v7187_v49 = vcombine.high %v1282_v31, %v1286_v36  ;;  %v1289_v17 = vld [vmem:[%s11479_s4 + $0x650] sm:$0xff]  ;;  %v1302_v32 = vld [vmem:[%s11479_s4 + $0x6b8] sm:$0xff] }
 0x3ee   :  { %2912 = vmatprep.subr.bf16.mxu0 %v7131_v19  ;;  %v1293_v18 = vld [vmem:[%s11479_s4 + $0x670] sm:$0xff]  ;;  %v1290_v19 = vld [vmem:[%s11479_s4 + $0x658] sm:$0xff] }
 0x3ef   :  { %2831 = vmatpush1.bf16.msra.mxu1 %v7128_v23  ;;  %v7186_v23 = vcombine.low %v1282_v31, %v1286_v36  ;;  %v7192_v29 = vcombine.low %v1289_v17, %v1293_v18  ;;  %v1338_v34 = vld [vmem:[%s11479_s4 + $0x7d8] sm:$0xff] }
 0x3f0   :  { %2913 = vmatpush1.bf16.msra.mxu0 %v7130_v24  ;;  %2832 = vmatprep.subr.bf16.mxu1 %v7137_v25  ;;  %v7193_v24 = vcombine.high %v1289_v17, %v1293_v18  ;;  %v7195_v25 = vcombine.high %v1290_v19, %v1294_v20  ;;  %v1342_v31 = vld [vmem:[%s11479_s4 + $0x7f8] sm:$0xff] }
 0x3f1   :  { %2914 = vmatprep.subr.bf16.mxu0 %v7139_v26  ;;  %v1297_v26 = vld [vmem:[%s11479_s4 + $0x690] sm:$0xff]  ;;  %v7242_v17 = vcombine.low %v1338_v34, %v1342_v31 }
 0x3f2   :  { %v7200_v40 = vcombine.low %v1297_v26, %v1301_v27 }
 0x3f3   :  { %2833 = vmatpush1.bf16.msra.mxu1 %v7136_v42  ;;  %v7194_v42 = vcombine.low %v1290_v19, %v1294_v20 }
 0x3f4   :  { %2915 = vmatpush1.bf16.msra.mxu0 %v7138_v30  ;;  %2834 = vmatprep.subr.bf16.mxu1 %v7145_v33  ;;  %v7201_v30 = vcombine.high %v1297_v26, %v1301_v27  ;;  %v7203_v33 = vcombine.high %v1298_v28, %v1302_v32 }
 0x3f5   :  { %2916 = vmatprep.subr.bf16.mxu0 %v7147_v35  ;;  %v1305_v35 = vld [vmem:[%s11479_s4 + $0x6d0] sm:$0xff] }
 0x3f6   :  { %v7208_v0 = vcombine.low %v1305_v35, %v1309_v37 }
 0x3f7   :  { %2835 = vmatpush1.bf16.msra.mxu1 %v7144_v41  ;;  %v7202_v41 = vcombine.low %v1298_v28, %v1302_v32 }
 0x3f8   :  { %2917 = vmatpush1.bf16.msra.mxu0 %v7146_v43  ;;  %2836 = vmatprep.subr.bf16.mxu1 %v7153_v44  ;;  %v7209_v43 = vcombine.high %v1305_v35, %v1309_v37  ;;  %v7211_v44 = vcombine.high %v1306_v38, %v1310_v39 }
 0x3f9   :  { %2918 = vmatprep.subr.bf16.mxu0 %v7155_v45  ;;  %v1313_v45 = vld [vmem:[%s11479_s4 + $0x710] sm:$0xff] }
 0x3fa   :  { %v7216_v57 = vcombine.low %v1313_v45, %v1317_v46 }
 0x3fb   :  { %2837 = vmatpush1.bf16.msra.mxu1 %v7152_v1  ;;  %v7210_v1 = vcombine.low %v1306_v38, %v1310_v39 }
 0x3fc   :  { %2919 = vmatpush1.bf16.msra.mxu0 %v7154_v6  ;;  %2838 = vmatprep.subr.bf16.mxu1 %v7161_v12  ;;  %v7217_v6 = vcombine.high %v1313_v45, %v1317_v46  ;;  %v7219_v12 = vcombine.high %v1314_v52, %v1318_v63 }
 0x3fd   :  { %2920 = vmatprep.subr.bf16.mxu0 %v7163_v13  ;;  %v1321_v13 = vld [vmem:[%s11479_s4 + $0x750] sm:$0xff] }
 0x3fe   :  { %v7224_v11 = vcombine.low %v1321_v13, %v1325_v55 }
 0x3ff   :  { %2839 = vmatpush1.bf16.msra.mxu1 %v7160_v58  ;;  %v7218_v58 = vcombine.low %v1314_v52, %v1318_v63 }
 0x400   :  { %2921 = vmatpush1.bf16.msra.mxu0 %v7162_v61  ;;  %2840 = vmatprep.subr.bf16.mxu1 %v7169_v2  ;;  %v7225_v61 = vcombine.high %v1321_v13, %v1325_v55  ;;  %v7227_v2 = vcombine.high %v1322_v48, %v1326_v56 }
 0x401   :  { %2922 = vmatprep.subr.bf16.mxu0 %v7171_v3  ;;  %v1329_v3 = vld [vmem:[%s11479_s4 + $0x790] sm:$0xff] }
 0x402   :  { %v7232_v36 = vcombine.low %v1329_v3, %v1333_v5 }
 0x403   :  { %2841 = vmatpush1.bf16.msra.mxu1 %v7168_v14  ;;  %v7226_v14 = vcombine.low %v1322_v48, %v1326_v56 }
 0x404   :  { %2923 = vmatpush1.bf16.msra.mxu0 %v7170_v15  ;;  %2842 = vmatprep.subr.bf16.mxu1 %v7177_v7  ;;  %v7233_v15 = vcombine.high %v1329_v3, %v1333_v5  ;;  %v7235_v7 = vcombine.high %v1330_v8, %v1334_v9  ;;  %v7978_v3 = vld [vmem:[%s11480_s5 + $0x4] ss:$28 sps:$4 sm:$0xff]  }
 0x405   :  { %2924 = vmatprep.subr.bf16.mxu0 %v7179_v10  ;;  %v1337_v10 = vld [vmem:[%s11479_s4 + $0x7d0] sm:$0xff] }
 0x407   :  { %2843 = vmatpush1.bf16.msra.mxu1 %v7176_v54  ;;  %v7234_v54 = vcombine.low %v1330_v8, %v1334_v9 }
 0x408   :  { %2925 = vmatpush1.bf16.msra.mxu0 %v7178_v4  ;;  %2844 = vmatprep.subr.bf16.mxu1 %v7185_v62  ;;  %v7241_v4 = vcombine.high %v1337_v10, %v1341_v16  ;;  %v7243_v62 = vcombine.high %v1338_v34, %v1342_v31  ;;  %v7979_v34 = vld [vmem:[%s11480_s5 + $0x8] ss:$28 sps:$4 sm:$0xff]  }
 0x409   :  { %2926 = vmatprep.subr.bf16.mxu0 %v7187_v49  ;;  %v7240_v49 = vcombine.low %v1337_v10, %v1341_v16  ;;  %v7981_v31 = vld [vmem:[%s11480_s5 + $0xc] ss:$28 sps:$4 sm:$0xff]  }
 0x40b   :  { %2845 = vmatpush1.bf16.msra.mxu1 %v7184_v22 }
 0x40c   :  { %2927 = vmatpush1.bf16.msra.mxu0 %v7186_v23  ;;  %2846 = vmatprep.subr.bf16.mxu1 %v7193_v24 }
 0x40d   :  { %2928 = vmatprep.subr.bf16.mxu0 %v7195_v25 }
 0x40f   :  { %2847 = vmatpush1.bf16.msra.mxu1 %v7192_v29 }
 0x410   :  { %2929 = vmatpush1.bf16.msra.mxu0 %v7194_v42  ;;  %2848 = vmatprep.subr.bf16.mxu1 %v7201_v30 }
 0x411   :  { %2930 = vmatprep.subr.bf16.mxu0 %v7203_v33 }
 0x413   :  { %2849 = vmatpush1.bf16.msra.mxu1 %v7200_v40 }
 0x414   :  { %2931 = vmatpush1.bf16.msra.mxu0 %v7202_v41  ;;  %2850 = vmatprep.subr.bf16.mxu1 %v7209_v43 }
 0x415   :  { %2932 = vmatprep.subr.bf16.mxu0 %v7211_v44 }
 0x417   :  { %2851 = vmatpush1.bf16.msra.mxu1 %v7208_v0 }
 0x418   :  { %2933 = vmatpush1.bf16.msra.mxu0 %v7210_v1  ;;  %2852 = vmatprep.subr.bf16.mxu1 %v7217_v6 }
 0x419   :  { %2934 = vmatprep.subr.bf16.mxu0 %v7219_v12 }
 0x41b   :  { %2853 = vmatpush1.bf16.msra.mxu1 %v7216_v57 }
 0x41c   :  { %2935 = vmatpush1.bf16.msra.mxu0 %v7218_v58  ;;  %2854 = vmatprep.subr.bf16.mxu1 %v7225_v61 }
 0x41d   :  { %2936 = vmatprep.subr.bf16.mxu0 %v7227_v2 }
 0x41f   :  { %2855 = vmatpush1.bf16.msra.mxu1 %v7224_v11 }
 0x420   :  { %2937 = vmatpush1.bf16.msra.mxu0 %v7226_v14  ;;  %2856 = vmatprep.subr.bf16.mxu1 %v7233_v15  ;;  %v7976_v14 = vld [vmem:[%s11480_s5] ss:$28 sps:$4 sm:$0xff]  }
 0x421   :  { %2938 = vmatprep.subr.bf16.mxu0 %v7235_v7 }
 0x423   :  { %2857 = vmatpush1.bf16.msra.mxu1 %v7232_v36 }
 0x424   :  { %2939 = vmatpush1.bf16.msra.mxu0 %v7234_v54  ;;  %2858 = vmatprep.subr.bf16.mxu1 %v7241_v4 }
 0x425   :  { %2940 = vmatprep.subr.bf16.mxu0 %v7243_v62 }
 0x427   :  { %2859 = vmatpush1.bf16.msra.mxu1 %v7240_v49 }
 0x428   :  { %2941 = vmatpush1.bf16.msra.mxu0 %v7242_v17  ;;  %6223 = vmatprep.subr.bf16.mxu1 %v7978_v3  ;;  %v7997_v3 = vld [vmem:[%s11480_s5 + $0xb0] ss:$28 sps:$4 sm:$0xff]  }
 0x429   :  { %6387 = vmatprep.subr.bf16.mxu0 %v7981_v31 }
 0x42a   :  { %2861 = vmatmul.mubr.bf16.vlgmr.msra.gmra.mrb[8].mxu1 %v9509_v21 }
 0x42b   :  { %2943 = vmatmul.mubr.bf16.vlgmr.msra.gmra.mrb[16].mxu0 %v9509_v21  ;;  %6224 = vmatpush1.bf16.msra.mxu1 %v7976_v14  ;;  %v8003_v14 = vld [vmem:[%s11480_s5 + $0xe8] ss:$28 sps:$4 sm:$0xff]  }
 0x42c   :  { %6388 = vmatpush1.bf16.msra.mxu0 %v7979_v34 }
 0x47d   :  { %v9881_v18 = vpop.f32.mrb[4].mxu1  ;;  %v9883_v19 = vpop.f32.mrb[12].mxu0 }
 0x47e   :  { %v2959_v20 = vrot.slane %v9881_v18, 4  ;;  %v3015_v22 = vmul.f32 %v9881_v18, %v9881_v18  ;;  %v2971_v23 = vrot.slane %v9883_v19, 4  ;;  %v3017_v24 = vmul.f32 %v9883_v19, %v9883_v19  ;;  %v9891_v25 = vpop.f32.mrb[5].mxu1  ;;  %v9893_v26 = vpop.f32.mrb[13].mxu0 }
 0x47f   :  { %v2965_v21 = vrot.slane %v9891_v25, 4  ;;  %v3016_v27 = vmul.f32 %v9891_v25, %v9891_v25  ;;  %v2977_v28 = vrot.slane %v9893_v26, 4  ;;  %v3018_v32 = vmul.f32 %v9893_v26, %v9893_v26  ;;  %v2702_v29 = vpop.f32.mrb[6].mxu1  ;;  %v2784_v42 = vpop.f32.mrb[14].mxu0 }
 0x480   :  { %v2960_v30 = vadd.f32 %v2959_v20, %v9881_v18  ;;  %v3023_v33 = vrot.slane %v3015_v22, 4  ;;  %v2972_v35 = vadd.f32 %v2971_v23, %v9883_v19  ;;  %v3035_v37 = vrot.slane %v3017_v24, 4  ;;  %v2703_v38 = vpop.f32.mrb[7].mxu1  ;;  %v2785_v39 = vpop.f32.mrb[15].mxu0  ;;  %v7984_v23 = vld [vmem:[%s11480_s5 + $0x3c] ss:$28 sps:$4 sm:$0xff]  }
 0x481   :  { %v2966_v40 = vadd.f32 %v2965_v21, %v9891_v25  ;;  %v3029_v41 = vrot.slane %v3016_v27, 4  ;;  %v2978_v43 = vadd.f32 %v2977_v28, %v9893_v26  ;;  %v3041_v44 = vrot.slane %v3018_v32, 4  ;;  %v7985_v29 = vld [vmem:[%s11480_s5 + $0x40] ss:$28 sps:$4 sm:$0xff]   ;;  %6225 = vmatprep.subr.bf16.mxu1 %v7984_v23 }
 0x482   :  { %v2961_v45 = vrot.slane %v2960_v30, 2  ;;  %v3024_v46 = vadd.f32 %v3023_v33, %v3015_v22  ;;  %v2973_v52 = vrot.slane %v2972_v35, 2  ;;  %v3036_v63 = vadd.f32 %v3035_v37, %v3017_v24  ;;  %v7987_v37 = vld [vmem:[%s11480_s5 + $0x44] ss:$28 sps:$4 sm:$0xff]  }
 0x483   :  { %v2967_v0 = vrot.slane %v2966_v40, 2  ;;  %v3030_v1 = vadd.f32 %v3029_v41, %v3016_v27  ;;  %v2979_v6 = vrot.slane %v2978_v43, 2  ;;  %v3042_v12 = vadd.f32 %v3041_v44, %v3018_v32  ;;  %v7982_v32 = vld [vmem:[%s11480_s5 + $0x38] ss:$28 sps:$4 sm:$0xff]   ;;  %6389 = vmatprep.subr.bf16.mxu0 %v7987_v37  ;;  %v8026_v37 = vld [vmem:[%s11480_s5 + $0x1c4] ss:$28 sps:$4 sm:$0xff]  }
 0x484   :  { %v2962_v13 = vadd.f32 %v2961_v45, %v2960_v30  ;;  %v3025_v55 = vrot.slane %v3024_v46, 2  ;;  %v2974_v48 = vadd.f32 %v2973_v52, %v2972_v35  ;;  %v3037_v56 = vrot.slane %v3036_v63, 2  ;;  %6226 = vmatpush1.bf16.msra.mxu1 %v7982_v32  ;;  %v7990_v52 = vld [vmem:[%s11480_s5 + $0x74] ss:$28 sps:$4 sm:$0xff]   ;;  %6390 = vmatpush1.bf16.msra.mxu0 %v7985_v29  ;;  %v8020_v32 = vld [vmem:[%s11480_s5 + $0x18c] ss:$28 sps:$4 sm:$0xff]  }
 0x485   :  { %v2968_v57 = vadd.f32 %v2967_v0, %v2966_v40  ;;  %v3031_v58 = vrot.slane %v3030_v1, 2  ;;  %v2980_v61 = vadd.f32 %v2979_v6, %v2978_v43  ;;  %v3043_v2 = vrot.slane %v3042_v12, 2  ;;  %v7988_v6 = vld [vmem:[%s11480_s5 + $0x70] ss:$28 sps:$4 sm:$0xff]   ;;  %6227 = vmatprep.subr.bf16.mxu1 %v7990_v52  ;;  %v8041_v52 = vld [vmem:[%s11480_s5 + $0x23c] ss:$28 sps:$4 sm:$0xff]  }
 0x486   :  { %v2963_v5 = vrot.slane %v2962_v13, 1  ;;  %v3026_v8 = vadd.f32 %v3025_v55, %v3024_v46  ;;  %v2975_v9 = vrot.slane %v2974_v48, 1  ;;  %v3038_v11 = vadd.f32 %v3037_v56, %v3036_v63  ;;  %v7993_v63 = vld [vmem:[%s11480_s5 + $0x7c] ss:$28 sps:$4 sm:$0xff]   ;;  %v8021_v29 = vld [vmem:[%s11480_s5 + $0x190] ss:$28 sps:$4 sm:$0xff]  }
 0x487   :  { %v2969_v15 = vrot.slane %v2968_v57, 1  ;;  %v3032_v7 = vadd.f32 %v3031_v58, %v3030_v1  ;;  %v2981_v10 = vrot.slane %v2980_v61, 1  ;;  %v3044_v16 = vadd.f32 %v3043_v2, %v3042_v12  ;;  %v7991_v12 = vld [vmem:[%s11480_s5 + $0x78] ss:$28 sps:$4 sm:$0xff]   ;;  %6391 = vmatprep.subr.bf16.mxu0 %v7993_v63  ;;  %v7994_v2 = vld [vmem:[%s11480_s5 + $0xa8] ss:$28 sps:$4 sm:$0xff]  }
 0x488   :  { %v2964_v36 = vadd.f32 %v2963_v5, %v2962_v13  ;;  %v3027_v54 = vrot.slane %v3026_v8, 1  ;;  %v2976_v4 = vadd.f32 %v2975_v9, %v2974_v48  ;;  %v3039_v62 = vrot.slane %v3038_v11, 1  ;;  %6228 = vmatpush1.bf16.msra.mxu1 %v7988_v6  ;;  %6392 = vmatpush1.bf16.msra.mxu0 %v7991_v12  ;;  %v7999_v5 = vld [vmem:[%s11480_s5 + $0xb4] ss:$28 sps:$4 sm:$0xff]   ;;  %v8005_v9 = vld [vmem:[%s11480_s5 + $0xec] ss:$28 sps:$4 sm:$0xff]  }
 0x489   :  { %v2970_v49 = vadd.f32 %v2969_v15, %v2968_v57  ;;  %v3033_v17 = vrot.slane %v3032_v7, 1  ;;  %v2982_v20 = vadd.f32 %v2981_v10, %v2980_v61  ;;  %v3045_v22 = vrot.slane %v3044_v16, 1  ;;  %v7996_v61 = vld [vmem:[%s11480_s5 + $0xac] ss:$28 sps:$4 sm:$0xff]   ;;  %6393 = vmatprep.subr.bf16.mxu0 %v7999_v5  ;;  %v8008_v15 = vld [vmem:[%s11480_s5 + $0x11c] ss:$28 sps:$4 sm:$0xff]  }
 0x48a   :  { %v9920_v24 = vmul.f32 0.125, %v2964_v36  ;;  %v3028_v21 = vadd.f32 %v3027_v54, %v3026_v8  ;;  %v9922_v27 = vmul.f32 0.125, %v2976_v4  ;;  %v3040_v28 = vadd.f32 %v3039_v62, %v3038_v11  ;;  %6229 = vmatprep.subr.bf16.mxu1 %v7996_v61  ;;  %v8002_v8 = vld [vmem:[%s11480_s5 + $0xe4] ss:$28 sps:$4 sm:$0xff]   ;;  %v8006_v10 = vld [vmem:[%s11480_s5 + $0x118] ss:$28 sps:$4 sm:$0xff]  }
 0x48b   :  { %v9930_v42 = vmul.f32 0.125, %v2970_v49  ;;  %v3034_v30 = vadd.f32 %v3033_v17, %v3032_v7  ;;  %v9932_v33 = vmul.f32 0.125, %v2982_v20  ;;  %v3046_v35 = vadd.f32 %v3045_v22, %v3044_v16  ;;  %v8000_v11 = vld [vmem:[%s11480_s5 + $0xe0] ss:$28 sps:$4 sm:$0xff]   ;;  %v8014_v36 = vld [vmem:[%s11480_s5 + $0x154] ss:$28 sps:$4 sm:$0xff]  }
 0x48c   :  { %v3071_v38 = vmul.f32 0.125, %v3028_v21  ;;  %v3079_v39 = vmul.f32 %v9920_v24, %v9920_v24  ;;  %v3073_v40 = vmul.f32 0.125, %v3040_v28  ;;  %v3081_v41 = vmul.f32 %v9922_v27, %v9922_v27  ;;  %6230 = vmatpush1.bf16.msra.mxu1 %v7994_v2  ;;  %6394 = vmatpush1.bf16.msra.mxu0 %v7997_v3  ;;  %v8011_v7 = vld [vmem:[%s11480_s5 + $0x124] ss:$28 sps:$4 sm:$0xff]   ;;  %v8017_v54 = vld [vmem:[%s11480_s5 + $0x15c] ss:$28 sps:$4 sm:$0xff]  }
 0x48d   :  { %v3072_v43 = vmul.f32 0.125, %v3034_v30  ;;  %v3080_v44 = vmul.f32 %v9930_v42, %v9930_v42  ;;  %v3074_v45 = vmul.f32 0.125, %v3046_v35  ;;  %v3082_v46 = vmul.f32 %v9932_v33, %v9932_v33  ;;  %6231 = vmatprep.subr.bf16.mxu1 %v8002_v8  ;;  %6395 = vmatprep.subr.bf16.mxu0 %v8005_v9  ;;  %v8009_v16 = vld [vmem:[%s11480_s5 + $0x120] ss:$28 sps:$4 sm:$0xff]   ;;  %v8012_v62 = vld [vmem:[%s11480_s5 + $0x150] ss:$28 sps:$4 sm:$0xff]  }
 0x48e   :  { %v3087_v0 = vsub.f32 %v3071_v38, %v3079_v39  ;;  %v3089_v1 = vsub.f32 %v3073_v40, %v3081_v41  ;;  %v8015_v49 = vld [vmem:[%s11480_s5 + $0x158] ss:$28 sps:$4 sm:$0xff]   ;;  %v8018_v28 = vld [vmem:[%s11480_s5 + $0x188] ss:$28 sps:$4 sm:$0xff]   ;;  %v8024_v39 = vld [vmem:[%s11480_s5 + $0x1c0] ss:$28 sps:$4 sm:$0xff]  }
 0x48f   :  { %v3088_v13 = vsub.f32 %v3072_v43, %v3080_v44  ;;  %v3090_v55 = vsub.f32 %v3074_v45, %v3082_v46  ;;  %v8023_v35 = vld [vmem:[%s11480_s5 + $0x194] ss:$28 sps:$4 sm:$0xff]   ;;  %v8029_v38 = vld [vmem:[%s11480_s5 + $0x1cc] ss:$28 sps:$4 sm:$0xff]   ;;  %v8032_v41 = vld [vmem:[%s11480_s5 + $0x1fc] ss:$28 sps:$4 sm:$0xff]  }
 0x490   :  { %v3095_v48 = vadd.f32 1e-05, %v3087_v0  ;;  %v3097_v56 = vadd.f32 1e-05, %v3089_v1  ;;  %6232 = vmatpush1.bf16.msra.mxu1 %v8000_v11  ;;  %6396 = vmatpush1.bf16.msra.mxu0 %v8003_v14  ;;  %v8027_v40 = vld [vmem:[%s11480_s5 + $0x1c8] ss:$28 sps:$4 sm:$0xff]  }
 0x491   :  { %v3096_v57 = vadd.f32 1e-05, %v3088_v13  ;;  %v3098_v58 = vadd.f32 1e-05, %v3090_v55  ;;  %6233 = vmatprep.subr.bf16.mxu1 %v8008_v15  ;;  %6397 = vmatprep.subr.bf16.mxu0 %v8011_v7  ;;  %v8035_v43 = vld [vmem:[%s11480_s5 + $0x204] ss:$28 sps:$4 sm:$0xff]  }
 0x492   :  { %8628 = vrsqrt.f32 %v3095_v48  ;;  %v8030_v44 = vld [vmem:[%s11480_s5 + $0x1f8] ss:$28 sps:$4 sm:$0xff]   ;;  %v8033_v45 = vld [vmem:[%s11480_s5 + $0x200] ss:$28 sps:$4 sm:$0xff]   ;;  %v8036_v63 = vld [vmem:[%s11480_s5 + $0x230] ss:$28 sps:$4 sm:$0xff]  }
 0x493   :  { %8630 = vrsqrt.f32 %v3097_v56  ;;  %v8038_v46 = vld [vmem:[%s11480_s5 + $0x234] ss:$28 sps:$4 sm:$0xff]   ;;  %v8044_v1 = vld [vmem:[%s11480_s5 + $0x26c] ss:$28 sps:$4 sm:$0xff]   ;;  %v8050_v55 = vld [vmem:[%s11480_s5 + $0x2a4] ss:$28 sps:$4 sm:$0xff]  }
 0x494   :  { %8632 = vrsqrt.f32 %v3096_v57  ;;  %6234 = vmatpush1.bf16.msra.mxu1 %v8006_v10  ;;  %6398 = vmatpush1.bf16.msra.mxu0 %v8009_v16  ;;  %v8039_v0 = vld [vmem:[%s11480_s5 + $0x238] ss:$28 sps:$4 sm:$0xff]   ;;  %v8042_v12 = vld [vmem:[%s11480_s5 + $0x268] ss:$28 sps:$4 sm:$0xff]   ;;  %v8045_v13 = vld [vmem:[%s11480_s5 + $0x270] ss:$28 sps:$4 sm:$0xff]  }
 0x495   :  { %8634 = vrsqrt.f32 %v3098_v58  ;;  %6235 = vmatprep.subr.bf16.mxu1 %v8014_v36  ;;  %6399 = vmatprep.subr.bf16.mxu0 %v8017_v54  ;;  %v8047_v6 = vld [vmem:[%s11480_s5 + $0x274] ss:$28 sps:$4 sm:$0xff]   ;;  %v8053_v48 = vld [vmem:[%s11480_s5 + $0x2ac] ss:$28 sps:$4 sm:$0xff]   ;;  %v8048_v56 = vld [vmem:[%s11480_s5 + $0x2a0] ss:$28 sps:$4 sm:$0xff]  }
 0x496   :  { %v8051_v57 = vld [vmem:[%s11480_s5 + $0x2a8] ss:$28 sps:$4 sm:$0xff]   ;;  %v8056_v58 = vld [vmem:[%s11480_s5 + $0x2dc] ss:$28 sps:$4 sm:$0xff]   ;;  %v8062_v5 = vld [vmem:[%s11480_s5 + $0x314] ss:$28 sps:$4 sm:$0xff]  }
 0x497   :  { %v8059_v61 = vld [vmem:[%s11480_s5 + $0x2e4] ss:$28 sps:$4 sm:$0xff]   ;;  %v8054_v2 = vld [vmem:[%s11480_s5 + $0x2d8] ss:$28 sps:$4 sm:$0xff]   ;;  %v8060_v9 = vld [vmem:[%s11480_s5 + $0x310] ss:$28 sps:$4 sm:$0xff]  }
 0x498   :  { %6236 = vmatpush1.bf16.msra.mxu1 %v8012_v62  ;;  %6400 = vmatpush1.bf16.msra.mxu0 %v8015_v49  ;;  %v8057_v3 = vld [vmem:[%s11480_s5 + $0x2e0] ss:$28 sps:$4 sm:$0xff]   ;;  %v8063_v11 = vld [vmem:[%s11480_s5 + $0x318] ss:$28 sps:$4 sm:$0xff]   ;;  %v8068_v14 = vld [vmem:[%s11480_s5 + $0x34c] ss:$28 sps:$4 sm:$0xff]  }
 0x499   :  { %6237 = vmatprep.subr.bf16.mxu1 %v8020_v32  ;;  %6401 = vmatprep.subr.bf16.mxu0 %v8023_v35  ;;  %v8065_v8 = vld [vmem:[%s11480_s5 + $0x31c] ss:$28 sps:$4 sm:$0xff]   ;;  %v8066_v15 = vld [vmem:[%s11480_s5 + $0x348] ss:$28 sps:$4 sm:$0xff]   ;;  %v8071_v7 = vld [vmem:[%s11480_s5 + $0x354] ss:$28 sps:$4 sm:$0xff]  }
 0x49a   :  { %v8069_v10 = vld [vmem:[%s11480_s5 + $0x350] ss:$28 sps:$4 sm:$0xff]   ;;  %v8074_v16 = vld [vmem:[%s11480_s5 + $0x384] ss:$28 sps:$4 sm:$0xff]  }
 0x49c   :  { %v8629_v34 = vpop.eup %8628  ;;  %6238 = vmatpush1.bf16.msra.mxu1 %v8018_v28  ;;  %6402 = vmatpush1.bf16.msra.mxu0 %v8021_v29 }
 0x49d   :  { %v8631_v31 = vpop.eup %8630  ;;  %6239 = vmatprep.subr.bf16.mxu1 %v8026_v37  ;;  %6403 = vmatprep.subr.bf16.mxu0 %v8029_v38 }
 0x49e   :  { %v8633_v4 = vpop.eup %8632 }
 0x49f   :  { %v8635_v17 = vpop.eup %8634  ;;  %v3119_v20 = vcombine.low %v8629_v34, %v8633_v4  ;;  %v8077_v34 = vld [vmem:[%s11480_s5 + $0x38c] ss:$28 sps:$4 sm:$0xff]  }
 0x4a0   :  { %v3120_v22 = vcombine.low %v8631_v31, %v8635_v17  ;;  %6240 = vmatpush1.bf16.msra.mxu1 %v8024_v39  ;;  %6404 = vmatpush1.bf16.msra.mxu0 %v8027_v40 }
 0x4a1   :  { %v10006_v23 = vrot.slane %v3119_v20, %v8886_v53  ;;  %6241 = vmatprep.subr.bf16.mxu1 %v8032_v41  ;;  %6405 = vmatprep.subr.bf16.mxu0 %v8035_v43 }
 0x4a2   :  { %v10009_v21 = vrot.slane %v3120_v22, %v8886_v53 }
 0x4a4   :  { %v3151_v30 = vcombine.low %v10006_v23, %v10009_v21  ;;  %6242 = vmatpush1.bf16.msra.mxu1 %v8030_v44  ;;  %6406 = vmatpush1.bf16.msra.mxu0 %v8033_v45 }
 0x4a5   :  { %6243 = vmatprep.subr.bf16.mxu1 %v8038_v46  ;;  %6407 = vmatprep.subr.bf16.mxu0 %v8041_v52 }
 0x4a8   :  { %6244 = vmatpush1.bf16.msra.mxu1 %v8036_v63  ;;  %6408 = vmatpush1.bf16.msra.mxu0 %v8039_v0 }
 0x4a9   :  { %6245 = vmatprep.subr.bf16.mxu1 %v8044_v1  ;;  %6409 = vmatprep.subr.bf16.mxu0 %v8047_v6 }
 0x4ac   :  { %6246 = vmatpush1.bf16.msra.mxu1 %v8042_v12  ;;  %6410 = vmatpush1.bf16.msra.mxu0 %v8045_v13 }
 0x4ad   :  { %6247 = vmatprep.subr.bf16.mxu1 %v8050_v55  ;;  %6411 = vmatprep.subr.bf16.mxu0 %v8053_v48 }
 0x4b0   :  { %6248 = vmatpush1.bf16.msra.mxu1 %v8048_v56  ;;  %6412 = vmatpush1.bf16.msra.mxu0 %v8051_v57 }
 0x4b1   :  { %6249 = vmatprep.subr.bf16.mxu1 %v8056_v58  ;;  %6413 = vmatprep.subr.bf16.mxu0 %v8059_v61 }
 0x4b4   :  { %6250 = vmatpush1.bf16.msra.mxu1 %v8054_v2  ;;  %6414 = vmatpush1.bf16.msra.mxu0 %v8057_v3 }
 0x4b5   :  { %6251 = vmatprep.subr.bf16.mxu1 %v8062_v5  ;;  %6415 = vmatprep.subr.bf16.mxu0 %v8065_v8 }
 0x4b8   :  { %6252 = vmatpush1.bf16.msra.mxu1 %v8060_v9  ;;  %6416 = vmatpush1.bf16.msra.mxu0 %v8063_v11 }
 0x4b9   :  { %6253 = vmatprep.subr.bf16.mxu1 %v8068_v14  ;;  %6417 = vmatprep.subr.bf16.mxu0 %v8071_v7 }
 0x4bc   :  { %6254 = vmatpush1.bf16.msra.mxu1 %v8066_v15  ;;  %6418 = vmatpush1.bf16.msra.mxu0 %v8069_v10 }
 0x4bd   :  { %6264 = vmatprep.subr.bf16.mxu1 %v8074_v16  ;;  %6428 = vmatprep.subr.bf16.mxu0 %v8077_v34 }
 0x4fd   :  { %v10127_v31 = vpop.f32.mrb[8].mxu1 }
 0x4fe   :  { %v2983_v36 = vrot.slane %v10127_v31, 4  ;;  %v3019_v54 = vmul.f32 %v10127_v31, %v10127_v31  ;;  %v10132_v4 = vpop.f32.mrb[16].mxu0  ;;  %v10134_v62 = vpop.f32.mrb[9].mxu1 }
 0x4ff   :  { %v2995_v49 = vrot.slane %v10132_v4, 4  ;;  %v3021_v17 = vmul.f32 %v10132_v4, %v10132_v4  ;;  %v2989_v20 = vrot.slane %v10134_v62, 4  ;;  %v3020_v22 = vmul.f32 %v10134_v62, %v10134_v62  ;;  %v10142_v28 = vpop.f32.mrb[17].mxu0  ;;  %v2866_v32 = vpop.f32.mrb[10].mxu1 }
 0x500   :  { %v2984_v29 = vadd.f32 %v2983_v36, %v10127_v31  ;;  %v3047_v35 = vrot.slane %v3019_v54, 4  ;;  %v3001_v37 = vrot.slane %v10142_v28, 4  ;;  %v3022_v38 = vmul.f32 %v10142_v28, %v10142_v28  ;;  %v2948_v39 = vpop.f32.mrb[18].mxu0  ;;  %v2867_v40 = vpop.f32.mrb[11].mxu1 }
 0x501   :  { %v2996_v41 = vadd.f32 %v2995_v49, %v10132_v4  ;;  %v3059_v43 = vrot.slane %v3021_v17, 4  ;;  %v2990_v44 = vadd.f32 %v2989_v20, %v10134_v62  ;;  %v3053_v45 = vrot.slane %v3020_v22, 4  ;;  %v2949_v46 = vpop.f32.mrb[19].mxu0 }
 0x502   :  { %v2985_v52 = vrot.slane %v2984_v29, 2  ;;  %v3048_v63 = vadd.f32 %v3047_v35, %v3019_v54  ;;  %v3002_v0 = vadd.f32 %v3001_v37, %v10142_v28  ;;  %v3065_v1 = vrot.slane %v3022_v38, 4 }
 0x503   :  { %v2997_v6 = vrot.slane %v2996_v41, 2  ;;  %v3060_v12 = vadd.f32 %v3059_v43, %v3021_v17  ;;  %v2991_v13 = vrot.slane %v2990_v44, 2  ;;  %v3054_v55 = vadd.f32 %v3053_v45, %v3020_v22 }
 0x504   :  { %v2986_v48 = vadd.f32 %v2985_v52, %v2984_v29  ;;  %v3049_v56 = vrot.slane %v3048_v63, 2  ;;  %v3003_v57 = vrot.slane %v3002_v0, 2  ;;  %v3066_v58 = vadd.f32 %v3065_v1, %v3022_v38 }
 0x505   :  { %v2998_v61 = vadd.f32 %v2997_v6, %v2996_v41  ;;  %v3061_v2 = vrot.slane %v3060_v12, 2  ;;  %v2992_v3 = vadd.f32 %v2991_v13, %v2990_v44  ;;  %v3055_v5 = vrot.slane %v3054_v55, 2 }
 0x506   :  { %v2987_v8 = vrot.slane %v2986_v48, 1  ;;  %v3050_v9 = vadd.f32 %v3049_v56, %v3048_v63  ;;  %v3004_v11 = vadd.f32 %v3003_v57, %v3002_v0  ;;  %v3067_v14 = vrot.slane %v3066_v58, 2 }
 0x507   :  { %v2999_v15 = vrot.slane %v2998_v61, 1  ;;  %v3062_v7 = vadd.f32 %v3061_v2, %v3060_v12  ;;  %v2993_v10 = vrot.slane %v2992_v3, 1  ;;  %v3056_v16 = vadd.f32 %v3055_v5, %v3054_v55 }
 0x508   :  { %v2988_v34 = vadd.f32 %v2987_v8, %v2986_v48  ;;  %v3051_v36 = vrot.slane %v3050_v9, 1  ;;  %v3005_v54 = vrot.slane %v3004_v11, 1  ;;  %v3068_v49 = vadd.f32 %v3067_v14, %v3066_v58 }
 0x509   :  { %v3000_v17 = vadd.f32 %v2999_v15, %v2998_v61  ;;  %v3063_v20 = vrot.slane %v3062_v7, 1  ;;  %v2994_v22 = vadd.f32 %v2993_v10, %v2992_v3  ;;  %v3057_v32 = vrot.slane %v3056_v16, 1  ;;  %v7244_v10 = vld [vmem:[%s11478_s6 + $0x4] ss:$8 sm:$0xf] }
 0x50a   :  { %v3011_v29 = vmul.f32 0.125, %v2988_v34  ;;  %v3052_v35 = vadd.f32 %v3051_v36, %v3050_v9  ;;  %v3006_v37 = vadd.f32 %v3005_v54, %v3004_v11  ;;  %v3069_v38 = vrot.slane %v3068_v49, 1 }
 0x50b   :  { %v3013_v39 = vmul.f32 0.125, %v3000_v17  ;;  %v3064_v40 = vadd.f32 %v3063_v20, %v3062_v7  ;;  %v3012_v41 = vmul.f32 0.125, %v2994_v22  ;;  %v3058_v43 = vadd.f32 %v3057_v32, %v3056_v16  ;;  %v7245_v16 = vld [vmem:[%s11478_s6 + $0x4] ss:$8 sm:$0xf0] }
 0x50c   :  { %v3075_v44 = vmul.f32 0.125, %v3052_v35  ;;  %v3083_v45 = vmul.f32 %v3011_v29, %v3011_v29  ;;  %v3014_v46 = vmul.f32 0.125, %v3006_v37  ;;  %v3070_v52 = vadd.f32 %v3069_v38, %v3068_v49 }
 0x50d   :  { %v3077_v63 = vmul.f32 0.125, %v3064_v40  ;;  %v3085_v0 = vmul.f32 %v3013_v39, %v3013_v39  ;;  %v3076_v1 = vmul.f32 0.125, %v3058_v43  ;;  %v3084_v6 = vmul.f32 %v3012_v41, %v3012_v41 }
 0x50e   :  { %v3091_v12 = vsub.f32 %v3075_v44, %v3083_v45  ;;  %v3078_v13 = vmul.f32 0.125, %v3070_v52  ;;  %v3086_v55 = vmul.f32 %v3014_v46, %v3014_v46  ;;  %v3159_v54 = vrot.slane %v3151_v30, %v8886_v53 }
 0x50f   :  { %v3093_v48 = vsub.f32 %v3077_v63, %v3085_v0  ;;  %v3092_v56 = vsub.f32 %v3076_v1, %v3084_v6  ;;  %v2954_v49 = vor.u32 %v7245_v16, %v7244_v10  ;;  %v10165_v22 = vsub.s32 4, %v8883_v51 }
 0x510   :  { %v3099_v57 = vadd.f32 1e-05, %v3091_v12  ;;  %v3094_v58 = vsub.f32 %v3078_v13, %v3086_v55  ;;  %v10168_v32 = vsub.s32 5, %v8883_v51  ;;  %v10171_v35 = vsub.s32 6, %v8883_v51 }
 0x511   :  { %v3101_v61 = vadd.f32 1e-05, %v3093_v48  ;;  %v3100_v2 = vadd.f32 1e-05, %v3092_v56  ;;  %v3201_v37 = vsub.s32 7, %v8883_v51 }
 0x512   :  { %8636 = vrsqrt.f32 %v3099_v57  ;;  %v3102_v3 = vadd.f32 1e-05, %v3094_v58 }
 0x513   :  { %8638 = vrsqrt.f32 %v3101_v61 }
 0x514   :  { %8640 = vrsqrt.f32 %v3100_v2 }
 0x515   :  { %8642 = vrsqrt.f32 %v3102_v3 }
 0x51c   :  { %v8637_v5 = vpop.eup %8636 }
 0x51d   :  { %v8639_v8 = vpop.eup %8638 }
 0x51e   :  { %v8641_v9 = vpop.eup %8640 }
 0x51f   :  { %v8643_v11 = vpop.eup %8642  ;;  %v3121_v14 = vcombine.low %v8637_v5, %v8641_v9 }
 0x520   :  { %v3122_v15 = vcombine.low %v8639_v8, %v8643_v11 }
 0x521   :  { %v3143_v7 = vrot.slane %v3121_v14, %v8886_v53 }
 0x522   :  { %v3150_v34 = vrot.slane %v3122_v15, %v8886_v53 }
 0x524   :  { %v3152_v36 = vcombine.low %v3143_v7, %v3150_v34 }
 0x526   :  { %v3166_v17 = vrot.slane %v3152_v36, %v8886_v53 }
 0x528   :  { %v3167_v20 = vcombine.low %v3159_v54, %v3166_v17 }
 0x52a   :  { %v3169_v38 = vmul.f32 %v3167_v20, %v2954_v49 }
 0x52c   :  { %v3174_v40 = vrot.slane %v3169_v38, %v8894_v59  ;;  %v3178_v23 = vrot.slane %v3169_v38, %v8897_v60  ;;  %v3182_v21 = vrot.slane %v3169_v38, %v9258_v47  ;;  %v3186_v30 = vrot.slane %v3169_v38, %v9261_v50 }
 0x52d   :  { %v3190_v43 = vrot.slane %v3169_v38, %v10165_v22  ;;  %v3194_v44 = vrot.slane %v3169_v38, %v10168_v32  ;;  %v3198_v45 = vrot.slane %v3169_v38, %v10171_v35  ;;  %v3202_v52 = vrot.slane %v3169_v38, %v3201_v37 }
 0x52e   :  { %v3211_v63 = vmul.f32 %v3174_v40, %v9920_v24  ;;  %v3212_v51 = vmul.f32 %v3178_v23, %v9930_v42  ;;  %v3213_v0 = vmul.f32 %v3182_v21, %v9922_v27  ;;  %v3214_v1 = vmul.f32 %v3186_v30, %v9932_v33  ;;  %v7246_v27 = vld [vmem:[%s11478_s6 + $0x5] ss:$8 sm:$0xf] }
 0x52f   :  { %v3215_v6 = vmul.f32 %v3190_v43, %v3011_v29  ;;  %v3216_v12 = vmul.f32 %v3194_v44, %v3012_v41  ;;  %v3217_v13 = vmul.f32 %v3198_v45, %v3013_v39  ;;  %v3218_v55 = vmul.f32 %v3202_v52, %v3014_v46  ;;  %v7247_v33 = vld [vmem:[%s11478_s6 + $0x5] ss:$8 sm:$0xf0] }
 0x530   :  { %v3227_v48 = vcombine.low %v3211_v63, %v3212_v51  ;;  %v3228_v56 = vcombine.low %v3213_v0, %v3214_v1  ;;  %v3285_v57 = vmul.f32 %v3202_v52, %v10142_v28  ;;  %v3279_v58 = vmul.f32 %v3178_v23, %v9891_v25  ;;  %v8075_v52 = vld [vmem:[%s11480_s5 + $0x388] ss:$28 sps:$4 sm:$0xff]   ;;  %v8080_v0 = vld [vmem:[%s11480_s5 + $0x3bc] ss:$28 sps:$4 sm:$0xff]  }
 0x531   :  { %v3229_v61 = vcombine.low %v3215_v6, %v3216_v12  ;;  %v3230_v2 = vcombine.low %v3217_v13, %v3218_v55  ;;  %v3278_v24 = vmul.f32 %v3174_v40, %v9881_v18  ;;  %v3281_v42 = vmul.f32 %v3186_v30, %v9893_v26  ;;  %v8083_v1 = vld [vmem:[%s11480_s5 + $0x3c4] ss:$28 sps:$4 sm:$0xff]   ;;  %v8078_v12 = vld [vmem:[%s11480_s5 + $0x3b8] ss:$28 sps:$4 sm:$0xff]  }
 0x532   :  { %v3237_v29 = vrot.slane %v3227_v48, %v8886_v53  ;;  %v3244_v28 = vrot.slane %v3228_v56, %v8886_v53  ;;  %v3280_v25 = vmul.f32 %v3182_v21, %v9883_v19  ;;  %v3283_v39 = vmul.f32 %v3194_v44, %v10134_v62  ;;  %v8081_v13 = vld [vmem:[%s11480_s5 + $0x3c0] ss:$28 sps:$4 sm:$0xff]   ;;  %v8086_v55 = vld [vmem:[%s11480_s5 + $0x3f4] ss:$28 sps:$4 sm:$0xff]  }
 0x533   :  { %v3251_v18 = vrot.slane %v3229_v61, %v8886_v53  ;;  %v3258_v26 = vrot.slane %v3230_v2, %v8886_v53  ;;  %v3282_v41 = vmul.f32 %v3190_v43, %v10127_v31  ;;  %v3284_v46 = vmul.f32 %v3198_v45, %v10132_v4  ;;  %v8072_v45 = vld [vmem:[%s11480_s5 + $0x380] ss:$28 sps:$4 sm:$0xff]   ;;  %v8084_v56 = vld [vmem:[%s11480_s5 + $0x3f0] ss:$28 sps:$4 sm:$0xff]   ;;  %v8090_v2 = vld [vmem:[%s11480_s5 + $0x428] ss:$28 sps:$4 sm:$0xff]  }
 0x534   :  { %v3259_v3 = vcombine.low %v3237_v29, %v3244_v28  ;;  %v2958_v9 = vor.u32 %v7247_v33, %v7246_v27  ;;  %v8089_v48 = vld [vmem:[%s11480_s5 + $0x3fc] ss:$28 sps:$4 sm:$0xff]   ;;  %v8095_v61 = vld [vmem:[%s11480_s5 + $0x434] ss:$28 sps:$4 sm:$0xff]   ;;  %v8101_v27 = vld [vmem:[%s11480_s5 + $0x46c] ss:$28 sps:$4 sm:$0xff]  }
 0x535   :  { %v3260_v5 = vcombine.low %v3251_v18, %v3258_v26  ;;  %v8096_v33 = vld [vmem:[%s11480_s5 + $0x460] ss:$28 sps:$4 sm:$0xff]   ;;  %v8099_v29 = vld [vmem:[%s11480_s5 + $0x468] ss:$28 sps:$4 sm:$0xff]   ;;  %v8110_v26 = vld [vmem:[%s11480_s5 + $0x4d4] ss:$28 sps:$4 sm:$0xff]  }
 0x536   :  { %v3267_v8 = vrot.slane %v3259_v3, %v8886_v53  ;;  %v8104_v28 = vld [vmem:[%s11480_s5 + $0x49c] ss:$28 sps:$4 sm:$0xff]  }
 0x537   :  { %v3274_v11 = vrot.slane %v3260_v5, %v8886_v53  ;;  %v8105_v18 = vld [vmem:[%s11480_s5 + $0x4a0] ss:$28 sps:$4 sm:$0xff]   ;;  %v8111_v3 = vld [vmem:[%s11480_s5 + $0x4d8] ss:$28 sps:$4 sm:$0xff]   ;;  %v8116_v5 = vld [vmem:[%s11480_s5 + $0x50c] ss:$28 sps:$4 sm:$0xff]  }
 0x539   :  { %v3275_v14 = vcombine.low %v3267_v8, %v3274_v11  ;;  %v8119_v8 = vld [vmem:[%s11480_s5 + $0x514] ss:$28 sps:$4 sm:$0xff]  }
 0x53a   :  { %v8117_v11 = vld [vmem:[%s11480_s5 + $0x510] ss:$28 sps:$4 sm:$0xff]  }
 0x53b   :  { %v3277_v15 = vsub.f32 %v2958_v9, %v3275_v14  ;;  %v8114_v9 = vld [vmem:[%s11480_s5 + $0x508] ss:$28 sps:$4 sm:$0xff]  }
 0x53c   :  { %v8122_v14 = vld [vmem:[%s11480_s5 + $0x544] ss:$28 sps:$4 sm:$0xff]  }
 0x53d   :  { %v3318_v19 = vrot.slane %v3277_v15, %v3201_v37  ;;  %v3294_v62 = vrot.slane %v3277_v15, %v8897_v60  ;;  %v3290_v7 = vrot.slane %v3277_v15, %v8894_v59  ;;  %v3302_v10 = vrot.slane %v3277_v15, %v9261_v50 }
 0x53e   :  { %v3298_v31 = vrot.slane %v3277_v15, %v9258_v47  ;;  %v3310_v4 = vrot.slane %v3277_v15, %v10168_v32  ;;  %v3306_v16 = vrot.slane %v3277_v15, %v10165_v22  ;;  %v3314_v34 = vrot.slane %v3277_v15, %v10171_v35  ;;  %v8125_v15 = vld [vmem:[%s11480_s5 + $0x54c] ss:$28 sps:$4 sm:$0xff]  }
 0x53f   :  { %v10212_v36 = vadd.f32 %v3318_v19, %v3285_v57  ;;  %v3328_v53 = vadd.f32 %v3294_v62, %v3279_v58  ;;  %v3327_v54 = vadd.f32 %v3290_v7, %v3278_v24  ;;  %v3330_v49 = vadd.f32 %v3302_v10, %v3281_v42  ;;  %v8087_v57 = vld [vmem:[%s11480_s5 + $0x3f8] ss:$28 sps:$4 sm:$0xff]   ;;  %v8092_v58 = vld [vmem:[%s11480_s5 + $0x42c] ss:$28 sps:$4 sm:$0xff]   ;;  %v8098_v42 = vld [vmem:[%s11480_s5 + $0x464] ss:$28 sps:$4 sm:$0xff]  }
 0x540   :  { %v10214_v17 = vadd.f32 %v3298_v31, %v3280_v25  ;;  %v10216_v20 = vadd.f32 %v3310_v4, %v3283_v39  ;;  %v10218_v37 = vadd.f32 %v3306_v16, %v3282_v41  ;;  %v10220_v38 = vadd.f32 %v3314_v34, %v3284_v46  ;;  %v8093_v24 = vld [vmem:[%s11480_s5 + $0x430] ss:$28 sps:$4 sm:$0xff]   ;;  %v8107_v25 = vld [vmem:[%s11480_s5 + $0x4a4] ss:$28 sps:$4 sm:$0xff]   ;;  %v8102_v39 = vld [vmem:[%s11480_s5 + $0x498] ss:$28 sps:$4 sm:$0xff]  }
 0x541   :  { %vm3336_vm8 = vcmp.gt.f32.partialorder %v3328_v53, 0.0  ;;  %v3344_v40 = vmul.f32 0.2, %v3328_v53  ;;  %vm3335_vm9 = vcmp.gt.f32.partialorder %v3327_v54, 0.0  ;;  %v3343_v23 = vmul.f32 0.2, %v3327_v54 }
 0x542   :  { %vm3338_vm10 = vcmp.gt.f32.partialorder %v3330_v49, 0.0  ;;  %v3346_v21 = vmul.f32 0.2, %v3330_v49  ;;  %v8113_v41 = vld [vmem:[%s11480_s5 + $0x4dc] ss:$28 sps:$4 sm:$0xff]   ;;  %vm3337_vm11 = vcmp.gt.f32.partialorder %v10214_v17, 0.0 }
 0x543   :  { %v3352_v30 = vsel %vm3336_vm8, %v3328_v53, %v3344_v40  ;;  %v3351_v43 = vsel %vm3335_vm9, %v3327_v54, %v3343_v23  ;;  %v8108_v46 = vld [vmem:[%s11480_s5 + $0x4d0] ss:$28 sps:$4 sm:$0xff]   ;;  %v8120_v19 = vld [vmem:[%s11480_s5 + $0x540] ss:$28 sps:$4 sm:$0xff]   ;;  %v8123_v62 = vld [vmem:[%s11480_s5 + $0x548] ss:$28 sps:$4 sm:$0xff]  }
 0x544   :  { %v10222_v44 = vpack.c.bf16 %v3352_v30, %v3352_v30  ;;  %v10230_v63 = vpack.c.bf16 %v3351_v43, %v3351_v43  ;;  %v3354_v51 = vsel %vm3338_vm10, %v3330_v49, %v3346_v21  ;;  %v8128_v7 = vld [vmem:[%s11480_s5 + $0x57c] ss:$28 sps:$4 sm:$0xff]   ;;  %v8131_v10 = vld [vmem:[%s11480_s5 + $0x584] ss:$28 sps:$4 sm:$0xff]   ;;  %v8134_v16 = vld [vmem:[%s11480_s5 + $0x5b4] ss:$28 sps:$4 sm:$0xff]  }
 0x545   :  { %v10242_v6 = vpack.c.bf16 %v3354_v51, %v3354_v51  ;;  %v8126_v31 = vld [vmem:[%s11480_s5 + $0x578] ss:$28 sps:$4 sm:$0xff]   ;;  %v8129_v4 = vld [vmem:[%s11480_s5 + $0x580] ss:$28 sps:$4 sm:$0xff]   ;;  %v8132_v53 = vld [vmem:[%s11480_s5 + $0x5b0] ss:$28 sps:$4 sm:$0xff]  }
 0x546   :  { %6255 = vmatprep.mubr.bf16.mxu1 %v10222_v44  ;;  %6419 = vmatprep.mubr.bf16.mxu0 %v10222_v44  ;;  %v8137_v34 = vld [vmem:[%s11480_s5 + $0x5bc] ss:$28 sps:$4 sm:$0xff]   ;;  %v8140_v49 = vld [vmem:[%s11480_s5 + $0x5ec] ss:$28 sps:$4 sm:$0xff]   ;;  %v8143_v40 = vld [vmem:[%s11480_s5 + $0x5f4] ss:$28 sps:$4 sm:$0xff]  }
 0x547   :  { %6256 = vmatmul.mubr.bf16.vlgmr.msra.gmra.mrb[12].mxu1 %v10230_v63  ;;  %6420 = vmatmul.mubr.bf16.vlgmr.msra.gmra.mrb[20].mxu0 %v10230_v63  ;;  %v8135_v54 = vld [vmem:[%s11480_s5 + $0x5b8] ss:$28 sps:$4 sm:$0xff]   ;;  %v8138_v23 = vld [vmem:[%s11480_s5 + $0x5e8] ss:$28 sps:$4 sm:$0xff]   ;;  %v8141_v21 = vld [vmem:[%s11480_s5 + $0x5f0] ss:$28 sps:$4 sm:$0xff]  }
 0x548   :  { %6265 = vmatpush1.bf16.msra.mxu1 %v8072_v45  ;;  %6429 = vmatpush1.bf16.msra.mxu0 %v8075_v52  ;;  %v8146_v30 = vld [vmem:[%s11480_s5 + $0x624] ss:$28 sps:$4 sm:$0xff]   ;;  %v8149_v43 = vld [vmem:[%s11480_s5 + $0x62c] ss:$28 sps:$4 sm:$0xff]   ;;  %v8152_v51 = vld [vmem:[%s11480_s5 + $0x65c] ss:$28 sps:$4 sm:$0xff]  }
 0x549   :  { %6296 = vmatprep.mubr.bf16.mxu1 %v10242_v6  ;;  %6460 = vmatprep.mubr.bf16.mxu0 %v10242_v6  ;;  %v8144_v45 = vld [vmem:[%s11480_s5 + $0x620] ss:$28 sps:$4 sm:$0xff]   ;;  %v8147_v52 = vld [vmem:[%s11480_s5 + $0x628] ss:$28 sps:$4 sm:$0xff]   ;;  %vm3340_vm12 = vcmp.gt.f32.partialorder %v10216_v20, 0.0  ;;  %vm3339_vm13 = vcmp.gt.f32.partialorder %v10218_v37, 0.0 }
 0x54a   :  { %6266 = vmatprep.subr.bf16.mxu1 %v8080_v0  ;;  %6430 = vmatprep.subr.bf16.mxu0 %v8083_v1  ;;  %v8155_v0 = vld [vmem:[%s11480_s5 + $0x664] ss:$28 sps:$4 sm:$0xff]   ;;  %v8150_v1 = vld [vmem:[%s11480_s5 + $0x658] ss:$28 sps:$4 sm:$0xff]   ;;  %vm3342_vm14 = vcmp.gt.f32.partialorder %v10212_v36, 0.0  ;;  %vm3341_vm15 = vcmp.gt.f32.partialorder %v10220_v38, 0.0 }
 0x54c   :  { %6267 = vmatpush1.bf16.msra.mxu1 %v8078_v12  ;;  %6431 = vmatpush1.bf16.msra.mxu0 %v8081_v13  ;;  %v8153_v12 = vld [vmem:[%s11480_s5 + $0x660] ss:$28 sps:$4 sm:$0xff]   ;;  %v8158_v13 = vld [vmem:[%s11480_s5 + $0x694] ss:$28 sps:$4 sm:$0xff]  }
 0x54d   :  { %6268 = vmatprep.subr.bf16.mxu1 %v8086_v55  ;;  %6432 = vmatprep.subr.bf16.mxu0 %v8089_v48  ;;  %v8161_v55 = vld [vmem:[%s11480_s5 + $0x69c] ss:$28 sps:$4 sm:$0xff]   ;;  %v8156_v48 = vld [vmem:[%s11480_s5 + $0x690] ss:$28 sps:$4 sm:$0xff]  }
 0x550   :  { %6269 = vmatpush1.bf16.msra.mxu1 %v8084_v56  ;;  %6433 = vmatpush1.bf16.msra.mxu0 %v8087_v57  ;;  %v8159_v56 = vld [vmem:[%s11480_s5 + $0x698] ss:$28 sps:$4 sm:$0xff]   ;;  %v8164_v57 = vld [vmem:[%s11480_s5 + $0x6cc] ss:$28 sps:$4 sm:$0xff]  }
 0x551   :  { %6270 = vmatprep.subr.bf16.mxu1 %v8092_v58  ;;  %6434 = vmatprep.subr.bf16.mxu0 %v8095_v61  ;;  %v8167_v58 = vld [vmem:[%s11480_s5 + $0x6d4] ss:$28 sps:$4 sm:$0xff]   ;;  %v8162_v61 = vld [vmem:[%s11480_s5 + $0x6c8] ss:$28 sps:$4 sm:$0xff]  }
 0x554   :  { %6271 = vmatpush1.bf16.msra.mxu1 %v8090_v2  ;;  %6435 = vmatpush1.bf16.msra.mxu0 %v8093_v24  ;;  %v8165_v2 = vld [vmem:[%s11480_s5 + $0x6d0] ss:$28 sps:$4 sm:$0xff]   ;;  %v3345_v24 = vmul.f32 0.2, %v10214_v17 }
 0x555   :  { %6272 = vmatprep.subr.bf16.mxu1 %v8098_v42  ;;  %6436 = vmatprep.subr.bf16.mxu0 %v8101_v27  ;;  %v3348_v42 = vmul.f32 0.2, %v10216_v20  ;;  %v8170_v27 = vld [vmem:[%s11480_s5 + $0x704] ss:$28 sps:$4 sm:$0xff]  }
 0x558   :  { %6273 = vmatpush1.bf16.msra.mxu1 %v8096_v33  ;;  %6437 = vmatpush1.bf16.msra.mxu0 %v8099_v29  ;;  %v8173_v33 = vld [vmem:[%s11480_s5 + $0x70c] ss:$28 sps:$4 sm:$0xff]   ;;  %v3353_v29 = vsel %vm3337_vm11, %v10214_v17, %v3345_v24  ;;  %v8179_v17 = vld [vmem:[%s11480_s5 + $0x744] ss:$28 sps:$4 sm:$0xff]   ;;  %v8239_v24 = vld [vmem:[%s11480_s5 + $0x974] ss:$28 sps:$4 sm:$0xff]  }
 0x559   :  { %6274 = vmatprep.subr.bf16.mxu1 %v8104_v28  ;;  %6438 = vmatprep.subr.bf16.mxu0 %v8107_v25  ;;  %v8168_v28 = vld [vmem:[%s11480_s5 + $0x700] ss:$28 sps:$4 sm:$0xff]   ;;  %v8171_v25 = vld [vmem:[%s11480_s5 + $0x708] ss:$28 sps:$4 sm:$0xff]  }
 0x55c   :  { %6275 = vmatpush1.bf16.msra.mxu1 %v8102_v39  ;;  %6439 = vmatpush1.bf16.msra.mxu0 %v8105_v18  ;;  %v3356_v39 = vsel %vm3340_vm12, %v10216_v20, %v3348_v42  ;;  %v8176_v18 = vld [vmem:[%s11480_s5 + $0x73c] ss:$28 sps:$4 sm:$0xff]   ;;  %v8234_v42 = vld [vmem:[%s11480_s5 + $0x968] ss:$28 sps:$4 sm:$0xff]  }
 0x55d   :  { %6276 = vmatprep.subr.bf16.mxu1 %v8110_v26  ;;  %6440 = vmatprep.subr.bf16.mxu0 %v8113_v41  ;;  %v10444_v26 = vpack.c.bf16 %v3353_v29, %v3353_v29  ;;  %v10446_v41 = vpack.c.bf16 %v3356_v39, %v3356_v39  ;;  %v8174_v20 = vld [vmem:[%s11480_s5 + $0x738] ss:$28 sps:$4 sm:$0xff]   ;;  %v8245_v29 = vld [vmem:[%s11480_s5 + $0x9ac] ss:$28 sps:$4 sm:$0xff]  }
 0x55e   :  { %v8248_v39 = vld [vmem:[%s11480_s5 + $0x9dc] ss:$28 sps:$4 sm:$0xff]  }
 0x560   :  { %6277 = vmatpush1.bf16.msra.mxu1 %v8108_v46  ;;  %6441 = vmatpush1.bf16.msra.mxu0 %v8111_v3  ;;  %v8177_v46 = vld [vmem:[%s11480_s5 + $0x740] ss:$28 sps:$4 sm:$0xff]   ;;  %v8182_v3 = vld [vmem:[%s11480_s5 + $0x774] ss:$28 sps:$4 sm:$0xff]  }
 0x561   :  { %6278 = vmatprep.subr.bf16.mxu1 %v8116_v5  ;;  %6442 = vmatprep.subr.bf16.mxu0 %v8119_v8  ;;  %v8185_v5 = vld [vmem:[%s11480_s5 + $0x77c] ss:$28 sps:$4 sm:$0xff]   ;;  %v8180_v8 = vld [vmem:[%s11480_s5 + $0x770] ss:$28 sps:$4 sm:$0xff]  }
 0x564   :  { %6279 = vmatpush1.bf16.msra.mxu1 %v8114_v9  ;;  %6443 = vmatpush1.bf16.msra.mxu0 %v8117_v11  ;;  %v8183_v9 = vld [vmem:[%s11480_s5 + $0x778] ss:$28 sps:$4 sm:$0xff]   ;;  %v8188_v11 = vld [vmem:[%s11480_s5 + $0x7ac] ss:$28 sps:$4 sm:$0xff]  }
 0x565   :  { %6280 = vmatprep.subr.bf16.mxu1 %v8122_v14  ;;  %6444 = vmatprep.subr.bf16.mxu0 %v8125_v15  ;;  %v8191_v14 = vld [vmem:[%s11480_s5 + $0x7b4] ss:$28 sps:$4 sm:$0xff]   ;;  %v8186_v15 = vld [vmem:[%s11480_s5 + $0x7a8] ss:$28 sps:$4 sm:$0xff]  }
 0x568   :  { %6281 = vmatpush1.bf16.msra.mxu1 %v8120_v19  ;;  %6445 = vmatpush1.bf16.msra.mxu0 %v8123_v62  ;;  %v8189_v19 = vld [vmem:[%s11480_s5 + $0x7b0] ss:$28 sps:$4 sm:$0xff]   ;;  %v8194_v62 = vld [vmem:[%s11480_s5 + $0x7e4] ss:$28 sps:$4 sm:$0xff]  }
 0x569   :  { %6282 = vmatprep.subr.bf16.mxu1 %v8128_v7  ;;  %6446 = vmatprep.subr.bf16.mxu0 %v8131_v10  ;;  %v8197_v7 = vld [vmem:[%s11480_s5 + $0x7ec] ss:$28 sps:$4 sm:$0xff]   ;;  %v8192_v10 = vld [vmem:[%s11480_s5 + $0x7e0] ss:$28 sps:$4 sm:$0xff]  }
 0x56c   :  { %6283 = vmatpush1.bf16.msra.mxu1 %v8126_v31  ;;  %6447 = vmatpush1.bf16.msra.mxu0 %v8129_v4  ;;  %v8195_v31 = vld [vmem:[%s11480_s5 + $0x7e8] ss:$28 sps:$4 sm:$0xff]   ;;  %v8200_v4 = vld [vmem:[%s11480_s5 + $0x81c] ss:$28 sps:$4 sm:$0xff]  }
 0x56d   :  { %6284 = vmatprep.subr.bf16.mxu1 %v8134_v16  ;;  %6448 = vmatprep.subr.bf16.mxu0 %v8137_v34  ;;  %v8203_v16 = vld [vmem:[%s11480_s5 + $0x824] ss:$28 sps:$4 sm:$0xff]   ;;  %v8198_v34 = vld [vmem:[%s11480_s5 + $0x818] ss:$28 sps:$4 sm:$0xff]  }
 0x570   :  { %6285 = vmatpush1.bf16.msra.mxu1 %v8132_v53  ;;  %6449 = vmatpush1.bf16.msra.mxu0 %v8135_v54  ;;  %v8201_v53 = vld [vmem:[%s11480_s5 + $0x820] ss:$28 sps:$4 sm:$0xff]   ;;  %v8206_v54 = vld [vmem:[%s11480_s5 + $0x854] ss:$28 sps:$4 sm:$0xff]  }
 0x571   :  { %6286 = vmatprep.subr.bf16.mxu1 %v8140_v49  ;;  %6450 = vmatprep.subr.bf16.mxu0 %v8143_v40  ;;  %v8209_v49 = vld [vmem:[%s11480_s5 + $0x85c] ss:$28 sps:$4 sm:$0xff]   ;;  %v8204_v40 = vld [vmem:[%s11480_s5 + $0x850] ss:$28 sps:$4 sm:$0xff]  }
 0x574   :  { %6287 = vmatpush1.bf16.msra.mxu1 %v8138_v23  ;;  %6451 = vmatpush1.bf16.msra.mxu0 %v8141_v21  ;;  %v8207_v23 = vld [vmem:[%s11480_s5 + $0x858] ss:$28 sps:$4 sm:$0xff]   ;;  %v8212_v21 = vld [vmem:[%s11480_s5 + $0x88c] ss:$28 sps:$4 sm:$0xff]  }
 0x575   :  { %6288 = vmatprep.subr.bf16.mxu1 %v8146_v30  ;;  %6452 = vmatprep.subr.bf16.mxu0 %v8149_v43  ;;  %v8215_v30 = vld [vmem:[%s11480_s5 + $0x894] ss:$28 sps:$4 sm:$0xff]   ;;  %v8210_v43 = vld [vmem:[%s11480_s5 + $0x888] ss:$28 sps:$4 sm:$0xff]  }
 0x578   :  { %6289 = vmatpush1.bf16.msra.mxu1 %v8144_v45  ;;  %6453 = vmatpush1.bf16.msra.mxu0 %v8147_v52  ;;  %v8213_v45 = vld [vmem:[%s11480_s5 + $0x890] ss:$28 sps:$4 sm:$0xff]   ;;  %v8218_v52 = vld [vmem:[%s11480_s5 + $0x8c4] ss:$28 sps:$4 sm:$0xff]  }
 0x579   :  { %6290 = vmatprep.subr.bf16.mxu1 %v8152_v51  ;;  %6454 = vmatprep.subr.bf16.mxu0 %v8155_v0  ;;  %v8221_v51 = vld [vmem:[%s11480_s5 + $0x8cc] ss:$28 sps:$4 sm:$0xff]   ;;  %v8216_v0 = vld [vmem:[%s11480_s5 + $0x8c0] ss:$28 sps:$4 sm:$0xff]  }
 0x57c   :  { %6291 = vmatpush1.bf16.msra.mxu1 %v8150_v1  ;;  %6455 = vmatpush1.bf16.msra.mxu0 %v8153_v12  ;;  %v8219_v1 = vld [vmem:[%s11480_s5 + $0x8c8] ss:$28 sps:$4 sm:$0xff]   ;;  %v8224_v12 = vld [vmem:[%s11480_s5 + $0x8fc] ss:$28 sps:$4 sm:$0xff]  }
 0x57d   :  { %6292 = vmatprep.subr.bf16.mxu1 %v8158_v13  ;;  %6456 = vmatprep.subr.bf16.mxu0 %v8161_v55  ;;  %v8227_v13 = vld [vmem:[%s11480_s5 + $0x904] ss:$28 sps:$4 sm:$0xff]   ;;  %v8222_v55 = vld [vmem:[%s11480_s5 + $0x8f8] ss:$28 sps:$4 sm:$0xff]  }
 0x580   :  { %6293 = vmatpush1.bf16.msra.mxu1 %v8156_v48  ;;  %6457 = vmatpush1.bf16.msra.mxu0 %v8159_v56  ;;  %v8225_v48 = vld [vmem:[%s11480_s5 + $0x900] ss:$28 sps:$4 sm:$0xff]   ;;  %v8230_v56 = vld [vmem:[%s11480_s5 + $0x934] ss:$28 sps:$4 sm:$0xff]  }
 0x581   :  { %6294 = vmatprep.subr.bf16.mxu1 %v8164_v57  ;;  %6458 = vmatprep.subr.bf16.mxu0 %v8167_v58  ;;  %v8233_v57 = vld [vmem:[%s11480_s5 + $0x93c] ss:$28 sps:$4 sm:$0xff]   ;;  %v8228_v58 = vld [vmem:[%s11480_s5 + $0x930] ss:$28 sps:$4 sm:$0xff]  }
 0x584   :  { %6295 = vmatpush1.bf16.msra.mxu1 %v8162_v61  ;;  %6459 = vmatpush1.bf16.msra.mxu0 %v8165_v2  ;;  %v8231_v61 = vld [vmem:[%s11480_s5 + $0x938] ss:$28 sps:$4 sm:$0xff]   ;;  %v8236_v2 = vld [vmem:[%s11480_s5 + $0x96c] ss:$28 sps:$4 sm:$0xff]  }
 0x585   :  { %6305 = vmatprep.subr.bf16.mxu1 %v8170_v27  ;;  %6469 = vmatprep.subr.bf16.mxu0 %v8173_v33  ;;  %v8237_v27 = vld [vmem:[%s11480_s5 + $0x970] ss:$28 sps:$4 sm:$0xff]   ;;  %v8242_v33 = vld [vmem:[%s11480_s5 + $0x9a4] ss:$28 sps:$4 sm:$0xff]  }
 0x587   :  { %6297 = vmatmul.mubr.bf16.vlgmr.msra.gmra.mrb[12].mxu1 %v10444_v26  ;;  %6461 = vmatmul.mubr.bf16.vlgmr.msra.gmra.mrb[20].mxu0 %v10444_v26 }
 0x588   :  { %6306 = vmatpush1.bf16.msra.mxu1 %v8168_v28  ;;  %6337 = vmatprep.mubr.bf16.mxu1 %v10446_v41  ;;  %v8240_v28 = vld [vmem:[%s11480_s5 + $0x9a0] ss:$28 sps:$4 sm:$0xff]  }
 0x589   :  { %6470 = vmatpush1.bf16.msra.mxu0 %v8171_v25  ;;  %6501 = vmatprep.mubr.bf16.mxu0 %v10446_v41  ;;  %v8243_v25 = vld [vmem:[%s11480_s5 + $0x9a8] ss:$28 sps:$4 sm:$0xff]  }
 0x58a   :  { %6307 = vmatprep.subr.bf16.mxu1 %v8176_v18  ;;  %6471 = vmatprep.subr.bf16.mxu0 %v8179_v17  ;;  %v8251_v18 = vld [vmem:[%s11480_s5 + $0x9e4] ss:$28 sps:$4 sm:$0xff]   ;;  %v8246_v17 = vld [vmem:[%s11480_s5 + $0x9d8] ss:$28 sps:$4 sm:$0xff]  }
 0x58c   :  { %6308 = vmatpush1.bf16.msra.mxu1 %v8174_v20  ;;  %v8249_v20 = vld [vmem:[%s11480_s5 + $0x9e0] ss:$28 sps:$4 sm:$0xff]  }
 0x58d   :  { %6472 = vmatpush1.bf16.msra.mxu0 %v8177_v46  ;;  %6309 = vmatprep.subr.bf16.mxu1 %v8182_v3  ;;  %v8254_v46 = vld [vmem:[%s11480_s5 + $0xa14] ss:$28 sps:$4 sm:$0xff]   ;;  %v8257_v3 = vld [vmem:[%s11480_s5 + $0xa1c] ss:$28 sps:$4 sm:$0xff]  }
 0x58e   :  { %6473 = vmatprep.subr.bf16.mxu0 %v8185_v5  ;;  %v8252_v5 = vld [vmem:[%s11480_s5 + $0xa10] ss:$28 sps:$4 sm:$0xff]  }
 0x590   :  { %6310 = vmatpush1.bf16.msra.mxu1 %v8180_v8  ;;  %v8255_v8 = vld [vmem:[%s11480_s5 + $0xa18] ss:$28 sps:$4 sm:$0xff]  }
 0x591   :  { %6474 = vmatpush1.bf16.msra.mxu0 %v8183_v9  ;;  %6311 = vmatprep.subr.bf16.mxu1 %v8188_v11  ;;  %v8260_v9 = vld [vmem:[%s11480_s5 + $0xa4c] ss:$28 sps:$4 sm:$0xff]   ;;  %v8263_v11 = vld [vmem:[%s11480_s5 + $0xa54] ss:$28 sps:$4 sm:$0xff]  }
 0x592   :  { %6475 = vmatprep.subr.bf16.mxu0 %v8191_v14  ;;  %v3347_v14 = vmul.f32 0.2, %v10218_v37 }
 0x594   :  { %6312 = vmatpush1.bf16.msra.mxu1 %v8186_v15  ;;  %v8258_v15 = vld [vmem:[%s11480_s5 + $0xa48] ss:$28 sps:$4 sm:$0xff]  }
 0x595   :  { %6476 = vmatpush1.bf16.msra.mxu0 %v8189_v19  ;;  %6313 = vmatprep.subr.bf16.mxu1 %v8194_v62  ;;  %v3350_v19 = vmul.f32 0.2, %v10212_v36  ;;  %v8261_v62 = vld [vmem:[%s11480_s5 + $0xa50] ss:$28 sps:$4 sm:$0xff]  }
 0x596   :  { %6477 = vmatprep.subr.bf16.mxu0 %v8197_v7  ;;  %v8266_v7 = vld [vmem:[%s11480_s5 + $0xa84] ss:$28 sps:$4 sm:$0xff]  }
 0x598   :  { %6314 = vmatpush1.bf16.msra.mxu1 %v8192_v10  ;;  %v3355_v10 = vsel %vm3339_vm13, %v10218_v37, %v3347_v14  ;;  %v8272_v37 = vld [vmem:[%s11480_s5 + $0xabc] ss:$28 sps:$4 sm:$0xff]  }
 0x599   :  { %6478 = vmatpush1.bf16.msra.mxu0 %v8195_v31  ;;  %6315 = vmatprep.subr.bf16.mxu1 %v8200_v4  ;;  %v8269_v31 = vld [vmem:[%s11480_s5 + $0xa8c] ss:$28 sps:$4 sm:$0xff]   ;;  %v8264_v4 = vld [vmem:[%s11480_s5 + $0xa80] ss:$28 sps:$4 sm:$0xff]   ;;  %v8327_v14 = vld [vmem:[%s11480_s5 + $0xcb8] ss:$28 sps:$4 sm:$0xff]  }
 0x59a   :  { %6479 = vmatprep.subr.bf16.mxu0 %v8203_v16  ;;  %v3358_v16 = vsel %vm3342_vm14, %v10212_v36, %v3350_v19  ;;  %v8275_v36 = vld [vmem:[%s11480_s5 + $0xac4] ss:$28 sps:$4 sm:$0xff]   ;;  %v8335_v19 = vld [vmem:[%s11480_s5 + $0xcf4] ss:$28 sps:$4 sm:$0xff]  }
 0x59c   :  { %6316 = vmatpush1.bf16.msra.mxu1 %v8198_v34  ;;  %v10641_v34 = vpack.c.bf16 %v3355_v10, %v3355_v10  ;;  %v8338_v10 = vld [vmem:[%s11480_s5 + $0xd24] ss:$28 sps:$4 sm:$0xff]  }
 0x59d   :  { %6480 = vmatpush1.bf16.msra.mxu0 %v8201_v53  ;;  %6317 = vmatprep.subr.bf16.mxu1 %v8206_v54  ;;  %v8267_v53 = vld [vmem:[%s11480_s5 + $0xa88] ss:$28 sps:$4 sm:$0xff]   ;;  %v10650_v54 = vpack.c.bf16 %v3358_v16, %v3358_v16 }
 0x59e   :  { %6481 = vmatprep.subr.bf16.mxu0 %v8209_v49  ;;  %v8270_v49 = vld [vmem:[%s11480_s5 + $0xab8] ss:$28 sps:$4 sm:$0xff]   ;;  %v8339_v16 = vld [vmem:[%s11480_s5 + $0xd28] ss:$28 sps:$4 sm:$0xff]  }
 0x5a0   :  { %6318 = vmatpush1.bf16.msra.mxu1 %v8204_v40  ;;  %v8273_v40 = vld [vmem:[%s11480_s5 + $0xac0] ss:$28 sps:$4 sm:$0xff]  }
 0x5a1   :  { %6482 = vmatpush1.bf16.msra.mxu0 %v8207_v23  ;;  %6319 = vmatprep.subr.bf16.mxu1 %v8212_v21  ;;  %v8278_v23 = vld [vmem:[%s11480_s5 + $0xaf4] ss:$28 sps:$4 sm:$0xff]   ;;  %v8281_v21 = vld [vmem:[%s11480_s5 + $0xafc] ss:$28 sps:$4 sm:$0xff]  }
 0x5a2   :  { %6483 = vmatprep.subr.bf16.mxu0 %v8215_v30  ;;  %v8276_v30 = vld [vmem:[%s11480_s5 + $0xaf0] ss:$28 sps:$4 sm:$0xff]  }
 0x5a4   :  { %6320 = vmatpush1.bf16.msra.mxu1 %v8210_v43  ;;  %v8279_v43 = vld [vmem:[%s11480_s5 + $0xaf8] ss:$28 sps:$4 sm:$0xff]  }
 0x5a5   :  { %6484 = vmatpush1.bf16.msra.mxu0 %v8213_v45  ;;  %6321 = vmatprep.subr.bf16.mxu1 %v8218_v52  ;;  %v8284_v45 = vld [vmem:[%s11480_s5 + $0xb2c] ss:$28 sps:$4 sm:$0xff]   ;;  %v8287_v52 = vld [vmem:[%s11480_s5 + $0xb34] ss:$28 sps:$4 sm:$0xff]  }
 0x5a6   :  { %6485 = vmatprep.subr.bf16.mxu0 %v8221_v51  ;;  %v8282_v51 = vld [vmem:[%s11480_s5 + $0xb28] ss:$28 sps:$4 sm:$0xff]  }
 0x5a8   :  { %6322 = vmatpush1.bf16.msra.mxu1 %v8216_v0  ;;  %v8285_v0 = vld [vmem:[%s11480_s5 + $0xb30] ss:$28 sps:$4 sm:$0xff]  }
 0x5a9   :  { %6486 = vmatpush1.bf16.msra.mxu0 %v8219_v1  ;;  %6323 = vmatprep.subr.bf16.mxu1 %v8224_v12  ;;  %v8290_v1 = vld [vmem:[%s11480_s5 + $0xb64] ss:$28 sps:$4 sm:$0xff]   ;;  %v8293_v12 = vld [vmem:[%s11480_s5 + $0xb6c] ss:$28 sps:$4 sm:$0xff]  }
 0x5aa   :  { %6487 = vmatprep.subr.bf16.mxu0 %v8227_v13  ;;  %v8288_v13 = vld [vmem:[%s11480_s5 + $0xb60] ss:$28 sps:$4 sm:$0xff]  }
 0x5ac   :  { %6324 = vmatpush1.bf16.msra.mxu1 %v8222_v55  ;;  %v8291_v55 = vld [vmem:[%s11480_s5 + $0xb68] ss:$28 sps:$4 sm:$0xff]  }
 0x5ad   :  { %6488 = vmatpush1.bf16.msra.mxu0 %v8225_v48  ;;  %6325 = vmatprep.subr.bf16.mxu1 %v8230_v56  ;;  %v8296_v48 = vld [vmem:[%s11480_s5 + $0xb9c] ss:$28 sps:$4 sm:$0xff]   ;;  %v8299_v56 = vld [vmem:[%s11480_s5 + $0xba4] ss:$28 sps:$4 sm:$0xff]  }
 0x5ae   :  { %6489 = vmatprep.subr.bf16.mxu0 %v8233_v57  ;;  %v8294_v57 = vld [vmem:[%s11480_s5 + $0xb98] ss:$28 sps:$4 sm:$0xff]  }
 0x5b0   :  { %6326 = vmatpush1.bf16.msra.mxu1 %v8228_v58  ;;  %v8297_v58 = vld [vmem:[%s11480_s5 + $0xba0] ss:$28 sps:$4 sm:$0xff]  }
 0x5b1   :  { %6490 = vmatpush1.bf16.msra.mxu0 %v8231_v61  ;;  %6327 = vmatprep.subr.bf16.mxu1 %v8236_v2  ;;  %v8302_v61 = vld [vmem:[%s11480_s5 + $0xbd4] ss:$28 sps:$4 sm:$0xff]   ;;  %v8305_v2 = vld [vmem:[%s11480_s5 + $0xbdc] ss:$28 sps:$4 sm:$0xff]  }
 0x5b2   :  { %6491 = vmatprep.subr.bf16.mxu0 %v8239_v24  ;;  %v8300_v24 = vld [vmem:[%s11480_s5 + $0xbd0] ss:$28 sps:$4 sm:$0xff]  }
 0x5b4   :  { %6328 = vmatpush1.bf16.msra.mxu1 %v8234_v42  ;;  %v8303_v42 = vld [vmem:[%s11480_s5 + $0xbd8] ss:$28 sps:$4 sm:$0xff]  }
 0x5b5   :  { %6492 = vmatpush1.bf16.msra.mxu0 %v8237_v27  ;;  %6329 = vmatprep.subr.bf16.mxu1 %v8242_v33  ;;  %v8308_v27 = vld [vmem:[%s11480_s5 + $0xc0c] ss:$28 sps:$4 sm:$0xff]   ;;  %v8311_v33 = vld [vmem:[%s11480_s5 + $0xc14] ss:$28 sps:$4 sm:$0xff]  }
 0x5b6   :  { %6493 = vmatprep.subr.bf16.mxu0 %v8245_v29  ;;  %v8306_v29 = vld [vmem:[%s11480_s5 + $0xc08] ss:$28 sps:$4 sm:$0xff]  }
 0x5b8   :  { %6330 = vmatpush1.bf16.msra.mxu1 %v8240_v28  ;;  %v8309_v28 = vld [vmem:[%s11480_s5 + $0xc10] ss:$28 sps:$4 sm:$0xff]  }
 0x5b9   :  { %6494 = vmatpush1.bf16.msra.mxu0 %v8243_v25  ;;  %6331 = vmatprep.subr.bf16.mxu1 %v8248_v39  ;;  %v8314_v25 = vld [vmem:[%s11480_s5 + $0xc44] ss:$28 sps:$4 sm:$0xff]   ;;  %v8317_v39 = vld [vmem:[%s11480_s5 + $0xc4c] ss:$28 sps:$4 sm:$0xff]  }
 0x5ba   :  { %6495 = vmatprep.subr.bf16.mxu0 %v8251_v18  ;;  %v8312_v18 = vld [vmem:[%s11480_s5 + $0xc40] ss:$28 sps:$4 sm:$0xff]  }
 0x5bc   :  { %6332 = vmatpush1.bf16.msra.mxu1 %v8246_v17  ;;  %v8315_v17 = vld [vmem:[%s11480_s5 + $0xc48] ss:$28 sps:$4 sm:$0xff]  }
 0x5bd   :  { %6496 = vmatpush1.bf16.msra.mxu0 %v8249_v20  ;;  %6333 = vmatprep.subr.bf16.mxu1 %v8254_v46  ;;  %v8320_v20 = vld [vmem:[%s11480_s5 + $0xc7c] ss:$28 sps:$4 sm:$0xff]   ;;  %v8323_v46 = vld [vmem:[%s11480_s5 + $0xc84] ss:$28 sps:$4 sm:$0xff]  }
 0x5be   :  { %6497 = vmatprep.subr.bf16.mxu0 %v8257_v3  ;;  %v8318_v3 = vld [vmem:[%s11480_s5 + $0xc78] ss:$28 sps:$4 sm:$0xff]  }
 0x5c0   :  { %6334 = vmatpush1.bf16.msra.mxu1 %v8252_v5  ;;  %v8321_v5 = vld [vmem:[%s11480_s5 + $0xc80] ss:$28 sps:$4 sm:$0xff]  }
 0x5c1   :  { %6498 = vmatpush1.bf16.msra.mxu0 %v8255_v8  ;;  %6335 = vmatprep.subr.bf16.mxu1 %v8260_v9  ;;  %v8326_v8 = vld [vmem:[%s11480_s5 + $0xcb4] ss:$28 sps:$4 sm:$0xff]   ;;  %v8329_v9 = vld [vmem:[%s11480_s5 + $0xcbc] ss:$28 sps:$4 sm:$0xff]  }
 0x5c2   :  { %6499 = vmatprep.subr.bf16.mxu0 %v8263_v11  ;;  %v8324_v11 = vld [vmem:[%s11480_s5 + $0xcb0] ss:$28 sps:$4 sm:$0xff]  }
 0x5c4   :  { %6336 = vmatpush1.bf16.msra.mxu1 %v8258_v15  ;;  %v8332_v15 = vld [vmem:[%s11480_s5 + $0xcec] ss:$28 sps:$4 sm:$0xff]  }
 0x5c5   :  { %6500 = vmatpush1.bf16.msra.mxu0 %v8261_v62  ;;  %6346 = vmatprep.subr.bf16.mxu1 %v8266_v7  ;;  %v8330_v62 = vld [vmem:[%s11480_s5 + $0xce8] ss:$28 sps:$4 sm:$0xff]   ;;  %v8333_v7 = vld [vmem:[%s11480_s5 + $0xcf0] ss:$28 sps:$4 sm:$0xff]  }
 0x5c6   :  { %6510 = vmatprep.subr.bf16.mxu0 %v8269_v31  ;;  %v8341_v31 = vld [vmem:[%s11480_s5 + $0xd2c] ss:$28 sps:$4 sm:$0xff]  }
 0x5c7   :  { %6338 = vmatmul.mubr.bf16.vlgmr.msra.gmra.mrb[12].mxu1 %v10641_v34 }
 0x5c8   :  { %6502 = vmatmul.mubr.bf16.vlgmr.msra.gmra.mrb[20].mxu0 %v10641_v34  ;;  %6347 = vmatpush1.bf16.msra.mxu1 %v8264_v4  ;;  %v8336_v4 = vld [vmem:[%s11480_s5 + $0xd20] ss:$28 sps:$4 sm:$0xff]  }
 0x5c9   :  { %6378 = vmatprep.mubr.bf16.mxu1 %v10650_v54  ;;  %6511 = vmatpush1.bf16.msra.mxu0 %v8267_v53  ;;  %v8344_v53 = vld [vmem:[%s11480_s5 + $0xd5c] ss:$28 sps:$4 sm:$0xff]  }
 0x5ca   :  { %6542 = vmatprep.mubr.bf16.mxu0 %v10650_v54  ;;  %6348 = vmatprep.subr.bf16.mxu1 %v8272_v37  ;;  %v8347_v37 = vld [vmem:[%s11480_s5 + $0xd64] ss:$28 sps:$4 sm:$0xff]  }
 0x5cb   :  { %6512 = vmatprep.subr.bf16.mxu0 %v8275_v36  ;;  %v8342_v36 = vld [vmem:[%s11480_s5 + $0xd58] ss:$28 sps:$4 sm:$0xff]  }
 0x5cc   :  { %6349 = vmatpush1.bf16.msra.mxu1 %v8270_v49  ;;  %v8345_v49 = vld [vmem:[%s11480_s5 + $0xd60] ss:$28 sps:$4 sm:$0xff]  }
 0x5cd   :  { %6513 = vmatpush1.bf16.msra.mxu0 %v8273_v40  ;;  %6350 = vmatprep.subr.bf16.mxu1 %v8278_v23  ;;  %v8350_v40 = vld [vmem:[%s11480_s5 + $0xd94] ss:$28 sps:$4 sm:$0xff]   ;;  %v8353_v23 = vld [vmem:[%s11480_s5 + $0xd9c] ss:$28 sps:$4 sm:$0xff]  }
 0x5ce   :  { %6514 = vmatprep.subr.bf16.mxu0 %v8281_v21  ;;  %v8348_v21 = vld [vmem:[%s11480_s5 + $0xd90] ss:$28 sps:$4 sm:$0xff]  }
 0x5d0   :  { %6351 = vmatpush1.bf16.msra.mxu1 %v8276_v30  ;;  %v8351_v30 = vld [vmem:[%s11480_s5 + $0xd98] ss:$28 sps:$4 sm:$0xff]  }
 0x5d1   :  { %6515 = vmatpush1.bf16.msra.mxu0 %v8279_v43  ;;  %6352 = vmatprep.subr.bf16.mxu1 %v8284_v45  ;;  %v8356_v43 = vld [vmem:[%s11480_s5 + $0xdcc] ss:$28 sps:$4 sm:$0xff]   ;;  %v8359_v45 = vld [vmem:[%s11480_s5 + $0xdd4] ss:$28 sps:$4 sm:$0xff]  }
 0x5d2   :  { %6516 = vmatprep.subr.bf16.mxu0 %v8287_v52  ;;  %v3349_v52 = vmul.f32 0.2, %v10220_v38 }
 0x5d4   :  { %6353 = vmatpush1.bf16.msra.mxu1 %v8282_v51  ;;  %v8354_v51 = vld [vmem:[%s11480_s5 + $0xdc8] ss:$28 sps:$4 sm:$0xff]  }
 0x5d5   :  { %6517 = vmatpush1.bf16.msra.mxu0 %v8285_v0  ;;  %6354 = vmatprep.subr.bf16.mxu1 %v8290_v1  ;;  %v8357_v0 = vld [vmem:[%s11480_s5 + $0xdd0] ss:$28 sps:$4 sm:$0xff]  }
 0x5d6   :  { %6518 = vmatprep.subr.bf16.mxu0 %v8293_v12  ;;  %v8362_v1 = vld [vmem:[%s11480_s5 + $0x14] ss:$28 sps:$4 sm:$0xff]   ;;  %v3357_v12 = vsel %vm3341_vm15, %v10220_v38, %v3349_v52  ;;  %v8367_v38 = vld [vmem:[%s11480_s5 + $0x4c] ss:$28 sps:$4 sm:$0xff]  }
 0x5d7   :  { %v8415_v52 = vld [vmem:[%s11480_s5 + $0x278] ss:$28 sps:$4 sm:$0xff]  }
 0x5d8   :  { %6355 = vmatpush1.bf16.msra.mxu1 %v8288_v13  ;;  %v8363_v13 = vld [vmem:[%s11480_s5 + $0x1d8] ss:$28 sps:$4 sm:$0xff]  }
 0x5d9   :  { %6519 = vmatpush1.bf16.msra.mxu0 %v8291_v55  ;;  %6356 = vmatprep.subr.bf16.mxu1 %v8296_v48  ;;  %v8360_v55 = vld [vmem:[%s11480_s5 + $0x10] ss:$28 sps:$4 sm:$0xff]   ;;  %v10844_v48 = vpack.c.bf16 %v3357_v12, %v3357_v12 }
 0x5da   :  { %6520 = vmatprep.subr.bf16.mxu0 %v8299_v56  ;;  %v8364_v56 = vld [vmem:[%s11480_s5 + $0x18] ss:$28 sps:$4 sm:$0xff]   ;;  %v8420_v12 = vld [vmem:[%s11480_s5 + $0x2b0] ss:$28 sps:$4 sm:$0xff]  }
 0x5dc   :  { %6357 = vmatpush1.bf16.msra.mxu1 %v8294_v57  ;;  %v8368_v57 = vld [vmem:[%s11480_s5 + $0x210] ss:$28 sps:$4 sm:$0xff]  }
 0x5dd   :  { %6521 = vmatpush1.bf16.msra.mxu0 %v8297_v58  ;;  %6358 = vmatprep.subr.bf16.mxu1 %v8302_v61  ;;  %v8365_v58 = vld [vmem:[%s11480_s5 + $0x48] ss:$28 sps:$4 sm:$0xff]   ;;  %v8369_v61 = vld [vmem:[%s11480_s5 + $0x50] ss:$28 sps:$4 sm:$0xff]  }
 0x5de   :  { %6522 = vmatprep.subr.bf16.mxu0 %v8305_v2  ;;  %v8372_v2 = vld [vmem:[%s11480_s5 + $0x84] ss:$28 sps:$4 sm:$0xff]  }
 0x5e0   :  { %6359 = vmatpush1.bf16.msra.mxu1 %v8300_v24  ;;  %v8373_v24 = vld [vmem:[%s11480_s5 + $0x248] ss:$28 sps:$4 sm:$0xff]  }
 0x5e1   :  { %6523 = vmatpush1.bf16.msra.mxu0 %v8303_v42  ;;  %6360 = vmatprep.subr.bf16.mxu1 %v8308_v27  ;;  %v8370_v42 = vld [vmem:[%s11480_s5 + $0x80] ss:$28 sps:$4 sm:$0xff]   ;;  %v8374_v27 = vld [vmem:[%s11480_s5 + $0x88] ss:$28 sps:$4 sm:$0xff]  }
 0x5e2   :  { %6524 = vmatprep.subr.bf16.mxu0 %v8311_v33  ;;  %v8378_v33 = vld [vmem:[%s11480_s5 + $0x280] ss:$28 sps:$4 sm:$0xff]  }
 0x5e4   :  { %6361 = vmatpush1.bf16.msra.mxu1 %v8306_v29  ;;  %v8375_v29 = vld [vmem:[%s11480_s5 + $0xb8] ss:$28 sps:$4 sm:$0xff]  }
 0x5e5   :  { %6525 = vmatpush1.bf16.msra.mxu0 %v8309_v28  ;;  %6362 = vmatprep.subr.bf16.mxu1 %v8314_v25  ;;  %v8379_v28 = vld [vmem:[%s11480_s5 + $0xc0] ss:$28 sps:$4 sm:$0xff]   ;;  %v8382_v25 = vld [vmem:[%s11480_s5 + $0xf4] ss:$28 sps:$4 sm:$0xff]  }
 0x5e6   :  { %6526 = vmatprep.subr.bf16.mxu0 %v8317_v39  ;;  %v8383_v39 = vld [vmem:[%s11480_s5 + $0x2b8] ss:$28 sps:$4 sm:$0xff]  }
 0x5e8   :  { %6363 = vmatpush1.bf16.msra.mxu1 %v8312_v18  ;;  %v8380_v18 = vld [vmem:[%s11480_s5 + $0xf0] ss:$28 sps:$4 sm:$0xff]  }
 0x5e9   :  { %6527 = vmatpush1.bf16.msra.mxu0 %v8315_v17  ;;  %6364 = vmatprep.subr.bf16.mxu1 %v8320_v20  ;;  %v8384_v17 = vld [vmem:[%s11480_s5 + $0xf8] ss:$28 sps:$4 sm:$0xff]   ;;  %v8387_v20 = vld [vmem:[%s11480_s5 + $0x12c] ss:$28 sps:$4 sm:$0xff]  }
 0x5ea   :  { %6528 = vmatprep.subr.bf16.mxu0 %v8323_v46  ;;  %v8388_v46 = vld [vmem:[%s11480_s5 + $0x2f0] ss:$28 sps:$4 sm:$0xff]  }
 0x5ec   :  { %6365 = vmatpush1.bf16.msra.mxu1 %v8318_v3  ;;  %v8385_v3 = vld [vmem:[%s11480_s5 + $0x128] ss:$28 sps:$4 sm:$0xff]  }
 0x5ed   :  { %6529 = vmatpush1.bf16.msra.mxu0 %v8321_v5  ;;  %6366 = vmatprep.subr.bf16.mxu1 %v8326_v8  ;;  %v8389_v5 = vld [vmem:[%s11480_s5 + $0x130] ss:$28 sps:$4 sm:$0xff]   ;;  %v8392_v8 = vld [vmem:[%s11480_s5 + $0x164] ss:$28 sps:$4 sm:$0xff]  }
 0x5ee   :  { %6530 = vmatprep.subr.bf16.mxu0 %v8329_v9  ;;  %v8393_v9 = vld [vmem:[%s11480_s5 + $0x328] ss:$28 sps:$4 sm:$0xff]  }
 0x5f0   :  { %6367 = vmatpush1.bf16.msra.mxu1 %v8324_v11  ;;  %v8390_v11 = vld [vmem:[%s11480_s5 + $0x160] ss:$28 sps:$4 sm:$0xff]  }
 0x5f1   :  { %6531 = vmatpush1.bf16.msra.mxu0 %v8327_v14  ;;  %6368 = vmatprep.subr.bf16.mxu1 %v8332_v15  ;;  %v8394_v14 = vld [vmem:[%s11480_s5 + $0x168] ss:$28 sps:$4 sm:$0xff]   ;;  %v8397_v15 = vld [vmem:[%s11480_s5 + $0x19c] ss:$28 sps:$4 sm:$0xff]  }
 0x5f2   :  { %6532 = vmatprep.subr.bf16.mxu0 %v8335_v19  ;;  %v8398_v19 = vld [vmem:[%s11480_s5 + $0x360] ss:$28 sps:$4 sm:$0xff]  }
 0x5f4   :  { %6369 = vmatpush1.bf16.msra.mxu1 %v8330_v62  ;;  %v8395_v62 = vld [vmem:[%s11480_s5 + $0x198] ss:$28 sps:$4 sm:$0xff]  }
 0x5f5   :  { %6533 = vmatpush1.bf16.msra.mxu0 %v8333_v7  ;;  %6370 = vmatprep.subr.bf16.mxu1 %v8338_v10  ;;  %v8399_v7 = vld [vmem:[%s11480_s5 + $0x1a0] ss:$28 sps:$4 sm:$0xff]   ;;  %v8402_v10 = vld [vmem:[%s11480_s5 + $0x1d4] ss:$28 sps:$4 sm:$0xff]  }
 0x5f6   :  { %6534 = vmatprep.subr.bf16.mxu0 %v8341_v31  ;;  %v8403_v31 = vld [vmem:[%s11480_s5 + $0x558] ss:$28 sps:$4 sm:$0xff]  }
 0x5f8   :  { %6371 = vmatpush1.bf16.msra.mxu1 %v8336_v4  ;;  %v8400_v4 = vld [vmem:[%s11480_s5 + $0x1d0] ss:$28 sps:$4 sm:$0xff]  }
 0x5f9   :  { %6535 = vmatpush1.bf16.msra.mxu0 %v8339_v16  ;;  %6372 = vmatprep.subr.bf16.mxu1 %v8344_v53  ;;  %v8404_v16 = vld [vmem:[%s11480_s5 + $0x398] ss:$28 sps:$4 sm:$0xff]   ;;  %v8407_v53 = vld [vmem:[%s11480_s5 + $0x20c] ss:$28 sps:$4 sm:$0xff]  }
 0x5fa   :  { %6536 = vmatprep.subr.bf16.mxu0 %v8347_v37  ;;  %v8408_v37 = vld [vmem:[%s11480_s5 + $0x590] ss:$28 sps:$4 sm:$0xff]  }
 0x5fc   :  { %6373 = vmatpush1.bf16.msra.mxu1 %v8342_v36  ;;  %v8405_v36 = vld [vmem:[%s11480_s5 + $0x208] ss:$28 sps:$4 sm:$0xff]  }
 0x5fd   :  { %6537 = vmatpush1.bf16.msra.mxu0 %v8345_v49  ;;  %6374 = vmatprep.subr.bf16.mxu1 %v8350_v40  ;;  %v8409_v49 = vld [vmem:[%s11480_s5 + $0x3d0] ss:$28 sps:$4 sm:$0xff]   ;;  %v8412_v40 = vld [vmem:[%s11480_s5 + $0x244] ss:$28 sps:$4 sm:$0xff]  }
 0x5fe   :  { %6538 = vmatprep.subr.bf16.mxu0 %v8353_v23  ;;  %v8413_v23 = vld [vmem:[%s11480_s5 + $0x5c8] ss:$28 sps:$4 sm:$0xff]  }
 0x600   :  { %6375 = vmatpush1.bf16.msra.mxu1 %v8348_v21  ;;  %v8410_v21 = vld [vmem:[%s11480_s5 + $0x240] ss:$28 sps:$4 sm:$0xff]  }
 0x601   :  { %6539 = vmatpush1.bf16.msra.mxu0 %v8351_v30  ;;  %6376 = vmatprep.subr.bf16.mxu1 %v8356_v43  ;;  %v8414_v30 = vld [vmem:[%s11480_s5 + $0x408] ss:$28 sps:$4 sm:$0xff]   ;;  %v8417_v43 = vld [vmem:[%s11480_s5 + $0x27c] ss:$28 sps:$4 sm:$0xff]  }
 0x602   :  { %6540 = vmatprep.subr.bf16.mxu0 %v8359_v45  ;;  %v8418_v45 = vld [vmem:[%s11480_s5 + $0x600] ss:$28 sps:$4 sm:$0xff]  }
 0x604   :  { %6377 = vmatpush1.bf16.msra.mxu1 %v8354_v51  ;;  %v8419_v51 = vld [vmem:[%s11480_s5 + $0x440] ss:$28 sps:$4 sm:$0xff]  }
 0x605   :  { %6541 = vmatpush1.bf16.msra.mxu0 %v8357_v0  ;;  %6551 = vmatprep.subr.bf16.mxu1 %v8362_v1  ;;  %v8422_v0 = vld [vmem:[%s11480_s5 + $0x2b4] ss:$28 sps:$4 sm:$0xff]  }
 0x606   :  { %7698 = vmatprep.subr.bf16.mxu0 %v8363_v13  ;;  %v8423_v1 = vld [vmem:[%s11480_s5 + $0x638] ss:$28 sps:$4 sm:$0xff]  }
 0x607   :  { %6379 = vmatmul.mubr.bf16.vlgmr.msra.gmra.mrb[12].mxu1 %v10844_v48  ;;  %v8424_v13 = vld [vmem:[%s11480_s5 + $0x478] ss:$28 sps:$4 sm:$0xff]  }
 0x608   :  { %6543 = vmatmul.mubr.bf16.vlgmr.msra.gmra.mrb[20].mxu0 %v10844_v48  ;;  %6552 = vmatpush1.bf16.msra.mxu1 %v8360_v55  ;;  %v8427_v55 = vld [vmem:[%s11480_s5 + $0x2ec] ss:$28 sps:$4 sm:$0xff]  }
 0x609   :  { %6583 = vmatprep.mubr.bf16.mxu1 %v10222_v44  ;;  %7699 = vmatpush3.bf16.msra.mxu0 %v8364_v56  ;;  %v8428_v56 = vld [vmem:[%s11480_s5 + $0x670] ss:$28 sps:$4 sm:$0xff]  }
 0x60a   :  { %6747 = vmatprep.mubr.bf16.mxu0 %v10222_v44  ;;  %6553 = vmatprep.subr.bf16.mxu1 %v8367_v38  ;;  %v8377_v44 = vld [vmem:[%s11480_s5 + $0xbc] ss:$28 sps:$4 sm:$0xff]   ;;  %v8425_v38 = vld [vmem:[%s11480_s5 + $0x2e8] ss:$28 sps:$4 sm:$0xff]  }
 0x60b   :  { %7700 = vmatprep.subr.bf16.mxu0 %v8368_v57  ;;  %v8429_v57 = vld [vmem:[%s11480_s5 + $0x4b0] ss:$28 sps:$4 sm:$0xff]  }
 0x60c   :  { %6554 = vmatpush1.bf16.msra.mxu1 %v8365_v58  ;;  %v8432_v58 = vld [vmem:[%s11480_s5 + $0x324] ss:$28 sps:$4 sm:$0xff]  }
 0x60d   :  { %7701 = vmatpush3.bf16.msra.mxu0 %v8369_v61  ;;  %6555 = vmatprep.subr.bf16.mxu1 %v8372_v2  ;;  %v8433_v61 = vld [vmem:[%s11480_s5 + $0x6a8] ss:$28 sps:$4 sm:$0xff]   ;;  %v8430_v2 = vld [vmem:[%s11480_s5 + $0x320] ss:$28 sps:$4 sm:$0xff]  }
 0x60e   :  { %7702 = vmatprep.subr.bf16.mxu0 %v8373_v24  ;;  %v8434_v24 = vld [vmem:[%s11480_s5 + $0x4e8] ss:$28 sps:$4 sm:$0xff]  }
 0x610   :  { %6556 = vmatpush1.bf16.msra.mxu1 %v8370_v42  ;;  %v8437_v42 = vld [vmem:[%s11480_s5 + $0x35c] ss:$28 sps:$4 sm:$0xff]  }
 0x611   :  { %7703 = vmatpush3.bf16.msra.mxu0 %v8374_v27  ;;  %6557 = vmatprep.subr.bf16.mxu1 %v8377_v44  ;;  %v8438_v27 = vld [vmem:[%s11480_s5 + $0x6e0] ss:$28 sps:$4 sm:$0xff]   ;;  %v8435_v44 = vld [vmem:[%s11480_s5 + $0x358] ss:$28 sps:$4 sm:$0xff]  }
 0x612   :  { %7704 = vmatprep.subr.bf16.mxu0 %v8378_v33  ;;  %v8439_v33 = vld [vmem:[%s11480_s5 + $0x520] ss:$28 sps:$4 sm:$0xff]  }
 0x614   :  { %6558 = vmatpush1.bf16.msra.mxu1 %v8375_v29  ;;  %v8442_v29 = vld [vmem:[%s11480_s5 + $0x394] ss:$28 sps:$4 sm:$0xff]  }
 0x615   :  { %7705 = vmatpush3.bf16.msra.mxu0 %v8379_v28  ;;  %6559 = vmatprep.subr.bf16.mxu1 %v8382_v25  ;;  %v8443_v28 = vld [vmem:[%s11480_s5 + $0x8d8] ss:$28 sps:$4 sm:$0xff]   ;;  %v8440_v25 = vld [vmem:[%s11480_s5 + $0x390] ss:$28 sps:$4 sm:$0xff]  }
 0x616   :  { %7706 = vmatprep.subr.bf16.mxu0 %v8383_v39  ;;  %v8444_v39 = vld [vmem:[%s11480_s5 + $0x718] ss:$28 sps:$4 sm:$0xff]  }
 0x618   :  { %6560 = vmatpush1.bf16.msra.mxu1 %v8380_v18  ;;  %v8447_v18 = vld [vmem:[%s11480_s5 + $0x3cc] ss:$28 sps:$4 sm:$0xff]  }
 0x619   :  { %7707 = vmatpush3.bf16.msra.mxu0 %v8384_v17  ;;  %6561 = vmatprep.subr.bf16.mxu1 %v8387_v20  ;;  %v8448_v17 = vld [vmem:[%s11480_s5 + $0x910] ss:$28 sps:$4 sm:$0xff]   ;;  %v8445_v20 = vld [vmem:[%s11480_s5 + $0x3c8] ss:$28 sps:$4 sm:$0xff]  }
 0x61a   :  { %7708 = vmatprep.subr.bf16.mxu0 %v8388_v46  ;;  %v8449_v46 = vld [vmem:[%s11480_s5 + $0x750] ss:$28 sps:$4 sm:$0xff]  }
 0x61c   :  { %6562 = vmatpush1.bf16.msra.mxu1 %v8385_v3  ;;  %v8453_v3 = vld [vmem:[%s11480_s5 + $0x948] ss:$28 sps:$4 sm:$0xff]  }
 0x61d   :  { %7709 = vmatpush3.bf16.msra.mxu0 %v8389_v5  ;;  %6563 = vmatprep.subr.bf16.mxu1 %v8392_v8  ;;  %v8454_v5 = vld [vmem:[%s11480_s5 + $0x788] ss:$28 sps:$4 sm:$0xff]   ;;  %v8457_v8 = vld [vmem:[%s11480_s5 + $0x43c] ss:$28 sps:$4 sm:$0xff]  }
 0x61e   :  { %7710 = vmatprep.subr.bf16.mxu0 %v8393_v9  ;;  %v8458_v9 = vld [vmem:[%s11480_s5 + $0x980] ss:$28 sps:$4 sm:$0xff]  }
 0x620   :  { %6564 = vmatpush1.bf16.msra.mxu1 %v8390_v11  ;;  %v8455_v11 = vld [vmem:[%s11480_s5 + $0x438] ss:$28 sps:$4 sm:$0xff]  }
 0x621   :  { %7711 = vmatpush3.bf16.msra.mxu0 %v8394_v14  ;;  %6565 = vmatprep.subr.bf16.mxu1 %v8397_v15  ;;  %v8459_v14 = vld [vmem:[%s11480_s5 + $0x7c0] ss:$28 sps:$4 sm:$0xff]   ;;  %v8462_v15 = vld [vmem:[%s11480_s5 + $0x474] ss:$28 sps:$4 sm:$0xff]  }
 0x622   :  { %7712 = vmatprep.subr.bf16.mxu0 %v8398_v19  ;;  %v8463_v19 = vld [vmem:[%s11480_s5 + $0x9b8] ss:$28 sps:$4 sm:$0xff]  }
 0x624   :  { %6566 = vmatpush1.bf16.msra.mxu1 %v8395_v62  ;;  %v8460_v62 = vld [vmem:[%s11480_s5 + $0x470] ss:$28 sps:$4 sm:$0xff]  }
 0x625   :  { %7713 = vmatpush3.bf16.msra.mxu0 %v8399_v7  ;;  %6567 = vmatprep.subr.bf16.mxu1 %v8402_v10  ;;  %v8464_v7 = vld [vmem:[%s11480_s5 + $0x7f8] ss:$28 sps:$4 sm:$0xff]   ;;  %v8467_v10 = vld [vmem:[%s11480_s5 + $0x4ac] ss:$28 sps:$4 sm:$0xff]  }
 0x626   :  { %7720 = vmatprep.subr.bf16.mxu0 %v8403_v31  ;;  %v8468_v31 = vld [vmem:[%s11480_s5 + $0x9f0] ss:$28 sps:$4 sm:$0xff]  }
 0x628   :  { %6748 = vmatmul.mubr.bf16.vlgmr.msra.gmra.mrb[24].mxu0 %v10230_v63  ;;  %6568 = vmatpush1.bf16.msra.mxu1 %v8400_v4  ;;  %v8465_v4 = vld [vmem:[%s11480_s5 + $0x4a8] ss:$28 sps:$4 sm:$0xff]  }
 0x629   :  { %7721 = vmatpush3.bf16.msra.mxu0 %v8404_v16  ;;  %6787 = vmatprep.mubr.bf16.mxu0 %v10242_v6  ;;  %v8469_v16 = vld [vmem:[%s11480_s5 + $0x830] ss:$28 sps:$4 sm:$0xff]  }
 0x62a   :  { %6569 = vmatprep.subr.bf16.mxu1 %v8407_v53  ;;  %7722 = vmatprep.subr.bf16.mxu0 %v8408_v37  ;;  %v8472_v53 = vld [vmem:[%s11480_s5 + $0x4e4] ss:$28 sps:$4 sm:$0xff]  }
 0x62b   :  { %v8473_v37 = vld [vmem:[%s11480_s5 + $0xa28] ss:$28 sps:$4 sm:$0xff]  }
 0x62c   :  { %6570 = vmatpush1.bf16.msra.mxu1 %v8405_v36  ;;  %v8470_v36 = vld [vmem:[%s11480_s5 + $0x4e0] ss:$28 sps:$4 sm:$0xff]  }
 0x62d   :  { %7723 = vmatpush3.bf16.msra.mxu0 %v8409_v49  ;;  %6571 = vmatprep.subr.bf16.mxu1 %v8412_v40  ;;  %v8474_v49 = vld [vmem:[%s11480_s5 + $0x868] ss:$28 sps:$4 sm:$0xff]   ;;  %v8477_v40 = vld [vmem:[%s11480_s5 + $0x51c] ss:$28 sps:$4 sm:$0xff]  }
 0x62e   :  { %7724 = vmatprep.subr.bf16.mxu0 %v8413_v23  ;;  %v8478_v23 = vld [vmem:[%s11480_s5 + $0xa60] ss:$28 sps:$4 sm:$0xff]  }
 0x630   :  { %6572 = vmatpush1.bf16.msra.mxu1 %v8410_v21  ;;  %v8475_v21 = vld [vmem:[%s11480_s5 + $0x518] ss:$28 sps:$4 sm:$0xff]  }
 0x631   :  { %7725 = vmatpush3.bf16.msra.mxu0 %v8414_v30  ;;  %6573 = vmatprep.subr.bf16.mxu1 %v8417_v43  ;;  %v8479_v30 = vld [vmem:[%s11480_s5 + $0x8a0] ss:$28 sps:$4 sm:$0xff]   ;;  %v8482_v43 = vld [vmem:[%s11480_s5 + $0x554] ss:$28 sps:$4 sm:$0xff]  }
 0x632   :  { %7726 = vmatprep.subr.bf16.mxu0 %v8418_v45  ;;  %v8483_v45 = vld [vmem:[%s11480_s5 + $0xc58] ss:$28 sps:$4 sm:$0xff]  }
 0x634   :  { %6574 = vmatpush1.bf16.msra.mxu1 %v8415_v52  ;;  %v8480_v52 = vld [vmem:[%s11480_s5 + $0x550] ss:$28 sps:$4 sm:$0xff]  }
 0x635   :  { %7727 = vmatpush3.bf16.msra.mxu0 %v8419_v51  ;;  %6575 = vmatprep.subr.bf16.mxu1 %v8422_v0  ;;  %v8484_v51 = vld [vmem:[%s11480_s5 + $0xa98] ss:$28 sps:$4 sm:$0xff]   ;;  %v8487_v0 = vld [vmem:[%s11480_s5 + $0x58c] ss:$28 sps:$4 sm:$0xff]  }
 0x636   :  { %7728 = vmatprep.subr.bf16.mxu0 %v8423_v1  ;;  %v8488_v1 = vld [vmem:[%s11480_s5 + $0xc90] ss:$28 sps:$4 sm:$0xff]  }
 0x638   :  { %6576 = vmatpush1.bf16.msra.mxu1 %v8420_v12  ;;  %v8485_v12 = vld [vmem:[%s11480_s5 + $0x588] ss:$28 sps:$4 sm:$0xff]  }
 0x639   :  { %7729 = vmatpush3.bf16.msra.mxu0 %v8424_v13  ;;  %6577 = vmatprep.subr.bf16.mxu1 %v8427_v55  ;;  %v8489_v13 = vld [vmem:[%s11480_s5 + $0xad0] ss:$28 sps:$4 sm:$0xff]   ;;  %v8492_v55 = vld [vmem:[%s11480_s5 + $0x5c4] ss:$28 sps:$4 sm:$0xff]  }
 0x63a   :  { %7730 = vmatprep.subr.bf16.mxu0 %v8428_v56  ;;  %v8493_v56 = vld [vmem:[%s11480_s5 + $0xcc8] ss:$28 sps:$4 sm:$0xff]  }
 0x63c   :  { %6578 = vmatpush1.bf16.msra.mxu1 %v8425_v38  ;;  %v8490_v38 = vld [vmem:[%s11480_s5 + $0x5c0] ss:$28 sps:$4 sm:$0xff]  }
 0x63d   :  { %7731 = vmatpush3.bf16.msra.mxu0 %v8429_v57  ;;  %6579 = vmatprep.subr.bf16.mxu1 %v8432_v58  ;;  %v8494_v57 = vld [vmem:[%s11480_s5 + $0xb08] ss:$28 sps:$4 sm:$0xff]   ;;  %v8497_v58 = vld [vmem:[%s11480_s5 + $0x5fc] ss:$28 sps:$4 sm:$0xff]  }
 0x63e   :  { %7732 = vmatprep.subr.bf16.mxu0 %v8433_v61  ;;  %v8498_v61 = vld [vmem:[%s11480_s5 + $0xd00] ss:$28 sps:$4 sm:$0xff]  }
 0x640   :  { %6580 = vmatpush1.bf16.msra.mxu1 %v8430_v2  ;;  %v8495_v2 = vld [vmem:[%s11480_s5 + $0x5f8] ss:$28 sps:$4 sm:$0xff]  }
 0x641   :  { %7733 = vmatpush3.bf16.msra.mxu0 %v8434_v24  ;;  %6581 = vmatprep.subr.bf16.mxu1 %v8437_v42  ;;  %v8499_v24 = vld [vmem:[%s11480_s5 + $0xb40] ss:$28 sps:$4 sm:$0xff]   ;;  %v8502_v42 = vld [vmem:[%s11480_s5 + $0x634] ss:$28 sps:$4 sm:$0xff]  }
 0x642   :  { %7734 = vmatprep.subr.bf16.mxu0 %v8438_v27  ;;  %v8503_v27 = vld [vmem:[%s11480_s5 + $0xd38] ss:$28 sps:$4 sm:$0xff]  }
 0x644   :  { %6582 = vmatpush1.bf16.msra.mxu1 %v8435_v44  ;;  %v8500_v44 = vld [vmem:[%s11480_s5 + $0x630] ss:$28 sps:$4 sm:$0xff]  }
 0x645   :  { %7735 = vmatpush3.bf16.msra.mxu0 %v8439_v33  ;;  %6592 = vmatprep.subr.bf16.mxu1 %v8442_v29  ;;  %v8504_v33 = vld [vmem:[%s11480_s5 + $0xb78] ss:$28 sps:$4 sm:$0xff]   ;;  %v8507_v29 = vld [vmem:[%s11480_s5 + $0x66c] ss:$28 sps:$4 sm:$0xff]  }
 0x646   :  { %7742 = vmatprep.subr.bf16.mxu0 %v8443_v28  ;;  %v8508_v28 = vld [vmem:[%s11480_s5 + $0xd70] ss:$28 sps:$4 sm:$0xff]  }
 0x647   :  { %6584 = vmatmul.mubr.bf16.vlgmr.msra.gmra.mrb[16].mxu1 %v10230_v63  ;;  %v8452_v63 = vld [vmem:[%s11480_s5 + $0x404] ss:$28 sps:$4 sm:$0xff]  }
 0x648   :  { %6788 = vmatmul.mubr.bf16.vlgmr.msra.gmra.mrb[28].mxu0 %v10444_v26  ;;  %6593 = vmatpush1.bf16.msra.mxu1 %v8440_v25  ;;  %v8505_v25 = vld [vmem:[%s11480_s5 + $0x668] ss:$28 sps:$4 sm:$0xff]  }
 0x649   :  { %6624 = vmatprep.mubr.bf16.mxu1 %v10242_v6  ;;  %7743 = vmatpush3.bf16.msra.mxu0 %v8444_v39  ;;  %v8450_v6 = vld [vmem:[%s11480_s5 + $0x400] ss:$28 sps:$4 sm:$0xff]   ;;  %v8509_v39 = vld [vmem:[%s11480_s5 + $0xbb0] ss:$28 sps:$4 sm:$0xff]  }
 0x64a   :  { %6827 = vmatprep.mubr.bf16.mxu0 %v10446_v41  ;;  %6594 = vmatprep.subr.bf16.mxu1 %v8447_v18  ;;  %v8512_v18 = vld [vmem:[%s11480_s5 + $0x6a4] ss:$28 sps:$4 sm:$0xff]  }
 0x64b   :  { %7744 = vmatprep.subr.bf16.mxu0 %v8448_v17  ;;  %v8513_v17 = vld [vmem:[%s11480_s5 + $0xda8] ss:$28 sps:$4 sm:$0xff]  }
 0x64c   :  { %6595 = vmatpush1.bf16.msra.mxu1 %v8445_v20  ;;  %v8510_v20 = vld [vmem:[%s11480_s5 + $0x6a0] ss:$28 sps:$4 sm:$0xff]  }
 0x64d   :  { %7745 = vmatpush3.bf16.msra.mxu0 %v8449_v46  ;;  %6596 = vmatprep.subr.bf16.mxu1 %v8452_v63  ;;  %v8514_v46 = vld [vmem:[%s11480_s5 + $0xbe8] ss:$28 sps:$4 sm:$0xff]   ;;  %v8517_v63 = vld [vmem:[%s11480_s5 + $0x6dc] ss:$28 sps:$4 sm:$0xff]  }
 0x64e   :  { %7746 = vmatprep.subr.bf16.mxu0 %v8453_v3  ;;  %v8518_v3 = vld [vmem:[%s11480_s5 + $0xde0] ss:$28 sps:$4 sm:$0xff]  }
 0x650   :  { %6597 = vmatpush1.bf16.msra.mxu1 %v8450_v6  ;;  %v8515_v6 = vld [vmem:[%s11480_s5 + $0x6d8] ss:$28 sps:$4 sm:$0xff]  }
 0x651   :  { %7747 = vmatpush3.bf16.msra.mxu0 %v8454_v5  ;;  %6598 = vmatprep.subr.bf16.mxu1 %v8457_v8  ;;  %v8519_v5 = vld [vmem:[%s11480_s5 + $0xc20] ss:$28 sps:$4 sm:$0xff]   ;;  %v8522_v8 = vld [vmem:[%s11480_s5 + $0x714] ss:$28 sps:$4 sm:$0xff]  }
 0x652   :  { %7748 = vmatprep.subr.bf16.mxu0 %v8458_v9  ;;  %v8520_v9 = vld [vmem:[%s11480_s5 + $0x710] ss:$28 sps:$4 sm:$0xff]  }
 0x654   :  { %6599 = vmatpush1.bf16.msra.mxu1 %v8455_v11  ;;  %v8525_v11 = vld [vmem:[%s11480_s5 + $0x74c] ss:$28 sps:$4 sm:$0xff]  }
 0x655   :  { %7749 = vmatpush3.bf16.msra.mxu0 %v8459_v14  ;;  %6600 = vmatprep.subr.bf16.mxu1 %v8462_v15  ;;  %v8523_v14 = vld [vmem:[%s11480_s5 + $0x748] ss:$28 sps:$4 sm:$0xff]  }
 0x656   :  { %7750 = vmatprep.subr.bf16.mxu0 %v8463_v19  ;;  %v8528_v15 = vld [vmem:[%s11480_s5 + $0x784] ss:$28 sps:$4 sm:$0xff]  }
 0x657   :  { %v8526_v19 = vld [vmem:[%s11480_s5 + $0x780] ss:$28 sps:$4 sm:$0xff]  }
 0x658   :  { %6601 = vmatpush1.bf16.msra.mxu1 %v8460_v62  ;;  %v8534_v62 = vld [vmem:[%s11480_s5 + $0x7f4] ss:$28 sps:$4 sm:$0xff]  }
 0x659   :  { %7751 = vmatpush3.bf16.msra.mxu0 %v8464_v7  ;;  %6602 = vmatprep.subr.bf16.mxu1 %v8467_v10  ;;  %v8532_v7 = vld [vmem:[%s11480_s5 + $0x7f0] ss:$28 sps:$4 sm:$0xff]  }
 0x65a   :  { %7752 = vmatprep.subr.bf16.mxu0 %v8468_v31  ;;  %v8537_v10 = vld [vmem:[%s11480_s5 + $0x82c] ss:$28 sps:$4 sm:$0xff]  }
 0x65b   :  { %v8535_v31 = vld [vmem:[%s11480_s5 + $0x828] ss:$28 sps:$4 sm:$0xff]  }
 0x65c   :  { %6603 = vmatpush1.bf16.msra.mxu1 %v8465_v4  ;;  %v8540_v4 = vld [vmem:[%s11480_s5 + $0x864] ss:$28 sps:$4 sm:$0xff]  }
 0x65d   :  { %7753 = vmatpush3.bf16.msra.mxu0 %v8469_v16  ;;  %6604 = vmatprep.subr.bf16.mxu1 %v8472_v53  ;;  %v8538_v16 = vld [vmem:[%s11480_s5 + $0x860] ss:$28 sps:$4 sm:$0xff]  }
 0x65e   :  { %7754 = vmatprep.subr.bf16.mxu0 %v8473_v37  ;;  %v8543_v53 = vld [vmem:[%s11480_s5 + $0x89c] ss:$28 sps:$4 sm:$0xff]  }
 0x65f   :  { %v8541_v37 = vld [vmem:[%s11480_s5 + $0x898] ss:$28 sps:$4 sm:$0xff]  }
 0x660   :  { %6605 = vmatpush1.bf16.msra.mxu1 %v8470_v36  ;;  %v8546_v36 = vld [vmem:[%s11480_s5 + $0x8d4] ss:$28 sps:$4 sm:$0xff]  }
 0x661   :  { %7755 = vmatpush3.bf16.msra.mxu0 %v8474_v49  ;;  %6606 = vmatprep.subr.bf16.mxu1 %v8477_v40  ;;  %v8544_v49 = vld [vmem:[%s11480_s5 + $0x8d0] ss:$28 sps:$4 sm:$0xff]  }
 0x662   :  { %7756 = vmatprep.subr.bf16.mxu0 %v8478_v23  ;;  %v8549_v40 = vld [vmem:[%s11480_s5 + $0x90c] ss:$28 sps:$4 sm:$0xff]  }
 0x663   :  { %v8547_v23 = vld [vmem:[%s11480_s5 + $0x908] ss:$28 sps:$4 sm:$0xff]  }
 0x664   :  { %6607 = vmatpush1.bf16.msra.mxu1 %v8475_v21  ;;  %v8552_v21 = vld [vmem:[%s11480_s5 + $0x944] ss:$28 sps:$4 sm:$0xff]  }
 0x665   :  { %7757 = vmatpush3.bf16.msra.mxu0 %v8479_v30  ;;  %6608 = vmatprep.subr.bf16.mxu1 %v8482_v43  ;;  %v8550_v30 = vld [vmem:[%s11480_s5 + $0x940] ss:$28 sps:$4 sm:$0xff]  }
 0x666   :  { %7764 = vmatprep.subr.bf16.mxu0 %v8483_v45  ;;  %v8555_v43 = vld [vmem:[%s11480_s5 + $0x97c] ss:$28 sps:$4 sm:$0xff]  }
 0x667   :  { %v8553_v45 = vld [vmem:[%s11480_s5 + $0x978] ss:$28 sps:$4 sm:$0xff]  }
 0x668   :  { %6828 = vmatmul.mubr.bf16.vlgmr.msra.gmra.mrb[32].mxu0 %v10641_v34  ;;  %6609 = vmatpush1.bf16.msra.mxu1 %v8480_v52  ;;  %v8558_v52 = vld [vmem:[%s11480_s5 + $0x9b4] ss:$28 sps:$4 sm:$0xff]  }
 0x669   :  { %7765 = vmatpush3.bf16.msra.mxu0 %v8484_v51  ;;  %6867 = vmatprep.mubr.bf16.mxu0 %v10650_v54  ;;  %v8556_v51 = vld [vmem:[%s11480_s5 + $0x9b0] ss:$28 sps:$4 sm:$0xff]  }
 0x66a   :  { %6610 = vmatprep.subr.bf16.mxu1 %v8487_v0  ;;  %7766 = vmatprep.subr.bf16.mxu0 %v8488_v1  ;;  %v8561_v0 = vld [vmem:[%s11480_s5 + $0x9ec] ss:$28 sps:$4 sm:$0xff]  }
 0x66b   :  { %v8559_v1 = vld [vmem:[%s11480_s5 + $0x9e8] ss:$28 sps:$4 sm:$0xff]  }
 0x66c   :  { %6611 = vmatpush1.bf16.msra.mxu1 %v8485_v12  ;;  %v8564_v12 = vld [vmem:[%s11480_s5 + $0xa24] ss:$28 sps:$4 sm:$0xff]  }
 0x66d   :  { %7767 = vmatpush3.bf16.msra.mxu0 %v8489_v13  ;;  %6612 = vmatprep.subr.bf16.mxu1 %v8492_v55  ;;  %v8562_v13 = vld [vmem:[%s11480_s5 + $0xa20] ss:$28 sps:$4 sm:$0xff]  }
 0x66e   :  { %7768 = vmatprep.subr.bf16.mxu0 %v8493_v56  ;;  %v8567_v55 = vld [vmem:[%s11480_s5 + $0xa5c] ss:$28 sps:$4 sm:$0xff]  }
 0x66f   :  { %v8565_v56 = vld [vmem:[%s11480_s5 + $0xa58] ss:$28 sps:$4 sm:$0xff]  }
 0x670   :  { %6613 = vmatpush1.bf16.msra.mxu1 %v8490_v38  ;;  %v8570_v38 = vld [vmem:[%s11480_s5 + $0xa94] ss:$28 sps:$4 sm:$0xff]  }
 0x671   :  { %7769 = vmatpush3.bf16.msra.mxu0 %v8494_v57  ;;  %6614 = vmatprep.subr.bf16.mxu1 %v8497_v58  ;;  %v8568_v57 = vld [vmem:[%s11480_s5 + $0xa90] ss:$28 sps:$4 sm:$0xff]  }
 0x672   :  { %7770 = vmatprep.subr.bf16.mxu0 %v8498_v61  ;;  %v8573_v58 = vld [vmem:[%s11480_s5 + $0xacc] ss:$28 sps:$4 sm:$0xff]  }
 0x673   :  { %v8571_v61 = vld [vmem:[%s11480_s5 + $0xac8] ss:$28 sps:$4 sm:$0xff]  }
 0x674   :  { %6615 = vmatpush1.bf16.msra.mxu1 %v8495_v2  ;;  %v8576_v2 = vld [vmem:[%s11480_s5 + $0xb04] ss:$28 sps:$4 sm:$0xff]  }
 0x675   :  { %7771 = vmatpush3.bf16.msra.mxu0 %v8499_v24  ;;  %6616 = vmatprep.subr.bf16.mxu1 %v8502_v42  ;;  %v8574_v24 = vld [vmem:[%s11480_s5 + $0xb00] ss:$28 sps:$4 sm:$0xff]  }
 0x676   :  { %7772 = vmatprep.subr.bf16.mxu0 %v8503_v27  ;;  %v7248_v42 = vld [vmem:[%s11478_s6 + $0x6] ss:$8 sm:$0xf] }
 0x677   :  { %v7249_v27 = vld [vmem:[%s11478_s6 + $0x6] ss:$8 sm:$0x70] }
 0x678   :  { %6617 = vmatpush1.bf16.msra.mxu1 %v8500_v44  ;;  %v8582_v44 = vld [vmem:[%s11480_s5 + $0xb74] ss:$28 sps:$4 sm:$0xff]  }
 0x679   :  { %7773 = vmatpush3.bf16.msra.mxu0 %v8504_v33  ;;  %6618 = vmatprep.subr.bf16.mxu1 %v8507_v29  ;;  %v11367_v33 = vor.u32 %v7249_v27, %v7248_v42  ;;  %v8580_v29 = vld [vmem:[%s11480_s5 + $0xb70] ss:$28 sps:$4 sm:$0xff]  }
 0x67a   :  { %7774 = vmatprep.subr.bf16.mxu0 %v8508_v28  ;;  %v8585_v28 = vld [vmem:[%s11480_s5 + $0xbac] ss:$28 sps:$4 sm:$0xff]  }
 0x67c   :  { %6619 = vmatpush1.bf16.msra.mxu1 %v8505_v25  ;;  %v3887_v25 = vrot.slane %v11367_v33, %v8894_v59 }
 0x67d   :  { %7775 = vmatpush3.bf16.msra.mxu0 %v8509_v39  ;;  %6620 = vmatprep.subr.bf16.mxu1 %v8512_v18  ;;  %v3895_v39 = vrot.slane %v11367_v33, %v9258_v47  ;;  %v3891_v18 = vrot.slane %v11367_v33, %v8897_v60 }
 0x67e   :  { %7776 = vmatprep.subr.bf16.mxu0 %v8513_v17  ;;  %v8583_v17 = vld [vmem:[%s11480_s5 + $0xba8] ss:$28 sps:$4 sm:$0xff]  }
 0x680   :  { %6621 = vmatpush1.bf16.msra.mxu1 %v8510_v20  ;;  %v3899_v20 = vrot.slane %v11367_v33, %v9261_v50 }
 0x681   :  { %7777 = vmatpush3.bf16.msra.mxu0 %v8514_v46  ;;  %6622 = vmatprep.subr.bf16.mxu1 %v8517_v63  ;;  %v8588_v46 = vld [vmem:[%s11480_s5 + $0xbe4] ss:$28 sps:$4 sm:$0xff]  }
 0x682   :  { %7778 = vmatprep.subr.bf16.mxu0 %v8518_v3 }
 0x684   :  { %6623 = vmatpush1.bf16.msra.mxu1 %v8515_v6 }
 0x685   :  { %7779 = vmatpush3.bf16.msra.mxu0 %v8519_v5  ;;  %6633 = vmatprep.subr.bf16.mxu1 %v8522_v8 }
 0x687   :  { %6625 = vmatmul.mubr.bf16.vlgmr.msra.gmra.mrb[16].mxu1 %v10444_v26  ;;  %v8531_v26 = vld [vmem:[%s11480_s5 + $0x7bc] ss:$28 sps:$4 sm:$0xff]  }
 0x688   :  { %6868 = vmatmul.mubr.bf16.vlgmr.msra.gmra.mrb[36].mxu0 %v10844_v48  ;;  %6634 = vmatpush1.bf16.msra.mxu1 %v8520_v9  ;;  %v8586_v9 = vld [vmem:[%s11480_s5 + $0xbe0] ss:$28 sps:$4 sm:$0xff]  }
 0x689   :  { %6665 = vmatprep.mubr.bf16.mxu1 %v10446_v41  ;;  %6635 = vmatprep.subr.bf16.mxu1 %v8525_v11  ;;  %v8529_v41 = vld [vmem:[%s11480_s5 + $0x7b8] ss:$28 sps:$4 sm:$0xff]  }
 0x68c   :  { %6636 = vmatpush1.bf16.msra.mxu1 %v8523_v14 }
 0x68d   :  { %6637 = vmatprep.subr.bf16.mxu1 %v8528_v15  ;;  %v8591_v15 = vld [vmem:[%s11480_s5 + $0xc1c] ss:$28 sps:$4 sm:$0xff]  }
 0x690   :  { %6638 = vmatpush1.bf16.msra.mxu1 %v8526_v19 }
 0x691   :  { %6639 = vmatprep.subr.bf16.mxu1 %v8531_v26  ;;  %v8589_v26 = vld [vmem:[%s11480_s5 + $0xc18] ss:$28 sps:$4 sm:$0xff]  }
 0x694   :  { %6640 = vmatpush1.bf16.msra.mxu1 %v8529_v41  ;;  %v8594_v41 = vld [vmem:[%s11480_s5 + $0xc54] ss:$28 sps:$4 sm:$0xff]  }
 0x695   :  { %6641 = vmatprep.subr.bf16.mxu1 %v8534_v62  ;;  %v8592_v62 = vld [vmem:[%s11480_s5 + $0xc50] ss:$28 sps:$4 sm:$0xff]  }
 0x698   :  { %6642 = vmatpush1.bf16.msra.mxu1 %v8532_v7  ;;  %v8597_v7 = vld [vmem:[%s11480_s5 + $0xc8c] ss:$28 sps:$4 sm:$0xff]  }
 0x699   :  { %6643 = vmatprep.subr.bf16.mxu1 %v8537_v10 }
 0x69c   :  { %6644 = vmatpush1.bf16.msra.mxu1 %v8535_v31 }
 0x69d   :  { %6645 = vmatprep.subr.bf16.mxu1 %v8540_v4  ;;  %v8595_v4 = vld [vmem:[%s11480_s5 + $0xc88] ss:$28 sps:$4 sm:$0xff]  }
 0x6a0   :  { %6646 = vmatpush1.bf16.msra.mxu1 %v8538_v16 }
 0x6a1   :  { %6647 = vmatprep.subr.bf16.mxu1 %v8543_v53  ;;  %v8600_v53 = vld [vmem:[%s11480_s5 + $0xcc4] ss:$28 sps:$4 sm:$0xff]  }
 0x6a4   :  { %6648 = vmatpush1.bf16.msra.mxu1 %v8541_v37 }
 0x6a5   :  { %6649 = vmatprep.subr.bf16.mxu1 %v8546_v36  ;;  %v8598_v36 = vld [vmem:[%s11480_s5 + $0xcc0] ss:$28 sps:$4 sm:$0xff]  }
 0x6a8   :  { %6650 = vmatpush1.bf16.msra.mxu1 %v8544_v49  ;;  %v8603_v49 = vld [vmem:[%s11480_s5 + $0xcfc] ss:$28 sps:$4 sm:$0xff]  }
 0x6a9   :  { %6651 = vmatprep.subr.bf16.mxu1 %v8549_v40  ;;  %v8601_v40 = vld [vmem:[%s11480_s5 + $0xcf8] ss:$28 sps:$4 sm:$0xff]  }
 0x6ac   :  { %6652 = vmatpush1.bf16.msra.mxu1 %v8547_v23  ;;  %v8606_v23 = vld [vmem:[%s11480_s5 + $0xd34] ss:$28 sps:$4 sm:$0xff]  }
 0x6ad   :  { %6653 = vmatprep.subr.bf16.mxu1 %v8552_v21  ;;  %v8604_v21 = vld [vmem:[%s11480_s5 + $0xd30] ss:$28 sps:$4 sm:$0xff]  }
 0x6b0   :  { %6654 = vmatpush1.bf16.msra.mxu1 %v8550_v30  ;;  %v8609_v30 = vld [vmem:[%s11480_s5 + $0xd6c] ss:$28 sps:$4 sm:$0xff]  }
 0x6b1   :  { %6655 = vmatprep.subr.bf16.mxu1 %v8555_v43  ;;  %v8607_v43 = vld [vmem:[%s11480_s5 + $0xd68] ss:$28 sps:$4 sm:$0xff]  }
 0x6b4   :  { %6656 = vmatpush1.bf16.msra.mxu1 %v8553_v45  ;;  %v8612_v45 = vld [vmem:[%s11480_s5 + $0xda4] ss:$28 sps:$4 sm:$0xff]  }
 0x6b5   :  { %6657 = vmatprep.subr.bf16.mxu1 %v8558_v52 }
 0x6b8   :  { %6658 = vmatpush1.bf16.msra.mxu1 %v8556_v51 }
 0x6b9   :  { %6659 = vmatprep.subr.bf16.mxu1 %v8561_v0  ;;  %v8610_v0 = vld [vmem:[%s11480_s5 + $0xda0] ss:$28 sps:$4 sm:$0xff]  }
 0x6bc   :  { %6660 = vmatpush1.bf16.msra.mxu1 %v8559_v1 }
 0x6bd   :  { %6661 = vmatprep.subr.bf16.mxu1 %v8564_v12 }
 0x6c0   :  { %6662 = vmatpush1.bf16.msra.mxu1 %v8562_v13  ;;  %v8615_v13 = vld [vmem:[%s11480_s5 + $0xddc] ss:$28 sps:$4 sm:$0xff]  }
 0x6c1   :  { %6663 = vmatprep.subr.bf16.mxu1 %v8567_v55 }
 0x6c4   :  { %6664 = vmatpush1.bf16.msra.mxu1 %v8565_v56  ;;  %v8613_v56 = vld [vmem:[%s11480_s5 + $0xdd8] ss:$28 sps:$4 sm:$0xff]  }
 0x6c5   :  { %6674 = vmatprep.subr.bf16.mxu1 %v8570_v38  ;;  %v3911_v38 = vrot.slane %v11367_v33, %v10171_v35 }
 0x6c7   :  { %6666 = vmatmul.mubr.bf16.vlgmr.msra.gmra.mrb[16].mxu1 %v10641_v34  ;;  %v8579_v34 = vld [vmem:[%s11480_s5 + $0xb3c] ss:$28 sps:$4 sm:$0xff]  }
 0x6c8   :  { %6675 = vmatpush1.bf16.msra.mxu1 %v8568_v57  ;;  %6706 = vmatprep.mubr.bf16.mxu1 %v10650_v54  ;;  %v8577_v54 = vld [vmem:[%s11480_s5 + $0xb38] ss:$28 sps:$4 sm:$0xff]  }
 0x6c9   :  { %6676 = vmatprep.subr.bf16.mxu1 %v8573_v58 }
 0x6cc   :  { %6677 = vmatpush1.bf16.msra.mxu1 %v8571_v61 }
 0x6cd   :  { %6678 = vmatprep.subr.bf16.mxu1 %v8576_v2 }
 0x6d0   :  { %6679 = vmatpush1.bf16.msra.mxu1 %v8574_v24 }
 0x6d1   :  { %6680 = vmatprep.subr.bf16.mxu1 %v8579_v34 }
 0x6d4   :  { %6681 = vmatpush1.bf16.msra.mxu1 %v8577_v54 }
 0x6d5   :  { %6682 = vmatprep.subr.bf16.mxu1 %v8582_v44 }
 0x6d8   :  { %6683 = vmatpush1.bf16.msra.mxu1 %v8580_v29 }
 0x6d9   :  { %6684 = vmatprep.subr.bf16.mxu1 %v8585_v28 }
 0x6da   :  { %v6380_v59 = vpop.f32.mrb[12].mxu1 }
 0x6db   :  { %v7786_v63 = vadd.f32 %v6380_v59, %v3887_v25  ;;  %v6544_v3 = vpop.f32.mrb[20].mxu0  ;;  %v6382_v6 = vpop.f32.mrb[13].mxu1  ;;  %v3903_v59 = vrot.slane %v11367_v33, %v10165_v22 }
 0x6dc   :  { %v7788_v47 = vadd.f32 %v6544_v3, %v3895_v39  ;;  %v7787_v5 = vadd.f32 %v6382_v6, %v3891_v18  ;;  %v6546_v8 = vpop.f32.mrb[21].mxu0  ;;  %v6384_v60 = vpop.f32.mrb[14].mxu1  ;;  %6685 = vmatpush1.bf16.msra.mxu1 %v8583_v17 }
 0x6dd   :  { %8644 = vtanh.f32 %v7786_v63  ;;  %v7789_v50 = vadd.f32 %v6546_v8, %v3899_v20  ;;  %v6548_v11 = vpop.f32.mrb[22].mxu0  ;;  %v6385_v14 = vpop.f32.mrb[15].mxu1  ;;  %6686 = vmatprep.subr.bf16.mxu1 %v8588_v46  ;;  %v3907_v63 = vrot.slane %v11367_v33, %v10168_v32 }
 0x6de   :  { %8646 = vtanh.f32 %v7788_v47  ;;  %v6549_v19 = vpop.f32.mrb[23].mxu0 }
 0x6df   :  { %8648 = vtanh.f32 %v7787_v5 }
 0x6e0   :  { %8650 = vtanh.f32 %v7789_v50  ;;  %6687 = vmatpush1.bf16.msra.mxu1 %v8586_v9 }
 0x6e1   :  { %6688 = vmatprep.subr.bf16.mxu1 %v8591_v15 }
 0x6e4   :  { %6689 = vmatpush1.bf16.msra.mxu1 %v8589_v26 }
 0x6e5   :  { %6690 = vmatprep.subr.bf16.mxu1 %v8594_v41 }
 0x6e7   :  { %v8645_v10 = vpop.eup %8644 }
 0x6e8   :  { %v8647_v31 = vpop.eup %8646  ;;  %6882 = vst [vmem:[%s11481_s7] sm:$0xff] %v8645_v10  ;;  %6691 = vmatpush1.bf16.msra.mxu1 %v8592_v62 }
 0x6e9   :  { %v8649_v16 = vpop.eup %8648  ;;  %6884 = vst [vmem:[%s11481_s7 + $0x10] sm:$0xff] %v8647_v31  ;;  %6692 = vmatprep.subr.bf16.mxu1 %v8597_v7 }
 0x6ea   :  { %v8651_v37 = vpop.eup %8650  ;;  %6883 = vst [vmem:[%s11481_s7 + $0x8] sm:$0xff] %v8649_v16 }
 0x6eb   :  { %6885 = vst [vmem:[%s11481_s7 + $0x18] sm:$0xff] %v8651_v37 }
 0x6ec   :  { %6693 = vmatpush1.bf16.msra.mxu1 %v8595_v4 }
 0x6ed   :  { %6694 = vmatprep.subr.bf16.mxu1 %v8600_v53 }
 0x6f0   :  { %6695 = vmatpush1.bf16.msra.mxu1 %v8598_v36 }
 0x6f1   :  { %6696 = vmatprep.subr.bf16.mxu1 %v8603_v49 }
 0x6f4   :  { %6697 = vmatpush1.bf16.msra.mxu1 %v8601_v40 }
 0x6f5   :  { %6698 = vmatprep.subr.bf16.mxu1 %v8606_v23 }
 0x6f8   :  { %6699 = vmatpush1.bf16.msra.mxu1 %v8604_v21 }
 0x6f9   :  { %6700 = vmatprep.subr.bf16.mxu1 %v8609_v30 }
 0x6fb   :  { %v7714_v52 = vpop.f32.mrb[24].mxu0 }
 0x6fc   :  { %v7715_v51 = vpop.f32.mrb[25].mxu0  ;;  %6701 = vmatpush1.bf16.msra.mxu1 %v8607_v43 }
 0x6fd   :  { %v7716_v1 = vadd.f32 %v7715_v51, %v7714_v52  ;;  %v7717_v12 = vpop.f32.mrb[26].mxu0  ;;  %6702 = vmatprep.subr.bf16.mxu1 %v8612_v45 }
 0x6fe   :  { %v7718_v55 = vpop.f32.mrb[27].mxu0 }
 0x6ff   :  { %v6750_v61 = vadd.f32 %v7716_v1, %v3911_v38 }
 0x700   :  { %6703 = vmatpush1.bf16.msra.mxu1 %v8610_v0 }
 0x701   :  { %6704 = vmatprep.subr.bf16.mxu1 %v8615_v13 }
 0x704   :  { %6705 = vmatpush1.bf16.msra.mxu1 %v8613_v56 }
 0x707   :  { %6707 = vmatmul.mubr.bf16.vlgmr.msra.gmra.mrb[16].mxu1 %v10844_v48 }
 0x71b   :  { %v7736_v57 = vpop.f32.mrb[28].mxu0 }
 0x71c   :  { %v7737_v58 = vpop.f32.mrb[29].mxu0 }
 0x71d   :  { %v7738_v2 = vadd.f32 %v7737_v58, %v7736_v57  ;;  %v7739_v24 = vpop.f32.mrb[30].mxu0 }
 0x71e   :  { %v7740_v34 = vpop.f32.mrb[31].mxu0 }
 0x71f   :  { %v6790_v54 = vadd.f32 %v7738_v2, %v6750_v61 }
 0x73b   :  { %v7758_v42 = vpop.f32.mrb[32].mxu0 }
 0x73c   :  { %v7759_v27 = vpop.f32.mrb[33].mxu0 }
 0x73d   :  { %v7760_v44 = vadd.f32 %v7759_v27, %v7758_v42  ;;  %v7761_v29 = vpop.f32.mrb[34].mxu0 }
 0x73e   :  { %v7762_v28 = vpop.f32.mrb[35].mxu0 }
 0x73f   :  { %v6830_v25 = vadd.f32 %v7760_v44, %v6790_v54 }
 0x75b   :  { %v7780_v39 = vpop.f32.mrb[36].mxu0 }
 0x75c   :  { %v7781_v18 = vpop.f32.mrb[37].mxu0 }
 0x75d   :  { %v7782_v17 = vadd.f32 %v7781_v18, %v7780_v39  ;;  %v7783_v48 = vpop.f32.mrb[38].mxu0 }
 0x75e   :  { %v7784_v20 = vpop.f32.mrb[39].mxu0 }
 0x75f   :  { %v6870_v46 = vadd.f32 %v7782_v17, %v6830_v25 }
 0x761   :  { %8652 = vtanh.f32 %v6870_v46 }
 0x76b   :  { %v8653_v35 = vpop.eup %8652 }
 0x76c   :  { %6889 = vst.msk [vmem:[%s11481_s7 + $0x30] sm:$0xff] %vm6888_vm0, %v8653_v35 }
 0x7da   :  { %v6708_v3 = vpop.f32.mrb[16].mxu1 }
 0x7db   :  { %v7790_v6 = vadd.f32 %v6708_v3, %v3903_v59  ;;  %v6710_v47 = vpop.f32.mrb[17].mxu1 }
 0x7dc   :  { %v7791_v5 = vadd.f32 %v6710_v47, %v3907_v63  ;;  %v6712_v8 = vpop.f32.mrb[18].mxu1 }
 0x7dd   :  { %8654 = vtanh.f32 %v7790_v6  ;;  %v6713_v60 = vpop.f32.mrb[19].mxu1 }
 0x7de   :  { %8656 = vtanh.f32 %v7791_v5 }
 0x7e7   :  { %v8655_v9 = vpop.eup %8654 }
 0x7e8   :  { %v8657_v50 = vpop.eup %8656  ;;  %6886 = vst [vmem:[%s11481_s7 + $0x20] sm:$0xff] %v8655_v9 }
 0x7e9   :  { %6887 = vst [vmem:[%s11481_s7 + $0x28] sm:$0xff] %v8657_v50 }

</bundles_post_ra>
